<compile_context>
chip_gen: v7x
topology: tpu7x:2x2x1
jax: 0.10.0
libtpu: 0.0.40
codegen_flags: <defaults>
</compile_context>

<pallas_src>
import jax
import jax.numpy as jnp
from jax.experimental import pallas as pl
from jax.experimental.pallas import tpu as pltpu

MXU_PAD = 128  # lane-dense padding of the last layer for the MXU (true out_dim is 4)


def nerf_kernel(x_ref, w1_ref, b1_ref, w2_ref, b2_ref, w3_ref, b3_ref, o_ref):
    # x arrives f32; cast to bf16 in-register so the wrapper doesn't need an
    # extra HBM pass to produce a bf16 copy of the batch.
    x = x_ref[...].astype(jnp.bfloat16)
    h1 = jnp.dot(x, w1_ref[...], preferred_element_type=jnp.float32) + b1_ref[...]
    h1 = jnp.maximum(h1, 0.0).astype(jnp.bfloat16)
    h2 = jnp.dot(h1, w2_ref[...], preferred_element_type=jnp.float32) + b2_ref[...]
    h2 = jnp.maximum(h2, 0.0).astype(jnp.bfloat16)
    h3 = jnp.dot(h2, w3_ref[...], preferred_element_type=jnp.float32) + b3_ref[...]
    # Only the first out_dim columns are real; drop the MXU padding here so
    # HBM only ever sees the slim (tile_m, out_dim) block.
    o_ref[...] = h3[:, : o_ref.shape[-1]]


def _auto_tile_m(n):
    """Pick tile_m: multiple of 256 (full MXU M occupancy), capped at 8192
    (v7x has 64 MiB VMEM/TC; 8192 keeps double-buffered VMEM well under the
    32 MiB scoped default on every generation), and sized so there are at
    least 2 balanced batch tiles for v7x's two TensorCores."""
    half = -(-n // 2)
    tm = -(-half // 256) * 256
    return max(256, min(8192, tm))


def nerf_forward(x, params, *, tile_m=None):
    """x: [N, in_dim] float32.  params: dict of transposed weights/biases.

    Returns [N, out_dim] float32 matching the PyTorch NeRF forward.
    """
    n, in_dim = x.shape
    hidden = params["w1"].shape[1]
    out_dim = params["w3"].shape[1]
    assert out_dim <= MXU_PAD

    if tile_m is None:
        tile_m = _auto_tile_m(n)

    # Small, resident weights: bf16 MXU operands, f32 biases.
    w1 = params["w1"].astype(jnp.bfloat16)
    w2 = params["w2"].astype(jnp.bfloat16)
    b1 = params["b1"].astype(jnp.float32)
    b2 = params["b2"].astype(jnp.float32)
    # Last layer padded to 128 columns for the MXU only; the HBM output stays
    # (n_pad, out_dim) because the kernel slices before storing.
    w3 = jnp.pad(params["w3"], ((0, 0), (0, MXU_PAD - out_dim))).astype(jnp.bfloat16)
    b3 = jnp.pad(params["b3"], ((0, 0), (0, MXU_PAD - out_dim))).astype(jnp.float32)

    # Pad the batch only when needed so the grid tiles evenly.
    n_blocks = pl.cdiv(n, tile_m)
    n_pad = n_blocks * tile_m
    x_in = x.astype(jnp.float32)
    if n_pad != n:
        x_in = jnp.pad(x_in, ((0, n_pad - n), (0, 0)))

    flops = 2 * n_pad * (in_dim * hidden + hidden * hidden + hidden * MXU_PAD)
    bytes_accessed = (
        n_pad * in_dim * 4                                              # x (f32)
        + n_pad * out_dim * 4                                           # slim output
        + (in_dim * hidden + hidden * hidden + hidden * MXU_PAD) * 2    # bf16 weights
        + (2 * hidden + MXU_PAD) * 4                                    # f32 biases
    )

    out = pl.pallas_call(
        nerf_kernel,
        out_shape=jax.ShapeDtypeStruct((n_pad, out_dim), jnp.float32),
        grid_spec=pltpu.PrefetchScalarGridSpec(
            num_scalar_prefetch=0,
            grid=(n_blocks,),
            in_specs=[
                pl.BlockSpec((tile_m, in_dim), lambda i: (i, 0)),   # x tile (f32)
                pl.BlockSpec((in_dim, hidden), lambda i: (0, 0)),   # w1 (resident)
                pl.BlockSpec((1, hidden), lambda i: (0, 0)),        # b1
                pl.BlockSpec((hidden, hidden), lambda i: (0, 0)),   # w2 (resident)
                pl.BlockSpec((1, hidden), lambda i: (0, 0)),        # b2
                pl.BlockSpec((hidden, MXU_PAD), lambda i: (0, 0)),  # w3 (MXU-padded)
                pl.BlockSpec((1, MXU_PAD), lambda i: (0, 0)),       # b3 (MXU-padded)
            ],
            # Slim output block: last dim equals the full array dim (out_dim),
            # so the (8,128) rule is satisfied and no padded zeros hit HBM.
            out_specs=pl.BlockSpec((tile_m, out_dim), lambda i: (i, 0)),
        ),
        compiler_params=pltpu.CompilerParams(
            dimension_semantics=("parallel",),
        ),
        cost_estimate=pl.CostEstimate(
            flops=flops, transcendentals=0, bytes_accessed=bytes_accessed
        ),
    )(x_in, w1, b1, w2, b2, w3, b3)

    # Only the ragged-tail rows are dropped; no padded columns exist anymore.
    return out if n_pad == n else out[:n]


def init_params(key, in_dim, hidden, out_dim):
    """Deterministic init mimicking nn.Linear's U(-1/sqrt(fan_in), 1/sqrt(fan_in))."""
    ks = jax.random.split(key, 6)

    def lin(kw, kb, fan_in, fan_out):
        bound = 1.0 / jnp.sqrt(jnp.float32(fan_in))
        # stored transposed: [in, out]
        w = jax.random.uniform(kw, (fan_in, fan_out), jnp.float32, -bound, bound)
        b = jax.random.uniform(kb, (1, fan_out), jnp.float32, -bound, bound)
        return w, b

    w1, b1 = lin(ks[0], ks[1], in_dim, hidden)
    w2, b2 = lin(ks[2], ks[3], hidden, hidden)
    w3, b3 = lin(ks[4], ks[5], hidden, out_dim)
    return {"w1": w1, "b1": b1, "w2": w2, "b2": b2, "w3": w3, "b3": b3}


def nerf_ref(x, params):
    """Pure-JAX reference matching the kernel's numerics (bf16 dots, f32 acc)."""
    def mm(a, w):
        return jnp.dot(a.astype(jnp.bfloat16), w.astype(jnp.bfloat16),
                       preferred_element_type=jnp.float32)

    h = jnp.maximum(mm(x, params["w1"]) + params["b1"], 0.0)
    h = jnp.maximum(mm(h, params["w2"]) + params["b2"], 0.0)
    return mm(h, params["w3"]) + params["b3"]


if __name__ == "__main__":
    num_encoding_functions = 6
    out_channel = 128
    in_dim = 3 + 3 * 2 * num_encoding_functions   # 39
    out_dim = 4
    n_points = 4097          # deliberately ragged (not a multiple of tile_m)

    key = jax.random.PRNGKey(0)
    k_params, k_x = jax.random.split(key)
    params = init_params(k_params, in_dim, out_channel, out_dim)
    x = jax.random.normal(k_x, (n_points, in_dim), jnp.float32)

    out = nerf_forward(x, params)          # auto tile_m: 2 balanced tiles here
    out = jax.block_until_ready(out)

    ref = nerf_ref(x, params)
    assert out.shape == (n_points, out_dim)
    assert jnp.allclose(out, ref, atol=2e-2, rtol=2e-2), "mismatch vs reference"

    print("KERNEL_OK")
</pallas_src>

<mosaic_0001>
module attributes {stable_mosaic.version = 11 : i64} {
  func.func @nerf_kernel(%arg0: i32, %arg1: memref<2304x39xf32, #tpu.memory_space<vmem>>, %arg2: memref<39x128xbf16, #tpu.memory_space<vmem>>, %arg3: memref<1x128xf32, #tpu.memory_space<vmem>>, %arg4: memref<128x128xbf16, #tpu.memory_space<vmem>>, %arg5: memref<1x128xf32, #tpu.memory_space<vmem>>, %arg6: memref<128x128xbf16, #tpu.memory_space<vmem>>, %arg7: memref<1x128xf32, #tpu.memory_space<vmem>>, %arg8: memref<2304x4xf32, #tpu.memory_space<vmem>>) attributes {dimension_semantics = [#tpu.dimension_semantics<parallel>], iteration_bounds = array<i64: 2>, scalar_prefetch = 0 : i64, scratch_operands = 0 : i64, tpu.core_type = #tpu.core_type<tc>, window_params = [{transform_indices = @transform_0, window_bounds = array<i64: 2304, 39>}, {pipeline_mode = #tpu.pipeline_mode<synchronous>, transform_indices = @transform_1, window_bounds = array<i64: 39, 128>}, {pipeline_mode = #tpu.pipeline_mode<synchronous>, transform_indices = @transform_2, window_bounds = array<i64: 1, 128>}, {pipeline_mode = #tpu.pipeline_mode<synchronous>, transform_indices = @transform_3, window_bounds = array<i64: 128, 128>}, {pipeline_mode = #tpu.pipeline_mode<synchronous>, transform_indices = @transform_4, window_bounds = array<i64: 1, 128>}, {pipeline_mode = #tpu.pipeline_mode<synchronous>, transform_indices = @transform_5, window_bounds = array<i64: 128, 128>}, {pipeline_mode = #tpu.pipeline_mode<synchronous>, transform_indices = @transform_6, window_bounds = array<i64: 1, 128>}, {transform_indices = @transform_7, window_bounds = array<i64: 2304, 4>}]} {
    %c0 = arith.constant 0 : index
    %c0_0 = arith.constant 0 : index
    %0 = vector.load %arg1[%c0, %c0_0] : memref<2304x39xf32, #tpu.memory_space<vmem>>, vector<2304x39xf32>
    %1 = arith.truncf %0 : vector<2304x39xf32> to vector<2304x39xbf16>
    %c0_1 = arith.constant 0 : index
    %c0_2 = arith.constant 0 : index
    %2 = vector.load %arg2[%c0_1, %c0_2] : memref<39x128xbf16, #tpu.memory_space<vmem>>, vector<39x128xbf16>
    %cst = arith.constant dense<0.000000e+00> : vector<2304x128xf32>
    %3 = tpu.matmul %1, %2, %cst {dimension_numbers = #tpu.dot_dimension_numbers<[1], [0], [0], [1], [0, 0, 1, 1], [], []>} : vector<2304x39xbf16>, vector<39x128xbf16>, vector<2304x128xf32> -> vector<2304x128xf32>
    %c0_3 = arith.constant 0 : index
    %c0_4 = arith.constant 0 : index
    %4 = vector.load %arg3[%c0_3, %c0_4] : memref<1x128xf32, #tpu.memory_space<vmem>>, vector<1x128xf32>
    %5 = vector.broadcast %4 : vector<1x128xf32> to vector<2304x128xf32>
    %6 = arith.addf %3, %5 : vector<2304x128xf32>
    %cst_5 = arith.constant 0.000000e+00 : f32
    %7 = vector.broadcast %cst_5 : f32 to vector<2304x128xf32>
    %8 = arith.maximumf %6, %7 : vector<2304x128xf32>
    %9 = arith.truncf %8 : vector<2304x128xf32> to vector<2304x128xbf16>
    %c0_6 = arith.constant 0 : index
    %c0_7 = arith.constant 0 : index
    %10 = vector.load %arg4[%c0_6, %c0_7] : memref<128x128xbf16, #tpu.memory_space<vmem>>, vector<128x128xbf16>
    %cst_8 = arith.constant dense<0.000000e+00> : vector<2304x128xf32>
    %11 = tpu.matmul %9, %10, %cst_8 {dimension_numbers = #tpu.dot_dimension_numbers<[1], [0], [0], [1], [0, 0, 1, 1], [], []>} : vector<2304x128xbf16>, vector<128x128xbf16>, vector<2304x128xf32> -> vector<2304x128xf32>
    %c0_9 = arith.constant 0 : index
    %c0_10 = arith.constant 0 : index
    %12 = vector.load %arg5[%c0_9, %c0_10] : memref<1x128xf32, #tpu.memory_space<vmem>>, vector<1x128xf32>
    %13 = vector.broadcast %12 : vector<1x128xf32> to vector<2304x128xf32>
    %14 = arith.addf %11, %13 : vector<2304x128xf32>
    %cst_11 = arith.constant 0.000000e+00 : f32
    %15 = vector.broadcast %cst_11 : f32 to vector<2304x128xf32>
    %16 = arith.maximumf %14, %15 : vector<2304x128xf32>
    %17 = arith.truncf %16 : vector<2304x128xf32> to vector<2304x128xbf16>
    %c0_12 = arith.constant 0 : index
    %c0_13 = arith.constant 0 : index
    %18 = vector.load %arg6[%c0_12, %c0_13] : memref<128x128xbf16, #tpu.memory_space<vmem>>, vector<128x128xbf16>
    %cst_14 = arith.constant dense<0.000000e+00> : vector<2304x128xf32>
    %19 = tpu.matmul %17, %18, %cst_14 {dimension_numbers = #tpu.dot_dimension_numbers<[1], [0], [0], [1], [0, 0, 1, 1], [], []>} : vector<2304x128xbf16>, vector<128x128xbf16>, vector<2304x128xf32> -> vector<2304x128xf32>
    %c0_15 = arith.constant 0 : index
    %c0_16 = arith.constant 0 : index
    %20 = vector.load %arg7[%c0_15, %c0_16] : memref<1x128xf32, #tpu.memory_space<vmem>>, vector<1x128xf32>
    %21 = vector.broadcast %20 : vector<1x128xf32> to vector<2304x128xf32>
    %22 = arith.addf %19, %21 : vector<2304x128xf32>
    %23 = vector.extract_strided_slice %22 {offsets = [0, 0], sizes = [2304, 4], strides = [1, 1]} : vector<2304x128xf32> to vector<2304x4xf32>
    %c0_17 = arith.constant 0 : index
    %c0_18 = arith.constant 0 : index
    %24 = vector.load %arg8[%c0_17, %c0_18] : memref<2304x4xf32, #tpu.memory_space<vmem>>, vector<2304x4xf32>
    tpu.vector_store %arg8[%c0_17, %c0_18], %23 {strides = array<i32>} : memref<2304x4xf32, #tpu.memory_space<vmem>>, vector<2304x4xf32>,
    return
  }
  func.func @transform_0(%arg0: i32) -> (i32, i32) {
    %c0_i32 = arith.constant 0 : i32
    %c0_i32_0 = arith.constant 0 : i32
    return %arg0, %c0_i32 : i32, i32
  }
  func.func @transform_1(%arg0: i32) -> (i32, i32) {
    %c0_i32 = arith.constant 0 : i32
    %c0_i32_0 = arith.constant 0 : i32
    %c0_i32_1 = arith.constant 0 : i32
    return %c0_i32, %c0_i32_0 : i32, i32
  }
  func.func @transform_2(%arg0: i32) -> (i32, i32) {
    %c0_i32 = arith.constant 0 : i32
    %c0_i32_0 = arith.constant 0 : i32
    %c0_i32_1 = arith.constant 0 : i32
    return %c0_i32, %c0_i32_0 : i32, i32
  }
  func.func @transform_3(%arg0: i32) -> (i32, i32) {
    %c0_i32 = arith.constant 0 : i32
    %c0_i32_0 = arith.constant 0 : i32
    %c0_i32_1 = arith.constant 0 : i32
    return %c0_i32, %c0_i32_0 : i32, i32
  }
  func.func @transform_4(%arg0: i32) -> (i32, i32) {
    %c0_i32 = arith.constant 0 : i32
    %c0_i32_0 = arith.constant 0 : i32
    %c0_i32_1 = arith.constant 0 : i32
    return %c0_i32, %c0_i32_0 : i32, i32
  }
  func.func @transform_5(%arg0: i32) -> (i32, i32) {
    %c0_i32 = arith.constant 0 : i32
    %c0_i32_0 = arith.constant 0 : i32
    %c0_i32_1 = arith.constant 0 : i32
    return %c0_i32, %c0_i32_0 : i32, i32
  }
  func.func @transform_6(%arg0: i32) -> (i32, i32) {
    %c0_i32 = arith.constant 0 : i32
    %c0_i32_0 = arith.constant 0 : i32
    %c0_i32_1 = arith.constant 0 : i32
    return %c0_i32, %c0_i32_0 : i32, i32
  }
  func.func @transform_7(%arg0: i32) -> (i32, i32) {
    %c0_i32 = arith.constant 0 : i32
    %c0_i32_0 = arith.constant 0 : i32
    return %arg0, %c0_i32 : i32, i32
  }
}

</mosaic_0001>

<bundles_post_ra>
// kernel: tpu_custom_call.1
= control target key start
LH: loop header
LB: loop body
LE: loop exit
PB: predicated region body
PF: predicated region fallthrough
CT: control target
= control target key end

     0   :  { %s7707_s24 = smov 0   ;;  %s10151_s0 = inlined_call_operand.vmem [shape: f32[4608,39], index: 0, kind: input, shape index: {}]   ;;  %s10152_s1 = inlined_call_operand.vmem [shape: bf16[39,128], index: 1, kind: input, shape index: {}]   ;;  %s10153_s2 = inlined_call_operand.vmem [shape: f32[1,128], index: 2, kind: input, shape index: {}]   ;;  %s10154_s3 = inlined_call_operand.vmem [shape: bf16[128,128], index: 3, kind: input, shape index: {}]   ;;  %s10155_s4 = inlined_call_operand.vmem [shape: f32[1,128], index: 4, kind: input, shape index: {}]   ;;  %s10156_s5 = inlined_call_operand.vmem [shape: bf16[128,128], index: 5, kind: input, shape index: {}]   ;;  %s10157_s6 = inlined_call_operand.vmem [shape: f32[1,128], index: 6, kind: input, shape index: {}]   ;;  %s10158_s7 = inlined_call_operand.vmem [shape: f32[4608,4], index: 7, kind: output, shape index: {}]  }
   0x1 LB: > { %s6088_s25 = sadd.s32 4294967295, %s7664_s24   ;;  %p6092_p0 = scmp.ge.s32.totalorder %s7664_s24, 1  ;;  %s7664_s24 = sphi %s7707_s24, %s17_s24  }
   0x2   : > { %p238_p1 = scmp.lt.s32.totalorder %s7664_s24, 3 }
   0x4   : > { %p239_p2 = pnand %p6092_p0, %p238_p1 }
   0x6   : > { %242 = sbr.rel (%p239_p2) target bundleno = 1322 (0x52a), region = 48 }
   0xd   : > { %v7631_v0 = vld [vmem:[%s10152_s1] sm:$0xff]   ;;  %vm1175_vm0 = vcmask 1042432   ;;  %v7632_v1 = vld [vmem:[%s10152_s1 + $0x8] sm:$0xff]   ;;  %vm1176_vm1 = vcmask 1043456   ;;  %v7633_v2 = vld [vmem:[%s10152_s1 + $0x10] ss:$0 sps:$4 sm:$0xff]  }
   0xe   : > { %7616 = vmatprep.subr.bf16.mxu1 %v7631_v0  ;;  %s270_s9 = smul.u32 288, %s6088_s25  ;;  %6714 = vmatprep.subr.bf16.mxu0 %v7631_v0  ;;  %v7666_v3 = vmov 65535   ;;  %v7634_v7 = vld [vmem:[%s10154_s3] sm:$0xff]   ;;  %vm742_vm2 = vcmask 318464   ;;  %v7635_v17 = vld [vmem:[%s10154_s3 + $0x8] sm:$0xff]   ;;  %v7636_v22 = vld [vmem:[%s10154_s3 + $0x10] sm:$0xff]  }
   0xf   : > { %7619 = vmatpush3.bf16.msra.mxu1 %v7631_v0  ;;  %v1177_v4 = vsel %vm1175_vm0, 4294967295, %v7666_v3  ;;  %6715 = vmatpush3.bf16.msra.mxu0 %v7631_v0  ;;  %v7637_v26 = vld [vmem:[%s10154_s3 + $0x18] sm:$0xff]   ;;  %vm5743_vm3 = vcmask 31744  }
  0x10   : > { %7617 = vmatprep.subr.bf16.mxu1 %v7632_v1  ;;  %v1178_v5 = vsel %vm1176_vm1, %v1177_v4, 0  ;;  %p271_p3 = scmp.lt.s32.totalorder %s270_s9, 575  ;;  %6716 = vmatprep.subr.bf16.mxu0 %v7632_v1 }
  0x11   : > { %v1180_v6 = vand.u32 %v7633_v2, %v1178_v5 }
  0x12   : > { %s10250_s9 = smov (!%p271_p3, %s270_s9), 575 }
  0x13   : > { %7620 = vmatpush3.bf16.msra.mxu1 %v7632_v1  ;;  %6717 = vmatpush3.bf16.msra.mxu0 %v7632_v1  ;;  %s6093_s10 = sshll.u32 %s10250_s9, 3 }
  0x14   : > { %7618 = vmatprep.subr.bf16.mxu1 %v1180_v6  ;;  %6718 = vmatprep.subr.bf16.mxu0 %v1180_v6  ;;  %s7735_s15 = scalar_lea.vmem %s10151_s0, %s6093_s10  ;;  %s9047_s21 = scalar_lea.vmem %s10158_s7, %s6093_s10 }
  0x15   : > { %v427_v8 = vld [vmem:[%s7735_s15 + $0x480] sm:$0xff]  ;;  %v428_v9 = vld [vmem:[%s7735_s15 + $0x488] sm:$0xff]  ;;  %v429_v10 = vld [vmem:[%s7735_s15 + $0x490] sm:$0xff] }
  0x16   : > { %v643_v11 = vpack.c.bf16 %v428_v9, %v427_v8  ;;  %v430_v12 = vld [vmem:[%s7735_s15 + $0x498] sm:$0xff]  ;;  %v431_v13 = vld [vmem:[%s7735_s15 + $0x4a0] sm:$0xff]  ;;  %v432_v14 = vld [vmem:[%s7735_s15 + $0x4a8] sm:$0xff] }
  0x17   : > { %7621 = vmatpush3.bf16.msra.mxu1 %v1180_v6  ;;  %6719 = vmatpush3.bf16.msra.mxu0 %v1180_v6  ;;  %v644_v15 = vpack.c.bf16 %v430_v12, %v429_v10  ;;  %v645_v16 = vpack.c.bf16 %v432_v14, %v431_v13  ;;  %v433_v18 = vld [vmem:[%s7735_s15 + $0x4b0] sm:$0xff]  ;;  %v434_v19 = vld [vmem:[%s7735_s15 + $0x4b8] sm:$0xff]  ;;  %v435_v20 = vld [vmem:[%s7735_s15 + $0x4c0] sm:$0xff] }
  0x18   : > { %7008 = vmatprep.subr.bf16.mxu1 %v7634_v7  ;;  %6864 = vmatprep.mubr.msk.bf16.mxu1 %vm742_vm2, %v643_v11  ;;  %v436_v21 = vld [vmem:[%s7735_s15 + $0x4c8] sm:$0xff]  ;;  %v646_v23 = vpack.c.bf16 %v434_v19, %v433_v18  ;;  %v283_v25 = vld [vmem:[%s7735_s15] sm:$0xff]  ;;  %v437_v28 = vld [vmem:[%s7735_s15 + $0x4d0] sm:$0xff] }
  0x19   : > { %v647_v24 = vpack.c.bf16 %v436_v21, %v435_v20  ;;  %v284_v27 = vld [vmem:[%s7735_s15 + $0x8] sm:$0xff]  ;;  %v285_v30 = vld [vmem:[%s7735_s15 + $0x10] sm:$0xff]  ;;  %v286_v31 = vld [vmem:[%s7735_s15 + $0x18] sm:$0xff] }
  0x1a   : > { %6865 = vmatmul.mubr.msk.bf16.vlgmr.msra.gmra.mrb[0].mxu1 %vm742_vm2, %v644_v15  ;;  %v571_v29 = vpack.c.bf16 %v284_v27, %v283_v25  ;;  %v438_v32 = vld [vmem:[%s7735_s15 + $0x4d8] sm:$0xff]  ;;  %v572_v33 = vpack.c.bf16 %v286_v31, %v285_v30  ;;  %v287_v34 = vld [vmem:[%s7735_s15 + $0x20] sm:$0xff]  ;;  %v288_v35 = vld [vmem:[%s7735_s15 + $0x28] sm:$0xff] }
  0x1b   : > { %7009 = vmatpush3.bf16.msra.mxu1 %v7634_v7  ;;  %6868 = vmatprep.mubr.msk.bf16.mxu1 %vm742_vm2, %v645_v16  ;;  %v439_v36 = vld [vmem:[%s7735_s15 + $0x4e0] sm:$0xff]  ;;  %v440_v37 = vld [vmem:[%s7735_s15 + $0x4e8] sm:$0xff]  ;;  %v573_v38 = vpack.c.bf16 %v288_v35, %v287_v34  ;;  %v648_v39 = vpack.c.bf16 %v438_v32, %v437_v28  ;;  %v289_v40 = vld [vmem:[%s7735_s15 + $0x30] sm:$0xff] }
  0x1c   : > { %7010 = vmatprep.subr.bf16.mxu1 %v7635_v17  ;;  %6720 = vmatprep.mubr.msk.bf16.mxu0 %vm742_vm2, %v571_v29  ;;  %v290_v41 = vld [vmem:[%s7735_s15 + $0x38] sm:$0xff]  ;;  %v649_v42 = vpack.c.bf16 %v440_v37, %v439_v36  ;;  %v291_v43 = vld [vmem:[%s7735_s15 + $0x40] sm:$0xff]  ;;  %v292_v44 = vld [vmem:[%s7735_s15 + $0x48] sm:$0xff] }
  0x1d   : > { %6721 = vmatmul.mubr.msk.bf16.vlgmr.msra.gmra.mrb[0].mxu0 %vm742_vm2, %v572_v33  ;;  %v574_v45 = vpack.c.bf16 %v290_v41, %v289_v40  ;;  %v575_v46 = vpack.c.bf16 %v292_v44, %v291_v43  ;;  %v441_v47 = vld [vmem:[%s7735_s15 + $0x4f0] sm:$0xff]  ;;  %v442_v48 = vld [vmem:[%s7735_s15 + $0x4f8] sm:$0xff]  ;;  %v443_v49 = vld [vmem:[%s7735_s15 + $0x500] sm:$0xff] }
  0x1e   : > { %6724 = vmatprep.mubr.msk.bf16.mxu0 %vm742_vm2, %v573_v38  ;;  %v444_v50 = vld [vmem:[%s7735_s15 + $0x508] sm:$0xff]  ;;  %v650_v51 = vpack.c.bf16 %v442_v48, %v441_v47  ;;  %v293_v52 = vld [vmem:[%s7735_s15 + $0x50] sm:$0xff]  ;;  %v294_v53 = vld [vmem:[%s7735_s15 + $0x58] sm:$0xff] }
  0x1f   : > { %7011 = vmatpush3.bf16.msra.mxu1 %v7635_v17  ;;  %v651_v54 = vpack.c.bf16 %v444_v50, %v443_v49  ;;  %v295_v55 = vld [vmem:[%s7735_s15 + $0x60] sm:$0xff]  ;;  %v296_v56 = vld [vmem:[%s7735_s15 + $0x68] sm:$0xff]  ;;  %v576_v57 = vpack.c.bf16 %v294_v53, %v293_v52  ;;  %v445_v59 = vld [vmem:[%s7735_s15 + $0x510] sm:$0xff] }
  0x20   : > { %7012 = vmatprep.subr.bf16.mxu1 %v7636_v22  ;;  %v577_v58 = vpack.c.bf16 %v296_v56, %v295_v55  ;;  %v446_v60 = vld [vmem:[%s7735_s15 + $0x518] sm:$0xff]  ;;  %v447_v61 = vld [vmem:[%s7735_s15 + $0x520] sm:$0xff]  ;;  %v448_v62 = vld [vmem:[%s7735_s15 + $0x528] sm:$0xff] }
  0x21   : > { %v652_v63 = vpack.c.bf16 %v446_v60, %v445_v59  ;;  %v297_v0 = vld [vmem:[%s7735_s15 + $0x70] sm:$0xff]  ;;  %v298_v1 = vld [vmem:[%s7735_s15 + $0x78] sm:$0xff]  ;;  %v653_v2 = vpack.c.bf16 %v448_v62, %v447_v61  ;;  %v299_v3 = vld [vmem:[%s7735_s15 + $0x80] sm:$0xff] }
  0x22   : > { %6869 = vmatmul.mubr.msk.bf16.gmra.mrb[4].mxu1 %vm742_vm2, %v646_v23  ;;  %v300_v4 = vld [vmem:[%s7735_s15 + $0x88] sm:$0xff]  ;;  %v578_v5 = vpack.c.bf16 %v298_v1, %v297_v0  ;;  %v449_v7 = vld [vmem:[%s7735_s15 + $0x530] sm:$0xff]  ;;  %v450_v8 = vld [vmem:[%s7735_s15 + $0x538] sm:$0xff] }
  0x23   : > { %6872 = vmatprep.mubr.msk.bf16.mxu1 %vm742_vm2, %v647_v24  ;;  %7013 = vmatpush3.bf16.msra.mxu1 %v7636_v22  ;;  %v579_v6 = vpack.c.bf16 %v300_v4, %v299_v3  ;;  %v451_v9 = vld [vmem:[%s7735_s15 + $0x540] sm:$0xff]  ;;  %v452_v10 = vld [vmem:[%s7735_s15 + $0x548] sm:$0xff]  ;;  %v654_v11 = vpack.c.bf16 %v450_v8, %v449_v7  ;;  %v301_v12 = vld [vmem:[%s7735_s15 + $0x90] sm:$0xff] }
  0x24   : > { %7014 = vmatprep.subr.bf16.mxu1 %v7637_v26  ;;  %v302_v13 = vld [vmem:[%s7735_s15 + $0x98] sm:$0xff]  ;;  %v7638_v14 = vld [vmem:[%s10154_s3 + $0x20] sm:$0xff]   ;;  %v655_v15 = vpack.c.bf16 %v452_v10, %v451_v9  ;;  %v304_v17 = vld [vmem:[%s7735_s15 + $0xa8] sm:$0xff] }
  0x25   : > { %6725 = vmatmul.mubr.msk.bf16.gmra.mrb[4].mxu0 %vm742_vm2, %v574_v45  ;;  %v303_v16 = vld [vmem:[%s7735_s15 + $0xa0] sm:$0xff]  ;;  %v580_v18 = vpack.c.bf16 %v302_v13, %v301_v12  ;;  %v453_v20 = vld [vmem:[%s7735_s15 + $0x550] sm:$0xff]  ;;  %v454_v21 = vld [vmem:[%s7735_s15 + $0x558] sm:$0xff] }
  0x26   : > { %6728 = vmatprep.mubr.msk.bf16.mxu0 %vm742_vm2, %v575_v46  ;;  %v581_v19 = vpack.c.bf16 %v304_v17, %v303_v16  ;;  %v455_v22 = vld [vmem:[%s7735_s15 + $0x560] sm:$0xff]  ;;  %v456_v23 = vld [vmem:[%s7735_s15 + $0x568] sm:$0xff]  ;;  %v656_v24 = vpack.c.bf16 %v454_v21, %v453_v20  ;;  %v305_v25 = vld [vmem:[%s7735_s15 + $0xb0] sm:$0xff] }
  0x27   : > { %7015 = vmatpush3.bf16.msra.mxu1 %v7637_v26  ;;  %v306_v26 = vld [vmem:[%s7735_s15 + $0xb8] sm:$0xff]  ;;  %v657_v27 = vpack.c.bf16 %v456_v23, %v455_v22  ;;  %v307_v28 = vld [vmem:[%s7735_s15 + $0xc0] sm:$0xff]  ;;  %v308_v29 = vld [vmem:[%s7735_s15 + $0xc8] sm:$0xff] }
  0x28   : > { %7016 = vmatprep.subr.bf16.mxu1 %v7638_v14  ;;  %v582_v30 = vpack.c.bf16 %v306_v26, %v305_v25  ;;  %v583_v31 = vpack.c.bf16 %v308_v29, %v307_v28  ;;  %v7639_v32 = vld [vmem:[%s10154_s3 + $0x28] sm:$0xff]   ;;  %v457_v33 = vld [vmem:[%s7735_s15 + $0x570] sm:$0xff]  ;;  %v458_v34 = vld [vmem:[%s7735_s15 + $0x578] sm:$0xff] }
  0x29   : > { %v459_v35 = vld [vmem:[%s7735_s15 + $0x580] sm:$0xff]  ;;  %v460_v36 = vld [vmem:[%s7735_s15 + $0x588] sm:$0xff]  ;;  %v309_v37 = vld [vmem:[%s7735_s15 + $0xd0] sm:$0xff]  ;;  %v658_v41 = vpack.c.bf16 %v458_v34, %v457_v33 }
  0x2a   : > { %6873 = vmatmul.mubr.msk.bf16.gmra.mrb[8].mxu1 %vm742_vm2, %v648_v39  ;;  %v310_v38 = vld [vmem:[%s7735_s15 + $0xd8] sm:$0xff]  ;;  %v311_v39 = vld [vmem:[%s7735_s15 + $0xe0] sm:$0xff]  ;;  %v312_v40 = vld [vmem:[%s7735_s15 + $0xe8] sm:$0xff] }
  0x2b   : > { %6876 = vmatprep.mubr.msk.bf16.mxu1 %vm742_vm2, %v649_v42  ;;  %7017 = vmatpush3.bf16.msra.mxu1 %v7638_v14  ;;  %v659_v42 = vpack.c.bf16 %v460_v36, %v459_v35  ;;  %v584_v43 = vpack.c.bf16 %v310_v38, %v309_v37  ;;  %v585_v44 = vpack.c.bf16 %v312_v40, %v311_v39  ;;  %v461_v45 = vld [vmem:[%s7735_s15 + $0x590] sm:$0xff]  ;;  %v462_v46 = vld [vmem:[%s7735_s15 + $0x598] sm:$0xff]  ;;  %v463_v47 = vld [vmem:[%s7735_s15 + $0x5a0] sm:$0xff] }
  0x2c   : > { %7018 = vmatprep.subr.bf16.mxu1 %v7639_v32  ;;  %v464_v48 = vld [vmem:[%s7735_s15 + $0x5a8] sm:$0xff]  ;;  %v660_v49 = vpack.c.bf16 %v462_v46, %v461_v45  ;;  %v313_v50 = vld [vmem:[%s7735_s15 + $0xf0] sm:$0xff]  ;;  %v315_v53 = vld [vmem:[%s7735_s15 + $0x100] sm:$0xff] }
  0x2d   : > { %6729 = vmatmul.mubr.msk.bf16.gmra.mrb[8].mxu0 %vm742_vm2, %v576_v57  ;;  %v661_v52 = vpack.c.bf16 %v464_v48, %v463_v47  ;;  %v465_v57 = vld [vmem:[%s7735_s15 + $0x5b0] sm:$0xff]  ;;  %v467_v59 = vld [vmem:[%s7735_s15 + $0x5c0] sm:$0xff]  ;;  %v468_v60 = vld [vmem:[%s7735_s15 + $0x5c8] sm:$0xff] }
  0x2e   : > { %6732 = vmatprep.mubr.msk.bf16.mxu0 %vm742_vm2, %v577_v58  ;;  %v466_v58 = vld [vmem:[%s7735_s15 + $0x5b8] sm:$0xff]  ;;  %v317_v62 = vld [vmem:[%s7735_s15 + $0x110] sm:$0xff]  ;;  %v663_v0 = vpack.c.bf16 %v468_v60, %v467_v59  ;;  %v319_v1 = vld [vmem:[%s7735_s15 + $0x120] sm:$0xff] }
  0x2f   : > { %7019 = vmatpush3.bf16.msra.mxu1 %v7639_v32  ;;  %v662_v61 = vpack.c.bf16 %v466_v58, %v465_v57  ;;  %v471_v7 = vld [vmem:[%s7735_s15 + $0x5e0] sm:$0xff]  ;;  %v472_v8 = vld [vmem:[%s7735_s15 + $0x5e8] sm:$0xff]  ;;  %v321_v10 = vld [vmem:[%s7735_s15 + $0x130] sm:$0xff] }
  0x30   : > { %v665_v12 = vpack.c.bf16 %v472_v8, %v471_v7  ;;  %v323_v13 = vld [vmem:[%s7735_s15 + $0x140] sm:$0xff]  ;;  %v324_v14 = vld [vmem:[%s7735_s15 + $0x148] sm:$0xff]  ;;  %v473_v17 = vld [vmem:[%s7735_s15 + $0x5f0] sm:$0xff] }
  0x31   : > { %v591_v16 = vpack.c.bf16 %v324_v14, %v323_v13  ;;  %v476_v20 = vld [vmem:[%s7735_s15 + $0x608] sm:$0xff]  ;;  %v325_v22 = vld [vmem:[%s7735_s15 + $0x150] sm:$0xff]  ;;  %v326_v23 = vld [vmem:[%s7735_s15 + $0x158] sm:$0xff] }
  0x32   : > { %6877 = vmatmul.mubr.msk.bf16.gmra.mrb[12].mxu1 %vm742_vm2, %v650_v51  ;;  %v314_v51 = vld [vmem:[%s7735_s15 + $0xf8] sm:$0xff]  ;;  %v327_v25 = vld [vmem:[%s7735_s15 + $0x160] sm:$0xff]  ;;  %v328_v26 = vld [vmem:[%s7735_s15 + $0x168] sm:$0xff] }
  0x33   : > { %6880 = vmatprep.mubr.msk.bf16.mxu1 %vm742_vm2, %v651_v54  ;;  %v316_v54 = vld [vmem:[%s7735_s15 + $0x108] sm:$0xff]  ;;  %v586_v55 = vpack.c.bf16 %v314_v51, %v313_v50  ;;  %v593_v28 = vpack.c.bf16 %v328_v26, %v327_v25  ;;  %v477_v29 = vld [vmem:[%s7735_s15 + $0x610] sm:$0xff]  ;;  %v330_v36 = vld [vmem:[%s7735_s15 + $0x178] sm:$0xff] }
  0x34   : > { %v587_v56 = vpack.c.bf16 %v316_v54, %v315_v53  ;;  %v480_v32 = vld [vmem:[%s7735_s15 + $0x628] sm:$0xff]  ;;  %v7640_v33 = vld [vmem:[%s10154_s3 + $0x30] sm:$0xff]   ;;  %v331_v38 = vld [vmem:[%s7735_s15 + $0x180] sm:$0xff] }
  0x35   : > { %6733 = vmatmul.mubr.msk.bf16.gmra.mrb[12].mxu0 %vm742_vm2, %v578_v5  ;;  %v469_v5 = vld [vmem:[%s7735_s15 + $0x5d0] sm:$0xff]  ;;  %7020 = vmatprep.subr.bf16.mxu1 %v7640_v33  ;;  %v332_v39 = vld [vmem:[%s7735_s15 + $0x188] sm:$0xff]  ;;  %v7641_v46 = vld [vmem:[%s10156_s5] sm:$0xff]  }
  0x36   : > { %6736 = vmatprep.mubr.msk.bf16.mxu0 %vm742_vm2, %v579_v6  ;;  %v470_v6 = vld [vmem:[%s7735_s15 + $0x5d8] sm:$0xff]  ;;  %v329_v35 = vld [vmem:[%s7735_s15 + $0x170] sm:$0xff]  ;;  %7021 = vmatpush3.bf16.msra.mxu1 %v7640_v33  ;;  %v484_v45 = vld [vmem:[%s7735_s15 + $0x648] sm:$0xff] }
  0x37   : > { %v664_v9 = vpack.c.bf16 %v470_v6, %v469_v5  ;;  %v594_v40 = vpack.c.bf16 %v330_v36, %v329_v35  ;;  %v333_v48 = vld [vmem:[%s7735_s15 + $0x190] sm:$0xff]  ;;  %7312 = vmatprep.subr.bf16.mxu0 %v7641_v46  ;;  %v335_v51 = vld [vmem:[%s7735_s15 + $0x1a0] sm:$0xff]  ;;  %v488_v58 = vld [vmem:[%s7735_s15 + $0x668] sm:$0xff] }
  0x38   : > { %7313 = vmatpush3.bf16.msra.mxu0 %v7641_v46  ;;  %v487_v57 = vld [vmem:[%s7735_s15 + $0x660] sm:$0xff]  ;;  %v337_v60 = vld [vmem:[%s7735_s15 + $0x1b0] sm:$0xff]  ;;  %v492_v6 = vld [vmem:[%s7735_s15 + $0x688] sm:$0xff] }
  0x39   : > { %v491_v5 = vld [vmem:[%s7735_s15 + $0x680] sm:$0xff]  ;;  %v341_v8 = vld [vmem:[%s7735_s15 + $0x1d0] sm:$0xff]  ;;  %v7642_v26 = vld [vmem:[%s10154_s3 + $0x38] sm:$0xff]  }
  0x3a   : > { %6881 = vmatmul.mubr.msk.bf16.gmra.mrb[16].mxu1 %vm742_vm2, %v652_v63  ;;  %v318_v63 = vld [vmem:[%s7735_s15 + $0x118] sm:$0xff]  ;;  %7022 = vmatprep.subr.bf16.mxu1 %v7642_v26  ;;  %v353_v46 = vld [vmem:[%s7735_s15 + $0x230] sm:$0xff] }
  0x3b   : > { %6884 = vmatprep.mubr.msk.bf16.mxu1 %vm742_vm2, %v653_v2  ;;  %v320_v2 = vld [vmem:[%s7735_s15 + $0x128] sm:$0xff]  ;;  %v588_v3 = vpack.c.bf16 %v318_v63, %v317_v62  ;;  %v673_v62 = vpack.c.bf16 %v488_v58, %v487_v57  ;;  %v339_v63 = vld [vmem:[%s7735_s15 + $0x1c0] sm:$0xff]  ;;  %7023 = vmatpush3.bf16.msra.mxu1 %v7642_v26  ;;  %v350_v35 = vld [vmem:[%s7735_s15 + $0x218] sm:$0xff] }
  0x3c   : > { %v589_v4 = vpack.c.bf16 %v320_v2, %v319_v1  ;;  %v357_v58 = vld [vmem:[%s7735_s15 + $0x250] sm:$0xff]  ;;  %v518_v26 = vld [vmem:[%s7735_s15 + $0x758] sm:$0xff] }
  0x3d   : > { %6737 = vmatmul.mubr.msk.bf16.gmra.mrb[16].mxu0 %vm742_vm2, %v580_v18  ;;  %v474_v18 = vld [vmem:[%s7735_s15 + $0x5f8] sm:$0xff] }
  0x3e   : > { %6740 = vmatprep.mubr.msk.bf16.mxu0 %vm742_vm2, %v581_v19  ;;  %v475_v19 = vld [vmem:[%s7735_s15 + $0x600] sm:$0xff]  ;;  %v666_v21 = vpack.c.bf16 %v474_v18, %v473_v17  ;;  %v496_v18 = vld [vmem:[%s7735_s15 + $0x6a8] sm:$0xff] }
  0x3f   : > { %v495_v17 = vld [vmem:[%s7735_s15 + $0x6a0] sm:$0xff] }
  0x42   : > { %6885 = vmatmul.mubr.msk.bf16.gmra.mrb[20].mxu1 %vm742_vm2, %v654_v11  ;;  %v322_v11 = vld [vmem:[%s7735_s15 + $0x138] sm:$0xff] }
  0x43   : > { %6888 = vmatprep.mubr.msk.bf16.mxu1 %vm742_vm2, %v655_v15  ;;  %v590_v15 = vpack.c.bf16 %v322_v11, %v321_v10  ;;  %v675_v10 = vpack.c.bf16 %v492_v6, %v491_v5  ;;  %v343_v11 = vld [vmem:[%s7735_s15 + $0x1e0] sm:$0xff]  ;;  %v361_v6 = vld [vmem:[%s7735_s15 + $0x270] sm:$0xff] }
  0x45   : > { %6741 = vmatmul.mubr.msk.bf16.gmra.mrb[20].mxu0 %vm742_vm2, %v582_v30  ;;  %v478_v30 = vld [vmem:[%s7735_s15 + $0x618] sm:$0xff] }
  0x46   : > { %6744 = vmatprep.mubr.msk.bf16.mxu0 %vm742_vm2, %v583_v31  ;;  %v479_v31 = vld [vmem:[%s7735_s15 + $0x620] sm:$0xff]  ;;  %v668_v34 = vpack.c.bf16 %v478_v30, %v477_v29  ;;  %v498_v29 = vld [vmem:[%s7735_s15 + $0x6b8] sm:$0xff] }
  0x47   : > { %v669_v37 = vpack.c.bf16 %v480_v32, %v479_v31  ;;  %v499_v30 = vld [vmem:[%s7735_s15 + $0x6c0] sm:$0xff]  ;;  %v500_v31 = vld [vmem:[%s7735_s15 + $0x6c8] sm:$0xff] }
  0x48   : > { %v7643_v32 = vld [vmem:[%s10156_s5 + $0x8] sm:$0xff]   ;;  %v679_v36 = vpack.c.bf16 %v500_v31, %v499_v30  ;;  %v369_v31 = vld [vmem:[%s7735_s15 + $0x2b0] sm:$0xff] }
  0x49   : > { %7314 = vmatprep.subr.bf16.mxu0 %v7643_v32 }
  0x4a   : > { %6889 = vmatmul.mubr.msk.bf16.gmra.mrb[24].mxu1 %vm742_vm2, %v656_v24  ;;  %v667_v24 = vpack.c.bf16 %v476_v20, %v475_v19  ;;  %v345_v20 = vld [vmem:[%s7735_s15 + $0x1f0] sm:$0xff]  ;;  %7315 = vmatpush3.bf16.msra.mxu0 %v7643_v32  ;;  %v370_v32 = vld [vmem:[%s7735_s15 + $0x2b8] sm:$0xff] }
  0x4b   : > { %6892 = vmatprep.mubr.msk.bf16.mxu1 %vm742_vm2, %v657_v27  ;;  %v592_v27 = vpack.c.bf16 %v326_v23, %v325_v22  ;;  %v677_v22 = vpack.c.bf16 %v496_v18, %v495_v17  ;;  %v347_v23 = vld [vmem:[%s7735_s15 + $0x200] sm:$0xff]  ;;  %v365_v18 = vld [vmem:[%s7735_s15 + $0x290] sm:$0xff] }
  0x4d   : > { %6745 = vmatmul.mubr.msk.bf16.gmra.mrb[24].mxu0 %vm742_vm2, %v584_v43  ;;  %v482_v43 = vld [vmem:[%s7735_s15 + $0x638] sm:$0xff] }
  0x4e   : > { %6748 = vmatprep.mubr.msk.bf16.mxu0 %vm742_vm2, %v585_v44  ;;  %v483_v44 = vld [vmem:[%s7735_s15 + $0x640] sm:$0xff] }
  0x4f   : > { %v671_v50 = vpack.c.bf16 %v484_v45, %v483_v44  ;;  %v504_v44 = vld [vmem:[%s7735_s15 + $0x6e8] sm:$0xff] }
  0x52   : > { %6893 = vmatmul.mubr.msk.bf16.gmra.mrb[28].mxu1 %vm742_vm2, %v658_v41  ;;  %v595_v41 = vpack.c.bf16 %v332_v39, %v331_v38  ;;  %v352_v38 = vld [vmem:[%s7735_s15 + $0x228] sm:$0xff] }
  0x53   : > { %6896 = vmatprep.mubr.msk.bf16.mxu1 %vm742_vm2, %v659_v42  ;;  %v481_v42 = vld [vmem:[%s7735_s15 + $0x630] sm:$0xff] }
  0x54   : > { %v670_v47 = vpack.c.bf16 %v482_v43, %v481_v42  ;;  %v502_v42 = vld [vmem:[%s7735_s15 + $0x6d8] sm:$0xff]  ;;  %v503_v43 = vld [vmem:[%s7735_s15 + $0x6e0] sm:$0xff] }
  0x55   : > { %6749 = vmatmul.mubr.msk.bf16.gmra.mrb[28].mxu0 %vm742_vm2, %v586_v55  ;;  %v485_v55 = vld [vmem:[%s7735_s15 + $0x650] sm:$0xff] }
  0x56   : > { %6752 = vmatprep.mubr.msk.bf16.mxu0 %vm742_vm2, %v587_v56  ;;  %v486_v56 = vld [vmem:[%s7735_s15 + $0x658] sm:$0xff] }
  0x57   : > { %v672_v59 = vpack.c.bf16 %v486_v56, %v485_v55  ;;  %v507_v55 = vld [vmem:[%s7735_s15 + $0x700] sm:$0xff]  ;;  %v508_v56 = vld [vmem:[%s7735_s15 + $0x708] sm:$0xff] }
  0x5a   : > { %6897 = vmatmul.mubr.msk.bf16.gmra.mrb[32].mxu1 %vm742_vm2, %v660_v49  ;;  %v334_v49 = vld [vmem:[%s7735_s15 + $0x198] sm:$0xff] }
  0x5b   : > { %6900 = vmatprep.mubr.msk.bf16.mxu1 %vm742_vm2, %v661_v52  ;;  %v336_v52 = vld [vmem:[%s7735_s15 + $0x1a8] sm:$0xff]  ;;  %v596_v53 = vpack.c.bf16 %v334_v49, %v333_v48  ;;  %v681_v48 = vpack.c.bf16 %v504_v44, %v503_v43  ;;  %v355_v49 = vld [vmem:[%s7735_s15 + $0x240] sm:$0xff]  ;;  %v373_v43 = vld [vmem:[%s7735_s15 + $0x2d0] sm:$0xff] }
  0x5c   : > { %v597_v54 = vpack.c.bf16 %v336_v52, %v335_v51  ;;  %v374_v44 = vld [vmem:[%s7735_s15 + $0x2d8] sm:$0xff] }
  0x5d   : > { %6753 = vmatmul.mubr.msk.bf16.gmra.mrb[32].mxu0 %vm742_vm2, %v588_v3  ;;  %v489_v3 = vld [vmem:[%s7735_s15 + $0x670] sm:$0xff] }
  0x5e   : > { %6756 = vmatprep.mubr.msk.bf16.mxu0 %vm742_vm2, %v589_v4  ;;  %v490_v4 = vld [vmem:[%s7735_s15 + $0x678] sm:$0xff] }
  0x5f   : > { %v674_v7 = vpack.c.bf16 %v490_v4, %v489_v3  ;;  %v511_v3 = vld [vmem:[%s7735_s15 + $0x720] sm:$0xff]  ;;  %v512_v4 = vld [vmem:[%s7735_s15 + $0x728] sm:$0xff] }
  0x62   : > { %6901 = vmatmul.mubr.msk.bf16.gmra.mrb[36].mxu1 %vm742_vm2, %v662_v61  ;;  %v338_v61 = vld [vmem:[%s7735_s15 + $0x1b8] sm:$0xff] }
  0x63   : > { %6904 = vmatprep.mubr.msk.bf16.mxu1 %vm742_vm2, %v663_v0  ;;  %v340_v0 = vld [vmem:[%s7735_s15 + $0x1c8] sm:$0xff]  ;;  %v598_v1 = vpack.c.bf16 %v338_v61, %v337_v60  ;;  %v683_v60 = vpack.c.bf16 %v508_v56, %v507_v55  ;;  %v359_v61 = vld [vmem:[%s7735_s15 + $0x260] sm:$0xff]  ;;  %v377_v55 = vld [vmem:[%s7735_s15 + $0x2f0] sm:$0xff] }
  0x64   : > { %v599_v2 = vpack.c.bf16 %v340_v0, %v339_v63  ;;  %v378_v56 = vld [vmem:[%s7735_s15 + $0x2f8] sm:$0xff] }
  0x65   : > { %6757 = vmatmul.mubr.msk.bf16.gmra.mrb[36].mxu0 %vm742_vm2, %v590_v15  ;;  %v493_v15 = vld [vmem:[%s7735_s15 + $0x690] sm:$0xff] }
  0x66   : > { %6760 = vmatprep.mubr.msk.bf16.mxu0 %vm742_vm2, %v591_v16  ;;  %v494_v16 = vld [vmem:[%s7735_s15 + $0x698] sm:$0xff] }
  0x67   : > { %v676_v19 = vpack.c.bf16 %v494_v16, %v493_v15  ;;  %v515_v15 = vld [vmem:[%s7735_s15 + $0x740] sm:$0xff]  ;;  %v516_v16 = vld [vmem:[%s7735_s15 + $0x748] sm:$0xff] }
  0x6a   : > { %6905 = vmatmul.mubr.msk.bf16.gmra.mrb[40].mxu1 %vm742_vm2, %v664_v9  ;;  %v342_v9 = vld [vmem:[%s7735_s15 + $0x1d8] sm:$0xff] }
  0x6b   : > { %6908 = vmatprep.mubr.msk.bf16.mxu1 %vm742_vm2, %v665_v12  ;;  %v344_v12 = vld [vmem:[%s7735_s15 + $0x1e8] sm:$0xff]  ;;  %v600_v13 = vpack.c.bf16 %v342_v9, %v341_v8  ;;  %v685_v8 = vpack.c.bf16 %v512_v4, %v511_v3  ;;  %v363_v9 = vld [vmem:[%s7735_s15 + $0x280] sm:$0xff]  ;;  %v381_v3 = vld [vmem:[%s7735_s15 + $0x310] sm:$0xff] }
  0x6c   : > { %v601_v14 = vpack.c.bf16 %v344_v12, %v343_v11  ;;  %v382_v4 = vld [vmem:[%s7735_s15 + $0x318] sm:$0xff] }
  0x6d   : > { %6761 = vmatmul.mubr.msk.bf16.gmra.mrb[40].mxu0 %vm742_vm2, %v592_v27 }
  0x6e   : > { %6764 = vmatprep.mubr.msk.bf16.mxu0 %vm742_vm2, %v593_v28  ;;  %v497_v28 = vld [vmem:[%s7735_s15 + $0x6b0] sm:$0xff] }
  0x6f   : > { %v678_v33 = vpack.c.bf16 %v498_v29, %v497_v28  ;;  %v520_v28 = vld [vmem:[%s7735_s15 + $0x768] sm:$0xff]  ;;  %v7644_v29 = vld [vmem:[%s10156_s5 + $0x10] sm:$0xff]  }
  0x70   : > { %7316 = vmatprep.subr.bf16.mxu0 %v7644_v29 }
  0x71   : > { %7317 = vmatpush3.bf16.msra.mxu0 %v7644_v29 }
  0x72   : > { %6909 = vmatmul.mubr.msk.bf16.gmra.mrb[44].mxu1 %vm742_vm2, %v666_v21  ;;  %v346_v21 = vld [vmem:[%s7735_s15 + $0x1f8] sm:$0xff] }
  0x73   : > { %6912 = vmatprep.mubr.msk.bf16.mxu1 %vm742_vm2, %v667_v24  ;;  %v348_v24 = vld [vmem:[%s7735_s15 + $0x208] sm:$0xff]  ;;  %v602_v25 = vpack.c.bf16 %v346_v21, %v345_v20  ;;  %v687_v20 = vpack.c.bf16 %v516_v16, %v515_v15  ;;  %v367_v21 = vld [vmem:[%s7735_s15 + $0x2a0] sm:$0xff]  ;;  %v385_v16 = vld [vmem:[%s7735_s15 + $0x330] sm:$0xff] }
  0x74   : > { %v603_v27 = vpack.c.bf16 %v348_v24, %v347_v23 }
  0x75   : > { %6765 = vmatmul.mubr.msk.bf16.gmra.mrb[44].mxu0 %vm742_vm2, %v594_v40 }
  0x76   : > { %6768 = vmatprep.mubr.msk.bf16.mxu0 %vm742_vm2, %v595_v41  ;;  %v501_v41 = vld [vmem:[%s7735_s15 + $0x6d0] sm:$0xff] }
  0x77   : > { %v680_v45 = vpack.c.bf16 %v502_v42, %v501_v41  ;;  %v524_v41 = vld [vmem:[%s7735_s15 + $0x788] sm:$0xff] }
  0x7a   : > { %6913 = vmatmul.mubr.msk.bf16.gmra.mrb[48].mxu1 %vm742_vm2, %v668_v34  ;;  %v349_v34 = vld [vmem:[%s7735_s15 + $0x210] sm:$0xff] }
  0x7b   : > { %6916 = vmatprep.mubr.msk.bf16.mxu1 %vm742_vm2, %v669_v37  ;;  %v351_v37 = vld [vmem:[%s7735_s15 + $0x220] sm:$0xff]  ;;  %v604_v39 = vpack.c.bf16 %v350_v35, %v349_v34  ;;  %v372_v35 = vld [vmem:[%s7735_s15 + $0x2c8] sm:$0xff] }
  0x7c   : > { %v605_v40 = vpack.c.bf16 %v352_v38, %v351_v37  ;;  %v371_v34 = vld [vmem:[%s7735_s15 + $0x2c0] sm:$0xff]  ;;  %v521_v38 = vld [vmem:[%s7735_s15 + $0x770] sm:$0xff] }
  0x7d   : > { %6769 = vmatmul.mubr.msk.bf16.gmra.mrb[48].mxu0 %vm742_vm2, %v596_v53  ;;  %v505_v53 = vld [vmem:[%s7735_s15 + $0x6f0] sm:$0xff]  ;;  %v615_v37 = vpack.c.bf16 %v372_v35, %v371_v34 }
  0x7e   : > { %6772 = vmatprep.mubr.msk.bf16.mxu0 %vm742_vm2, %v597_v54  ;;  %v506_v54 = vld [vmem:[%s7735_s15 + $0x6f8] sm:$0xff] }
  0x7f   : > { %v682_v57 = vpack.c.bf16 %v506_v54, %v505_v53  ;;  %v528_v53 = vld [vmem:[%s7735_s15 + $0x7a8] sm:$0xff] }
  0x82   : > { %6917 = vmatmul.mubr.msk.bf16.gmra.mrb[52].mxu1 %vm742_vm2, %v670_v47  ;;  %v354_v47 = vld [vmem:[%s7735_s15 + $0x238] sm:$0xff] }
  0x83   : > { %6920 = vmatprep.mubr.msk.bf16.mxu1 %vm742_vm2, %v671_v50  ;;  %v356_v50 = vld [vmem:[%s7735_s15 + $0x248] sm:$0xff]  ;;  %v606_v51 = vpack.c.bf16 %v354_v47, %v353_v46  ;;  %v375_v46 = vld [vmem:[%s7735_s15 + $0x2e0] sm:$0xff] }
  0x84   : > { %v607_v52 = vpack.c.bf16 %v356_v50, %v355_v49  ;;  %v376_v47 = vld [vmem:[%s7735_s15 + $0x2e8] sm:$0xff]  ;;  %v525_v50 = vld [vmem:[%s7735_s15 + $0x790] sm:$0xff] }
  0x85   : > { %6773 = vmatmul.mubr.msk.bf16.gmra.mrb[52].mxu0 %vm742_vm2, %v598_v1  ;;  %v509_v1 = vld [vmem:[%s7735_s15 + $0x710] sm:$0xff]  ;;  %v617_v49 = vpack.c.bf16 %v376_v47, %v375_v46 }
  0x86   : > { %6776 = vmatprep.mubr.msk.bf16.mxu0 %vm742_vm2, %v599_v2  ;;  %v510_v2 = vld [vmem:[%s7735_s15 + $0x718] sm:$0xff] }
  0x87   : > { %v684_v5 = vpack.c.bf16 %v510_v2, %v509_v1  ;;  %v532_v1 = vld [vmem:[%s7735_s15 + $0x7c8] sm:$0xff] }
  0x8a   : > { %6921 = vmatmul.mubr.msk.bf16.gmra.mrb[56].mxu1 %vm742_vm2, %v672_v59  ;;  %v358_v59 = vld [vmem:[%s7735_s15 + $0x258] sm:$0xff] }
  0x8b   : > { %6924 = vmatprep.mubr.msk.bf16.mxu1 %vm742_vm2, %v673_v62  ;;  %v360_v62 = vld [vmem:[%s7735_s15 + $0x268] sm:$0xff]  ;;  %v608_v63 = vpack.c.bf16 %v358_v59, %v357_v58  ;;  %v379_v58 = vld [vmem:[%s7735_s15 + $0x300] sm:$0xff] }
  0x8c   : > { %v609_v0 = vpack.c.bf16 %v360_v62, %v359_v61  ;;  %v380_v59 = vld [vmem:[%s7735_s15 + $0x308] sm:$0xff]  ;;  %v529_v62 = vld [vmem:[%s7735_s15 + $0x7b0] sm:$0xff] }
  0x8d   : > { %6777 = vmatmul.mubr.msk.bf16.gmra.mrb[56].mxu0 %vm742_vm2, %v600_v13  ;;  %v513_v13 = vld [vmem:[%s7735_s15 + $0x730] sm:$0xff]  ;;  %v619_v61 = vpack.c.bf16 %v380_v59, %v379_v58  ;;  %v394_v59 = vld [vmem:[%s7735_s15 + $0x378] sm:$0xff] }
  0x8e   : > { %6780 = vmatprep.mubr.msk.bf16.mxu0 %vm742_vm2, %v601_v14  ;;  %v514_v14 = vld [vmem:[%s7735_s15 + $0x738] sm:$0xff]  ;;  %v393_v58 = vld [vmem:[%s7735_s15 + $0x370] sm:$0xff] }
  0x8f   : > { %v686_v17 = vpack.c.bf16 %v514_v14, %v513_v13  ;;  %v536_v13 = vld [vmem:[%s7735_s15 + $0x7e8] sm:$0xff]  ;;  %v7645_v14 = vld [vmem:[%s10156_s5 + $0x18] sm:$0xff]  }
  0x90   : > { %7318 = vmatprep.subr.bf16.mxu0 %v7645_v14 }
  0x91   : > { %7319 = vmatpush3.bf16.msra.mxu0 %v7645_v14 }
  0x92   : > { %6925 = vmatmul.mubr.msk.bf16.gmra.mrb[60].mxu1 %vm742_vm2, %v674_v7  ;;  %v362_v7 = vld [vmem:[%s7735_s15 + $0x278] sm:$0xff] }
  0x93   : > { %6928 = vmatprep.mubr.msk.bf16.mxu1 %vm742_vm2, %v675_v10  ;;  %v364_v10 = vld [vmem:[%s7735_s15 + $0x288] sm:$0xff]  ;;  %v610_v11 = vpack.c.bf16 %v362_v7, %v361_v6  ;;  %v383_v6 = vld [vmem:[%s7735_s15 + $0x320] sm:$0xff] }
  0x94   : > { %v611_v12 = vpack.c.bf16 %v364_v10, %v363_v9  ;;  %v384_v7 = vld [vmem:[%s7735_s15 + $0x328] sm:$0xff]  ;;  %v533_v10 = vld [vmem:[%s7735_s15 + $0x7d0] sm:$0xff] }
  0x95   : > { %6781 = vmatmul.mubr.msk.bf16.gmra.mrb[60].mxu0 %vm742_vm2, %v602_v25  ;;  %v517_v25 = vld [vmem:[%s7735_s15 + $0x750] sm:$0xff]  ;;  %v621_v9 = vpack.c.bf16 %v384_v7, %v383_v6  ;;  %v626_v7 = vpack.c.bf16 %v394_v59, %v393_v58  ;;  %v550_v59 = vld [vmem:[%s7735_s15 + $0x858] sm:$0xff] }
  0x96   : > { %6784 = vmatprep.mubr.msk.bf16.mxu0 %vm742_vm2, %v603_v27  ;;  %v519_v27 = vld [vmem:[%s7735_s15 + $0x760] sm:$0xff]  ;;  %v688_v30 = vpack.c.bf16 %v518_v26, %v517_v25  ;;  %v538_v25 = vld [vmem:[%s7735_s15 + $0x7f8] sm:$0xff]  ;;  %v549_v58 = vld [vmem:[%s7735_s15 + $0x850] sm:$0xff] }
  0x97   : > { %v539_v26 = vld [vmem:[%s7735_s15 + $0x800] sm:$0xff] }
  0x9a   : > { %6929 = vmatmul.mubr.msk.bf16.gmra.mrb[64].mxu1 %vm742_vm2, %v676_v19  ;;  %v366_v19 = vld [vmem:[%s7735_s15 + $0x298] sm:$0xff] }
  0x9b   : > { %6932 = vmatprep.mubr.msk.bf16.mxu1 %vm742_vm2, %v677_v22  ;;  %v368_v22 = vld [vmem:[%s7735_s15 + $0x2a8] sm:$0xff]  ;;  %v612_v23 = vpack.c.bf16 %v366_v19, %v365_v18  ;;  %v387_v19 = vld [vmem:[%s7735_s15 + $0x340] sm:$0xff] }
  0x9c   : > { %v613_v24 = vpack.c.bf16 %v368_v22, %v367_v21 }
  0x9d   : > { %6785 = vmatmul.mubr.msk.bf16.gmra.mrb[64].mxu0 %vm742_vm2, %v604_v39  ;;  %v522_v39 = vld [vmem:[%s7735_s15 + $0x778] sm:$0xff] }
  0x9e   : > { %6788 = vmatprep.mubr.msk.bf16.mxu0 %vm742_vm2, %v605_v40  ;;  %v523_v40 = vld [vmem:[%s7735_s15 + $0x780] sm:$0xff]  ;;  %v690_v42 = vpack.c.bf16 %v522_v39, %v521_v38  ;;  %v392_v38 = vld [vmem:[%s7735_s15 + $0x368] sm:$0xff] }
  0xa2   : > { %6933 = vmatmul.mubr.msk.bf16.gmra.mrb[68].mxu1 %vm742_vm2, %v678_v33  ;;  %v689_v33 = vpack.c.bf16 %v520_v28, %v519_v27  ;;  %v540_v27 = vld [vmem:[%s7735_s15 + $0x808] sm:$0xff] }
  0xa3   : > { %6936 = vmatprep.mubr.msk.bf16.mxu1 %vm742_vm2, %v679_v36  ;;  %v614_v36 = vpack.c.bf16 %v370_v32, %v369_v31  ;;  %v389_v32 = vld [vmem:[%s7735_s15 + $0x350] sm:$0xff] }
  0xa5   : > { %6789 = vmatmul.mubr.msk.bf16.gmra.mrb[68].mxu0 %vm742_vm2, %v606_v51  ;;  %v526_v51 = vld [vmem:[%s7735_s15 + $0x798] sm:$0xff] }
  0xa6   : > { %6792 = vmatprep.mubr.msk.bf16.mxu0 %vm742_vm2, %v607_v52  ;;  %v527_v52 = vld [vmem:[%s7735_s15 + $0x7a0] sm:$0xff]  ;;  %v692_v54 = vpack.c.bf16 %v526_v51, %v525_v50 }
  0xa7   : > { %v543_v51 = vld [vmem:[%s7735_s15 + $0x820] sm:$0xff] }
  0xaa   : > { %6937 = vmatmul.mubr.msk.bf16.gmra.mrb[72].mxu1 %vm742_vm2, %v680_v45  ;;  %v691_v45 = vpack.c.bf16 %v524_v41, %v523_v40 }
  0xab   : > { %6940 = vmatprep.mubr.msk.bf16.mxu1 %vm742_vm2, %v681_v48  ;;  %v616_v48 = vpack.c.bf16 %v374_v44, %v373_v43 }
  0xad   : > { %6793 = vmatmul.mubr.msk.bf16.gmra.mrb[72].mxu0 %vm742_vm2, %v608_v63  ;;  %v530_v63 = vld [vmem:[%s7735_s15 + $0x7b8] sm:$0xff] }
  0xae   : > { %6796 = vmatprep.mubr.msk.bf16.mxu0 %vm742_vm2, %v609_v0  ;;  %v531_v0 = vld [vmem:[%s7735_s15 + $0x7c0] sm:$0xff]  ;;  %v694_v2 = vpack.c.bf16 %v530_v63, %v529_v62 }
  0xaf   : > { %v395_v63 = vld [vmem:[%s7735_s15 + $0x380] sm:$0xff] }
  0xb2   : > { %6941 = vmatmul.mubr.msk.bf16.gmra.mrb[76].mxu1 %vm742_vm2, %v682_v57  ;;  %v693_v57 = vpack.c.bf16 %v528_v53, %v527_v52  ;;  %v544_v52 = vld [vmem:[%s7735_s15 + $0x828] sm:$0xff] }
  0xb3   : > { %6944 = vmatprep.mubr.msk.bf16.mxu1 %vm742_vm2, %v683_v60  ;;  %v618_v60 = vpack.c.bf16 %v378_v56, %v377_v55  ;;  %v701_v62 = vpack.c.bf16 %v544_v52, %v543_v51 }
  0xb5   : > { %6797 = vmatmul.mubr.msk.bf16.gmra.mrb[76].mxu0 %vm742_vm2, %v610_v11  ;;  %v534_v11 = vld [vmem:[%s7735_s15 + $0x7d8] sm:$0xff] }
  0xb6   : > { %6800 = vmatprep.mubr.msk.bf16.mxu0 %vm742_vm2, %v611_v12  ;;  %v535_v12 = vld [vmem:[%s7735_s15 + $0x7e0] sm:$0xff]  ;;  %v696_v15 = vpack.c.bf16 %v534_v11, %v533_v10 }
  0xb7   : > { %v697_v18 = vpack.c.bf16 %v536_v13, %v535_v12 }
  0xba   : > { %6945 = vmatmul.mubr.msk.bf16.gmra.mrb[80].mxu1 %vm742_vm2, %v684_v5  ;;  %v695_v5 = vpack.c.bf16 %v532_v1, %v531_v0  ;;  %v396_v0 = vld [vmem:[%s7735_s15 + $0x388] sm:$0xff] }
  0xbb   : > { %6948 = vmatprep.mubr.msk.bf16.mxu1 %vm742_vm2, %v685_v8  ;;  %v620_v8 = vpack.c.bf16 %v382_v4, %v381_v3  ;;  %v627_v12 = vpack.c.bf16 %v396_v0, %v395_v63  ;;  %v551_v0 = vld [vmem:[%s7735_s15 + $0x860] sm:$0xff] }
  0xbd   : > { %6801 = vmatmul.mubr.msk.bf16.gmra.mrb[80].mxu0 %vm742_vm2, %v612_v23  ;;  %v8094_v23 = vld [vmem:[%s10153_s2] ss:$0 sm:$0xff] }
  0xbe   : > { %6804 = vmatprep.mubr.msk.bf16.mxu0 %vm742_vm2, %v613_v24  ;;  %v537_v24 = vld [vmem:[%s7735_s15 + $0x7f0] sm:$0xff] }
  0xbf   : > { %v698_v31 = vpack.c.bf16 %v538_v25, %v537_v24 }
  0xc2   : > { %6949 = vmatmul.mubr.msk.bf16.gmra.mrb[84].mxu1 %vm742_vm2, %v686_v17  ;;  %v386_v17 = vld [vmem:[%s7735_s15 + $0x338] sm:$0xff] }
  0xc3   : > { %6952 = vmatprep.mubr.msk.bf16.mxu1 %vm742_vm2, %v687_v20  ;;  %v388_v20 = vld [vmem:[%s7735_s15 + $0x348] sm:$0xff]  ;;  %v622_v21 = vpack.c.bf16 %v386_v17, %v385_v16  ;;  %v546_v16 = vld [vmem:[%s7735_s15 + $0x838] sm:$0xff] }
  0xc4   : > { %v623_v22 = vpack.c.bf16 %v388_v20, %v387_v19 }
  0xc5   : > { %6805 = vmatmul.mubr.msk.bf16.gmra.mrb[84].mxu0 %vm742_vm2, %v614_v36  ;;  %v699_v36 = vpack.c.bf16 %v540_v27, %v539_v26 }
  0xc6   : > { %6808 = vmatprep.mubr.msk.bf16.mxu0 %vm742_vm2, %v615_v37  ;;  %v391_v37 = vld [vmem:[%s7735_s15 + $0x360] sm:$0xff] }
  0xca   : > { %6953 = vmatmul.mubr.msk.bf16.gmra.mrb[88].mxu1 %vm742_vm2, %v688_v30 }
  0xcb   : > { %6956 = vmatprep.mubr.msk.bf16.mxu1 %vm742_vm2, %v689_v33  ;;  %v390_v33 = vld [vmem:[%s7735_s15 + $0x358] sm:$0xff] }
  0xcd   : > { %6809 = vmatmul.mubr.msk.bf16.gmra.mrb[88].mxu0 %vm742_vm2, %v616_v48  ;;  %v541_v48 = vld [vmem:[%s7735_s15 + $0x810] sm:$0xff] }
  0xce   : > { %6812 = vmatprep.mubr.msk.bf16.mxu0 %vm742_vm2, %v617_v49  ;;  %v542_v49 = vld [vmem:[%s7735_s15 + $0x818] sm:$0xff] }
  0xd2   : > { %6957 = vmatmul.mubr.msk.bf16.gmra.mrb[92].mxu1 %vm742_vm2, %v690_v42  ;;  %v624_v42 = vpack.c.bf16 %v390_v33, %v389_v32  ;;  %v397_v33 = vld [vmem:[%s7735_s15 + $0x390] sm:$0xff] }
  0xd3   : > { %6960 = vmatprep.mubr.msk.bf16.mxu1 %vm742_vm2, %v691_v45  ;;  %v625_v45 = vpack.c.bf16 %v392_v38, %v391_v37 }
  0xd5   : > { %6813 = vmatmul.mubr.msk.bf16.gmra.mrb[92].mxu0 %vm742_vm2, %v618_v60 }
  0xd6   : > { %6816 = vmatprep.mubr.msk.bf16.mxu0 %vm742_vm2, %v619_v61 }
  0xda   : > { %6961 = vmatmul.mubr.msk.bf16.gmra.mrb[96].mxu1 %vm742_vm2, %v692_v54 }
  0xdb   : > { %6964 = vmatprep.mubr.msk.bf16.mxu1 %vm742_vm2, %v693_v57  ;;  %v700_v57 = vpack.c.bf16 %v542_v49, %v541_v48 }
  0xdd   : > { %6817 = vmatmul.mubr.msk.bf16.gmra.mrb[96].mxu0 %vm742_vm2, %v620_v8 }
  0xde   : > { %6820 = vmatprep.mubr.msk.bf16.mxu0 %vm742_vm2, %v621_v9 }
  0xe2   : > { %6965 = vmatmul.mubr.msk.bf16.gmra.mrb[100].mxu1 %vm742_vm2, %v694_v2 }
  0xe3   : > { %6968 = vmatprep.mubr.msk.bf16.mxu1 %vm742_vm2, %v695_v5 }
  0xe5   : > { %6821 = vmatmul.mubr.msk.bf16.gmra.mrb[100].mxu0 %vm742_vm2, %v622_v21  ;;  %v547_v21 = vld [vmem:[%s7735_s15 + $0x840] sm:$0xff] }
  0xe6   : > { %6824 = vmatprep.mubr.msk.bf16.mxu0 %vm742_vm2, %v623_v22  ;;  %v548_v22 = vld [vmem:[%s7735_s15 + $0x848] sm:$0xff] }
  0xe7   : > { %v703_v37 = vpack.c.bf16 %v548_v22, %v547_v21 }
  0xea   : > { %6969 = vmatmul.mubr.msk.bf16.gmra.mrb[104].mxu1 %vm742_vm2, %v696_v15  ;;  %v545_v15 = vld [vmem:[%s7735_s15 + $0x830] sm:$0xff] }
  0xeb   : > { %6972 = vmatprep.mubr.msk.bf16.mxu1 %vm742_vm2, %v697_v18 }
  0xed   : > { %v6866_v28 = vpop.f32.mrb[0].mxu1  ;;  %6825 = vmatmul.mubr.msk.bf16.gmra.mrb[104].mxu0 %vm742_vm2, %v624_v42 }
  0xee   : > { %v1801_v29 = vadd.f32 %v6866_v28, %v8094_v23  ;;  %v1792_v30 = vpop.f32.mrb[1].mxu1  ;;  %6828 = vmatprep.mubr.msk.bf16.mxu0 %vm742_vm2, %v625_v45 }
  0xef   : > { %v1793_v34 = vadd.f32 %v8094_v23, %v1792_v30  ;;  %v6867_v35 = vpop.f32.mrb[2].mxu1 }
  0xf0   : > { %v1804_v39 = vadd.f32 %v6867_v35, %v8094_v23  ;;  %v1795_v40 = vpop.f32.mrb[3].mxu1  ;;  %v2513_v43 = vmax.f32 %v1801_v29, 0.0  ;;  %v6722_v3 = vpop.f32.mrb[0].mxu0 }
  0xf1   : > { %v1796_v41 = vadd.f32 %v8094_v23, %v1795_v40  ;;  %v2511_v46 = vmax.f32 %v1793_v34, 0.0  ;;  %v1225_v5 = vadd.f32 %v6722_v3, %v8094_v23  ;;  %v1216_v6 = vpop.f32.mrb[1].mxu0  ;;  %v398_v34 = vld [vmem:[%s7735_s15 + $0x398] sm:$0xff]  ;;  %v400_v40 = vld [vmem:[%s7735_s15 + $0x3a8] sm:$0xff] }
  0xf2   : > { %v2514_v44 = vmax.f32 %v1804_v39, 0.0  ;;  %6973 = vmatmul.mubr.msk.bf16.gmra.mrb[108].mxu1 %vm742_vm2, %v698_v31  ;;  %v1217_v10 = vadd.f32 %v8094_v23, %v1216_v6  ;;  %v6723_v11 = vpop.f32.mrb[2].mxu0  ;;  %v702_v31 = vpack.c.bf16 %v546_v16, %v545_v15  ;;  %v399_v39 = vld [vmem:[%s7735_s15 + $0x3a0] sm:$0xff]  ;;  %v628_v48 = vpack.c.bf16 %v398_v34, %v397_v33 }
  0xf3   : > { %v2512_v47 = vmax.f32 %v1796_v41, 0.0  ;;  %6976 = vmatprep.mubr.msk.bf16.mxu1 %vm742_vm2, %v699_v36  ;;  %v2369_v17 = vmax.f32 %v1225_v5, 0.0  ;;  %v1228_v18 = vadd.f32 %v6723_v11, %v8094_v23  ;;  %v1219_v19 = vpop.f32.mrb[3].mxu0  ;;  %v401_v11 = vld [vmem:[%s7735_s15 + $0x3b0] sm:$0xff] }
  0xf4   : > { %v8115_v50 = vpack.c.bf16 %v2514_v44, %v2513_v43  ;;  %v2367_v24 = vmax.f32 %v1217_v10, 0.0  ;;  %v1220_v25 = vadd.f32 %v8094_v23, %v1219_v19 }
  0xf5   : > { %v6870_v53 = vpop.f32.mrb[4].mxu1  ;;  %v8120_v54 = vpack.c.bf16 %v2512_v47, %v2511_v46  ;;  %v2370_v27 = vmax.f32 %v1228_v18, 0.0  ;;  %6829 = vmatmul.mubr.msk.bf16.gmra.mrb[108].mxu0 %vm742_vm2, %v626_v7  ;;  %v404_v18 = vld [vmem:[%s7735_s15 + $0x3c8] sm:$0xff] }
  0xf6   : > { %v1817_v55 = vadd.f32 %v6870_v53, %v8094_v23  ;;  %v1808_v56 = vpop.f32.mrb[5].mxu1  ;;  %v2368_v32 = vmax.f32 %v1220_v25, 0.0  ;;  %6832 = vmatprep.mubr.msk.bf16.mxu0 %vm742_vm2, %v627_v12  ;;  %v402_v12 = vld [vmem:[%s7735_s15 + $0x3b8] sm:$0xff] }
  0xf7   : > { %v1809_v60 = vadd.f32 %v8094_v23, %v1808_v56  ;;  %v6871_v61 = vpop.f32.mrb[6].mxu1  ;;  %v8151_v38 = vpack.c.bf16 %v2370_v27, %v2369_v17  ;;  %v403_v17 = vld [vmem:[%s7735_s15 + $0x3c0] sm:$0xff] }
  0xf8   : > { %v1820_v1 = vadd.f32 %v6871_v61, %v8094_v23  ;;  %v1811_v2 = vpop.f32.mrb[7].mxu1  ;;  %v2517_v8 = vmax.f32 %v1817_v55, 0.0  ;;  %v6726_v43 = vpop.f32.mrb[4].mxu0  ;;  %v8156_v44 = vpack.c.bf16 %v2368_v32, %v2367_v24  ;;  %v629_v55 = vpack.c.bf16 %v400_v40, %v399_v39  ;;  %v554_v39 = vld [vmem:[%s7735_s15 + $0x878] sm:$0xff] }
  0xf9   : > { %v1812_v4 = vadd.f32 %v8094_v23, %v1811_v2  ;;  %v2515_v13 = vmax.f32 %v1809_v60, 0.0  ;;  %v1241_v46 = vadd.f32 %v6726_v43, %v8094_v23  ;;  %v1232_v47 = vpop.f32.mrb[5].mxu0  ;;  %v631_v34 = vpack.c.bf16 %v404_v18, %v403_v17 }
  0xfa   : > { %v2518_v9 = vmax.f32 %v1820_v1, 0.0  ;;  %6977 = vmatmul.mubr.msk.bf16.gmra.mrb[112].mxu1 %vm742_vm2, %v700_v57  ;;  %v1233_v52 = vadd.f32 %v8094_v23, %v1232_v47  ;;  %v6727_v53 = vpop.f32.mrb[6].mxu0  ;;  %v552_v1 = vld [vmem:[%s7735_s15 + $0x868] sm:$0xff] }
  0xfb   : > { %v2516_v14 = vmax.f32 %v1812_v4, 0.0  ;;  %6980 = vmatprep.mubr.msk.bf16.mxu1 %vm742_vm2, %v701_v62  ;;  %v2373_v60 = vmax.f32 %v1241_v46, 0.0  ;;  %v1244_v61 = vadd.f32 %v6727_v53, %v8094_v23  ;;  %v1235_v62 = vpop.f32.mrb[7].mxu0  ;;  %v705_v15 = vpack.c.bf16 %v552_v1, %v551_v0  ;;  %v556_v46 = vld [vmem:[%s7735_s15 + $0x888] sm:$0xff] }
  0xfc   : > { %v8138_v20 = vpack.c.bf16 %v2518_v9, %v2517_v8  ;;  %v2371_v2 = vmax.f32 %v1233_v52, 0.0  ;;  %v1236_v3 = vadd.f32 %v8094_v23, %v1235_v62  ;;  %v704_v9 = vpack.c.bf16 %v550_v59, %v549_v58  ;;  %v405_v59 = vld [vmem:[%s7735_s15 + $0x3d0] sm:$0xff] }
  0xfd   : > { %v6874_v26 = vpop.f32.mrb[8].mxu1  ;;  %v8144_v28 = vpack.c.bf16 %v2516_v14, %v2515_v13  ;;  %v2374_v5 = vmax.f32 %v1244_v61, 0.0  ;;  %6833 = vmatmul.mubr.msk.bf16.gmra.mrb[112].mxu0 %vm742_vm2, %v628_v48 }
  0xfe   : > { %v1833_v29 = vadd.f32 %v6874_v26, %v8094_v23  ;;  %v1824_v30 = vpop.f32.mrb[9].mxu1  ;;  %v2372_v10 = vmax.f32 %v1236_v3, 0.0  ;;  %6836 = vmatprep.mubr.msk.bf16.mxu0 %vm742_vm2, %v629_v55  ;;  %v408_v3 = vld [vmem:[%s7735_s15 + $0x3e8] sm:$0xff] }
  0xff   : > { %v1825_v35 = vadd.f32 %v8094_v23, %v1824_v30  ;;  %v6875_v36 = vpop.f32.mrb[10].mxu1  ;;  %v8179_v16 = vpack.c.bf16 %v2374_v5, %v2373_v60  ;;  %v406_v60 = vld [vmem:[%s7735_s15 + $0x3d8] sm:$0xff] }
 0x100   : > { %v1836_v41 = vadd.f32 %v6875_v36, %v8094_v23  ;;  %v1827_v42 = vpop.f32.mrb[11].mxu1  ;;  %v2521_v49 = vmax.f32 %v1833_v29, 0.0  ;;  %v6730_v22 = vpop.f32.mrb[8].mxu0  ;;  %v8184_v24 = vpack.c.bf16 %v2372_v10, %v2371_v2  ;;  %v630_v29 = vpack.c.bf16 %v402_v12, %v401_v11  ;;  %v407_v2 = vld [vmem:[%s7735_s15 + $0x3e0] sm:$0xff] }
 0x101   : > { %v1828_v45 = vadd.f32 %v8094_v23, %v1827_v42  ;;  %v2519_v56 = vmax.f32 %v1825_v35, 0.0  ;;  %v1257_v26 = vadd.f32 %v6730_v22, %v8094_v23  ;;  %v1248_v27 = vpop.f32.mrb[9].mxu0  ;;  %v632_v12 = vpack.c.bf16 %v406_v60, %v405_v59  ;;  %v557_v22 = vld [vmem:[%s7735_s15 + $0x890] sm:$0xff] }
 0x102   : > { %v2522_v51 = vmax.f32 %v1836_v41, 0.0  ;;  %6981 = vmatmul.mubr.msk.bf16.gmra.mrb[116].mxu1 %vm742_vm2, %v702_v31  ;;  %v1249_v32 = vadd.f32 %v8094_v23, %v1248_v27  ;;  %v6731_v33 = vpop.f32.mrb[10].mxu0  ;;  %v633_v18 = vpack.c.bf16 %v408_v3, %v407_v2 }
 0x103   : > { %v2520_v57 = vmax.f32 %v1828_v45, 0.0  ;;  %6984 = vmatprep.mubr.msk.bf16.mxu1 %vm742_vm2, %v703_v37  ;;  %v553_v37 = vld [vmem:[%s7735_s15 + $0x870] sm:$0xff]  ;;  %v2377_v40 = vmax.f32 %v1257_v26, 0.0  ;;  %v1260_v41 = vadd.f32 %v6731_v33, %v8094_v23  ;;  %v1251_v42 = vpop.f32.mrb[11].mxu0  ;;  %v555_v45 = vld [vmem:[%s7735_s15 + $0x880] sm:$0xff] }
 0x104   : > { %v8166_v63 = vpack.c.bf16 %v2522_v51, %v2521_v49  ;;  %v2375_v47 = vmax.f32 %v1249_v32, 0.0  ;;  %v1252_v48 = vadd.f32 %v8094_v23, %v1251_v42  ;;  %v7646_v49 = vld [vmem:[%s10156_s5 + $0x20] sm:$0xff]   ;;  %v707_v0 = vpack.c.bf16 %v556_v46, %v555_v45  ;;  %v560_v32 = vld [vmem:[%s7735_s15 + $0x8a8] sm:$0xff]  ;;  %v409_v45 = vld [vmem:[%s7735_s15 + $0x3f0] sm:$0xff] }
 0x105   : > { %v6878_v4 = vpop.f32.mrb[12].mxu1  ;;  %v8172_v6 = vpack.c.bf16 %v2520_v57, %v2519_v56  ;;  %v2378_v52 = vmax.f32 %v1260_v41, 0.0  ;;  %6837 = vmatmul.mubr.msk.bf16.gmra.mrb[116].mxu0 %vm742_vm2, %v630_v29  ;;  %v706_v57 = vpack.c.bf16 %v554_v39, %v553_v37  ;;  %7320 = vmatprep.subr.bf16.mxu0 %v7646_v49  ;;  %v410_v46 = vld [vmem:[%s7735_s15 + $0x3f8] sm:$0xff] }
 0x106   : > { %v1849_v7 = vadd.f32 %v6878_v4, %v8094_v23  ;;  %v1840_v8 = vpop.f32.mrb[13].mxu1  ;;  %v2376_v58 = vmax.f32 %v1252_v48, 0.0  ;;  %6840 = vmatprep.mubr.msk.bf16.mxu0 %vm742_vm2, %v631_v34  ;;  %7321 = vmatpush3.bf16.msra.mxu0 %v7646_v49 }
 0x107   : > { %v1841_v13 = vadd.f32 %v8094_v23, %v1840_v8  ;;  %v6879_v14 = vpop.f32.mrb[14].mxu1  ;;  %v8210_v1 = vpack.c.bf16 %v2378_v52, %v2377_v40  ;;  %v411_v52 = vld [vmem:[%s7735_s15 + $0x400] sm:$0xff] }
 0x108   : > { %v1852_v19 = vadd.f32 %v6879_v14, %v8094_v23  ;;  %v1843_v21 = vpop.f32.mrb[15].mxu1  ;;  %v2525_v30 = vmax.f32 %v1849_v7, 0.0  ;;  %v6734_v7 = vpop.f32.mrb[12].mxu0  ;;  %v8215_v8 = vpack.c.bf16 %v2376_v58, %v2375_v47 }
 0x109   : > { %v1844_v25 = vadd.f32 %v8094_v23, %v1843_v21  ;;  %v2523_v35 = vmax.f32 %v1841_v13, 0.0  ;;  %v1273_v10 = vadd.f32 %v6734_v7, %v8094_v23  ;;  %v1264_v11 = vpop.f32.mrb[13].mxu0 }
 0x10a   : > { %v2526_v31 = vmax.f32 %v1852_v19, 0.0  ;;  %6985 = vmatmul.mubr.msk.bf16.gmra.mrb[120].mxu1 %vm742_vm2, %v704_v9  ;;  %v6735_v17 = vpop.f32.mrb[14].mxu0 }
 0x10b   : > { %v2524_v36 = vmax.f32 %v1844_v25, 0.0  ;;  %6988 = vmatprep.mubr.msk.bf16.mxu1 %vm742_vm2, %v705_v15  ;;  %v1265_v15 = vadd.f32 %v8094_v23, %v1264_v11  ;;  %v558_v25 = vld [vmem:[%s7735_s15 + $0x898] sm:$0xff]  ;;  %v2381_v26 = vmax.f32 %v1273_v10, 0.0  ;;  %v1276_v27 = vadd.f32 %v6735_v17, %v8094_v23  ;;  %v1267_v29 = vpop.f32.mrb[15].mxu0  ;;  %v561_v11 = vld [vmem:[%s7735_s15 + $0x8b0] sm:$0xff] }
 0x10c   : > { %v8194_v43 = vpack.c.bf16 %v2526_v31, %v2525_v30  ;;  %v559_v31 = vld [vmem:[%s7735_s15 + $0x8a0] sm:$0xff]  ;;  %v1268_v34 = vadd.f32 %v8094_v23, %v1267_v29  ;;  %v708_v41 = vpack.c.bf16 %v558_v25, %v557_v22 }
 0x10d   : > { %v6882_v51 = vpop.f32.mrb[16].mxu1  ;;  %v8203_v53 = vpack.c.bf16 %v2524_v36, %v2523_v35  ;;  %v2379_v33 = vmax.f32 %v1265_v15, 0.0  ;;  %v2382_v36 = vmax.f32 %v1276_v27, 0.0  ;;  %6841 = vmatmul.mubr.msk.bf16.gmra.mrb[120].mxu0 %vm742_vm2, %v632_v12  ;;  %v709_v49 = vpack.c.bf16 %v560_v32, %v559_v31  ;;  %v562_v12 = vld [vmem:[%s7735_s15 + $0x8b8] sm:$0xff] }
 0x10e   : > { %v1865_v55 = vadd.f32 %v6882_v51, %v8094_v23  ;;  %v1856_v56 = vpop.f32.mrb[17].mxu1  ;;  %v2380_v42 = vmax.f32 %v1268_v34, 0.0  ;;  %6844 = vmatprep.mubr.msk.bf16.mxu0 %vm742_vm2, %v633_v18  ;;  %v563_v18 = vld [vmem:[%s7735_s15 + $0x8c0] sm:$0xff]  ;;  %v710_v32 = vpack.c.bf16 %v562_v12, %v561_v11  ;;  %v413_v34 = vld [vmem:[%s7735_s15 + $0x410] sm:$0xff] }
 0x10f   : > { %v1857_v61 = vadd.f32 %v8094_v23, %v1856_v56  ;;  %v6883_v62 = vpop.f32.mrb[18].mxu1  ;;  %v8238_v51 = vpack.c.bf16 %v2382_v36, %v2381_v26  ;;  %v567_v12 = vld [vmem:[%s7735_s15 + $0x8e0] sm:$0xff] }
 0x110   : > { %v1868_v4 = vadd.f32 %v6883_v62, %v8094_v23  ;;  %v1859_v5 = vpop.f32.mrb[19].mxu1  ;;  %v2529_v13 = vmax.f32 %v1865_v55, 0.0  ;;  %v412_v55 = vld [vmem:[%s7735_s15 + $0x408] sm:$0xff]  ;;  %v6738_v58 = vpop.f32.mrb[16].mxu0  ;;  %v8243_v59 = vpack.c.bf16 %v2380_v42, %v2379_v33  ;;  %v415_v42 = vld [vmem:[%s7735_s15 + $0x420] sm:$0xff] }
 0x111   : > { %v1860_v9 = vadd.f32 %v8094_v23, %v1859_v5  ;;  %v2527_v19 = vmax.f32 %v1857_v61, 0.0  ;;  %v1289_v61 = vadd.f32 %v6738_v58, %v8094_v23  ;;  %v1280_v62 = vpop.f32.mrb[17].mxu0  ;;  %v635_v7 = vpack.c.bf16 %v412_v55, %v411_v52 }
 0x112   : > { %v2530_v14 = vmax.f32 %v1868_v4, 0.0  ;;  %6989 = vmatmul.mubr.msk.bf16.gmra.mrb[124].mxu1 %vm742_vm2, %v706_v57  ;;  %v1281_v4 = vadd.f32 %v8094_v23, %v1280_v62  ;;  %v6739_v5 = vpop.f32.mrb[18].mxu0 }
 0x113   : > { %v2528_v21 = vmax.f32 %v1860_v9, 0.0  ;;  %6992 = vmatprep.mubr.msk.bf16.mxu1 %vm742_vm2, %v707_v0  ;;  %v634_v0 = vpack.c.bf16 %v410_v46, %v409_v45  ;;  %v1283_v15 = vpop.f32.mrb[19].mxu0  ;;  %v416_v45 = vld [vmem:[%s7735_s15 + $0x428] sm:$0xff] }
 0x114   : > { %v8225_v30 = vpack.c.bf16 %v2530_v14, %v2529_v13  ;;  %v2385_v13 = vmax.f32 %v1289_v61, 0.0  ;;  %v1292_v14 = vadd.f32 %v6739_v5, %v8094_v23  ;;  %v1284_v22 = vadd.f32 %v8094_v23, %v1283_v15  ;;  %v566_v5 = vld [vmem:[%s7735_s15 + $0x8d8] sm:$0xff] }
 0x115   : > { %v6886_v35 = vpop.f32.mrb[20].mxu1  ;;  %v8231_v37 = vpack.c.bf16 %v2528_v21, %v2527_v19  ;;  %v564_v19 = vld [vmem:[%s7735_s15 + $0x8c8] sm:$0xff]  ;;  %v2383_v21 = vmax.f32 %v1281_v4, 0.0  ;;  %6845 = vmatmul.mubr.msk.bf16.gmra.mrb[124].mxu0 %vm742_vm2, %v634_v0  ;;  %v637_v0 = vpack.c.bf16 %v416_v45, %v415_v42  ;;  %v565_v4 = vld [vmem:[%s7735_s15 + $0x8d0] sm:$0xff] }
 0x116   : > { %v1881_v39 = vadd.f32 %v6886_v35, %v8094_v23  ;;  %v1872_v40 = vpop.f32.mrb[21].mxu1  ;;  %v2386_v26 = vmax.f32 %v1292_v14, 0.0  ;;  %v2384_v33 = vmax.f32 %v1284_v22, 0.0  ;;  %6848 = vmatprep.mubr.msk.bf16.mxu0 %vm742_vm2, %v635_v7  ;;  %v414_v35 = vld [vmem:[%s7735_s15 + $0x418] sm:$0xff] }
 0x117   : > { %v1873_v47 = vadd.f32 %v8094_v23, %v1872_v40  ;;  %v6887_v48 = vpop.f32.mrb[22].mxu1  ;;  %v711_v40 = vpack.c.bf16 %v564_v19, %v563_v18 }
 0x118   : > { %v1884_v56 = vadd.f32 %v6887_v48, %v8094_v23  ;;  %v1875_v57 = vpop.f32.mrb[23].mxu1  ;;  %v2533_v2 = vmax.f32 %v1881_v39, 0.0  ;;  %v6742_v48 = vpop.f32.mrb[20].mxu0 }
 0x119   : > { %v1876_v60 = vadd.f32 %v8094_v23, %v1875_v57  ;;  %v2531_v9 = vmax.f32 %v1873_v47, 0.0  ;;  %v1305_v55 = vadd.f32 %v6742_v48, %v8094_v23  ;;  %v636_v57 = vpack.c.bf16 %v414_v35, %v413_v34 }
 0x11a   : > { %v2534_v3 = vmax.f32 %v1884_v56, 0.0  ;;  %6993 = vmatmul.mubr.msk.bf16.gmra.mrb[128].mxu1 %vm742_vm2, %v708_v41  ;;  %v8266_v41 = vpack.c.bf16 %v2386_v26, %v2385_v13  ;;  %v1296_v56 = vpop.f32.mrb[21].mxu0  ;;  %v568_v13 = vld [vmem:[%s7735_s15 + $0x8e8] sm:$0xff]  ;;  %v712_v26 = vpack.c.bf16 %v566_v5, %v565_v4  ;;  %v570_v4 = vld [vmem:[%s7735_s15 + $0x8f8] sm:$0xff] }
 0x11b   : > { %v2532_v10 = vmax.f32 %v1876_v60, 0.0  ;;  %6996 = vmatprep.mubr.msk.bf16.mxu1 %vm742_vm2, %v709_v49  ;;  %v8271_v49 = vpack.c.bf16 %v2384_v33, %v2383_v21  ;;  %v1297_v61 = vadd.f32 %v8094_v23, %v1296_v56  ;;  %v6743_v62 = vpop.f32.mrb[22].mxu0  ;;  %v2389_v7 = vmax.f32 %v1305_v55, 0.0 }
 0x11c   : > { %v8253_v17 = vpack.c.bf16 %v2534_v3, %v2533_v2  ;;  %v713_v35 = vpack.c.bf16 %v568_v13, %v567_v12 }
 0x11d   : > { %v6890_v25 = vpop.f32.mrb[24].mxu1  ;;  %v8259_v27 = vpack.c.bf16 %v2532_v10, %v2531_v9  ;;  %v1308_v9 = vadd.f32 %v6743_v62, %v8094_v23  ;;  %v1299_v10 = vpop.f32.mrb[23].mxu0  ;;  %v2387_v14 = vmax.f32 %v1297_v61, 0.0  ;;  %6849 = vmatmul.mubr.msk.bf16.gmra.mrb[128].mxu0 %vm742_vm2, %v636_v57 }
 0x11e   : > { %v1897_v29 = vadd.f32 %v6890_v25, %v8094_v23  ;;  %v1888_v31 = vpop.f32.mrb[25].mxu1  ;;  %v1300_v15 = vadd.f32 %v8094_v23, %v1299_v10  ;;  %6852 = vmatprep.mubr.msk.bf16.mxu0 %vm742_vm2, %v637_v0 }
 0x11f   : > { %v1889_v36 = vadd.f32 %v8094_v23, %v1888_v31  ;;  %v6891_v39 = vpop.f32.mrb[26].mxu1  ;;  %v2390_v19 = vmax.f32 %v1308_v9, 0.0  ;;  %v417_v31 = vld [vmem:[%s7735_s15 + $0x430] sm:$0xff] }
 0x120   : > { %v1900_v46 = vadd.f32 %v6891_v39, %v8094_v23  ;;  %v1891_v47 = vpop.f32.mrb[27].mxu1  ;;  %v2537_v58 = vmax.f32 %v1897_v29, 0.0  ;;  %v2388_v29 = vmax.f32 %v1300_v15, 0.0  ;;  %v419_v39 = vld [vmem:[%s7735_s15 + $0x440] sm:$0xff] }
 0x121   : > { %v1892_v52 = vadd.f32 %v8094_v23, %v1891_v47  ;;  %v2535_v2 = vmax.f32 %v1889_v36, 0.0  ;;  %v8294_v36 = vpack.c.bf16 %v2390_v19, %v2389_v7 }
 0x122   : > { %v2538_v60 = vmax.f32 %v1900_v46, 0.0  ;;  %6997 = vmatmul.mubr.msk.bf16.gmra.mrb[132].mxu1 %vm742_vm2, %v710_v32  ;;  %v418_v32 = vld [vmem:[%s7735_s15 + $0x438] sm:$0xff]  ;;  %v6746_v46 = vpop.f32.mrb[24].mxu0  ;;  %v8299_v47 = vpack.c.bf16 %v2388_v29, %v2387_v14  ;;  %v7647_v14 = vld [vmem:[%s10156_s5 + $0x28] sm:$0xff]  }
 0x123   : > { %v2536_v3 = vmax.f32 %v1892_v52, 0.0  ;;  %7000 = vmatprep.mubr.msk.bf16.mxu1 %vm742_vm2, %v711_v40  ;;  %v420_v40 = vld [vmem:[%s7735_s15 + $0x448] sm:$0xff]  ;;  %v1321_v52 = vadd.f32 %v6746_v46, %v8094_v23  ;;  %v1312_v55 = vpop.f32.mrb[25].mxu0  ;;  %v638_v56 = vpack.c.bf16 %v418_v32, %v417_v31  ;;  %v421_v31 = vld [vmem:[%s7735_s15 + $0x450] sm:$0xff]  ;;  %v422_v32 = vld [vmem:[%s7735_s15 + $0x458] sm:$0xff]  ;;  %7322 = vmatprep.subr.bf16.mxu0 %v7647_v14 }
 0x124   : > { %v8281_v11 = vpack.c.bf16 %v2538_v60, %v2537_v58  ;;  %v1313_v60 = vadd.f32 %v8094_v23, %v1312_v55  ;;  %v6747_v61 = vpop.f32.mrb[26].mxu0  ;;  %v639_v62 = vpack.c.bf16 %v420_v40, %v419_v39  ;;  %v423_v39 = vld [vmem:[%s7735_s15 + $0x460] sm:$0xff]  ;;  %v424_v40 = vld [vmem:[%s7735_s15 + $0x468] sm:$0xff]  ;;  %7323 = vmatpush3.bf16.msra.mxu0 %v7647_v14 }
 0x125   : > { %v6894_v18 = vpop.f32.mrb[28].mxu1  ;;  %v8287_v21 = vpack.c.bf16 %v2536_v3, %v2535_v2  ;;  %v569_v3 = vld [vmem:[%s7735_s15 + $0x8f0] sm:$0xff]  ;;  %v2393_v5 = vmax.f32 %v1321_v52, 0.0  ;;  %v1324_v7 = vadd.f32 %v6747_v61, %v8094_v23  ;;  %v1315_v9 = vpop.f32.mrb[27].mxu0  ;;  %6853 = vmatmul.mubr.msk.bf16.gmra.mrb[132].mxu0 %vm742_vm2, %v638_v56 }
 0x126   : > { %v1913_v22 = vadd.f32 %v6894_v18, %v8094_v23  ;;  %v1904_v25 = vpop.f32.mrb[29].mxu1  ;;  %v2391_v12 = vmax.f32 %v1313_v60, 0.0  ;;  %v1316_v13 = vadd.f32 %v8094_v23, %v1315_v9  ;;  %6856 = vmatprep.mubr.msk.bf16.mxu0 %vm742_vm2, %v639_v62 }
 0x127   : > { %v1905_v33 = vadd.f32 %v8094_v23, %v1904_v25  ;;  %v6895_v34 = vpop.f32.mrb[30].mxu1  ;;  %v2394_v18 = vmax.f32 %v1324_v7, 0.0 }
 0x128   : > { %v1916_v42 = vadd.f32 %v6895_v34, %v8094_v23  ;;  %v1907_v45 = vpop.f32.mrb[31].mxu1  ;;  %v2541_v57 = vmax.f32 %v1913_v22, 0.0  ;;  %v2392_v29 = vmax.f32 %v1316_v13, 0.0  ;;  %v6750_v46 = vpop.f32.mrb[28].mxu0 }
 0x129   : > { %v1908_v48 = vadd.f32 %v8094_v23, %v1907_v45  ;;  %v2539_v0 = vmax.f32 %v1905_v33, 0.0  ;;  %v1337_v55 = vadd.f32 %v6750_v46, %v8094_v23  ;;  %v1328_v56 = vpop.f32.mrb[29].mxu0 }
 0x12a   : > { %v2542_v58 = vmax.f32 %v1916_v42, 0.0  ;;  %7001 = vmatmul.mubr.msk.bf16.gmra.mrb[136].mxu1 %vm742_vm2, %v712_v26  ;;  %v714_v26 = vpack.c.bf16 %v570_v4, %v569_v3  ;;  %v1329_v61 = vadd.f32 %v8094_v23, %v1328_v56  ;;  %v6751_v62 = vpop.f32.mrb[30].mxu0 }
 0x12b   : > { %v2540_v2 = vmax.f32 %v1908_v48, 0.0  ;;  %7004 = vmatprep.mubr.msk.bf16.mxu1 %vm742_vm2, %v713_v35  ;;  %v8323_v35 = vpack.c.bf16 %v2394_v18, %v2393_v5  ;;  %v8328_v48 = vpack.c.bf16 %v2392_v29, %v2391_v12  ;;  %v2397_v4 = vmax.f32 %v1337_v55, 0.0  ;;  %v1331_v7 = vpop.f32.mrb[31].mxu0  ;;  %v426_v29 = vld [vmem:[%s7735_s15 + $0x478] sm:$0xff] }
 0x12c   : > { %v8309_v10 = vpack.c.bf16 %v2542_v58, %v2541_v57  ;;  %v640_v57 = vpack.c.bf16 %v422_v32, %v421_v31  ;;  %v1340_v5 = vadd.f32 %v6751_v62, %v8094_v23  ;;  %v2395_v12 = vmax.f32 %v1329_v61, 0.0 }
 0x12d   : > { %v6898_v15 = vpop.f32.mrb[32].mxu1  ;;  %v8316_v19 = vpack.c.bf16 %v2540_v2, %v2539_v0  ;;  %v641_v0 = vpack.c.bf16 %v424_v40, %v423_v39  ;;  %v1332_v13 = vadd.f32 %v8094_v23, %v1331_v7 }
 0x12e   : > { %v1929_v22 = vadd.f32 %v6898_v15, %v8094_v23  ;;  %v1920_v25 = vpop.f32.mrb[33].mxu1  ;;  %v2398_v15 = vmax.f32 %v1340_v5, 0.0  ;;  %6857 = vmatmul.mubr.msk.bf16.gmra.mrb[136].mxu0 %vm742_vm2, %v640_v57 }
 0x12f   : > { %v1921_v33 = vadd.f32 %v8094_v23, %v1920_v25  ;;  %v6899_v34 = vpop.f32.mrb[34].mxu1  ;;  %6860 = vmatprep.mubr.msk.bf16.mxu0 %vm742_vm2, %v641_v0 }
 0x130   : > { %v1932_v42 = vadd.f32 %v6899_v34, %v8094_v23  ;;  %v1923_v45 = vpop.f32.mrb[35].mxu1  ;;  %v2545_v58 = vmax.f32 %v1929_v22, 0.0  ;;  %v6754_v40 = vpop.f32.mrb[32].mxu0 }
 0x131   : > { %v1924_v52 = vadd.f32 %v8094_v23, %v1923_v45  ;;  %v2543_v2 = vmax.f32 %v1921_v33, 0.0  ;;  %v8347_v33 = vpack.c.bf16 %v2398_v15, %v2397_v4  ;;  %v1353_v46 = vadd.f32 %v6754_v40, %v8094_v23 }
 0x132   : > { %v2546_v60 = vmax.f32 %v1932_v42, 0.0  ;;  %7005 = vmatmul.mubr.msk.bf16.gmra.mrb[140].mxu1 %vm742_vm2, %v714_v26  ;;  %v425_v26 = vld [vmem:[%s7735_s15 + $0x470] sm:$0xff] }
 0x133   : > { %v2544_v3 = vmax.f32 %v1924_v52, 0.0  ;;  %7024 = vmatprep.mubr.bf16.mxu1 %v8156_v44  ;;  %v2396_v44 = vmax.f32 %v1332_v13, 0.0  ;;  %v1344_v52 = vpop.f32.mrb[33].mxu0  ;;  %v642_v55 = vpack.c.bf16 %v426_v29, %v425_v26  ;;  %v2401_v0 = vmax.f32 %v1353_v46, 0.0 }
 0x134   : > { %v8336_v9 = vpack.c.bf16 %v2546_v60, %v2545_v58  ;;  %v1345_v58 = vadd.f32 %v8094_v23, %v1344_v52  ;;  %v6755_v60 = vpop.f32.mrb[34].mxu0 }
 0x135   : > { %v6902_v14 = vpop.f32.mrb[36].mxu1  ;;  %v8340_v18 = vpack.c.bf16 %v2544_v3, %v2543_v2  ;;  %v8350_v42 = vpack.c.bf16 %v2396_v44, %v2395_v12  ;;  %v1356_v2 = vadd.f32 %v6755_v60, %v8094_v23  ;;  %v1347_v3 = vpop.f32.mrb[35].mxu0 }
 0x136   : > { %v1945_v22 = vadd.f32 %v6902_v14, %v8094_v23  ;;  %v1936_v25 = vpop.f32.mrb[37].mxu1  ;;  %v2399_v5 = vmax.f32 %v1345_v58, 0.0  ;;  %v1348_v7 = vadd.f32 %v8094_v23, %v1347_v3  ;;  %6861 = vmatmul.mubr.msk.bf16.gmra.mrb[140].mxu0 %vm742_vm2, %v642_v55 }
 0x137   : > { %v1937_v31 = vadd.f32 %v8094_v23, %v1936_v25  ;;  %v6903_v32 = vpop.f32.mrb[38].mxu1  ;;  %v2402_v13 = vmax.f32 %v1356_v2, 0.0 }
 0x138   : > { %v1948_v34 = vadd.f32 %v6903_v32, %v8094_v23  ;;  %v1939_v39 = vpop.f32.mrb[39].mxu1  ;;  %v2549_v56 = vmax.f32 %v1945_v22, 0.0  ;;  %v2400_v22 = vmax.f32 %v1348_v7, 0.0 }
 0x139   : > { %v1940_v45 = vadd.f32 %v8094_v23, %v1939_v39  ;;  %v2547_v61 = vmax.f32 %v1937_v31, 0.0  ;;  %v8366_v44 = vpack.c.bf16 %v2402_v13, %v2401_v0  ;;  %v6758_v31 = vpop.f32.mrb[36].mxu0 }
 0x13a   : > { %v2550_v57 = vmax.f32 %v1948_v34, 0.0  ;;  %7025 = vmatmul.mubr.bf16.vlgmr.msra.gmra.mrb[144].mxu1 %v8151_v38  ;;  %v8369_v32 = vpack.c.bf16 %v2400_v22, %v2399_v5  ;;  %v1369_v39 = vadd.f32 %v6758_v31, %v8094_v23  ;;  %v1360_v40 = vpop.f32.mrb[37].mxu0 }
 0x13b   : > { %v2548_v62 = vmax.f32 %v1940_v45, 0.0  ;;  %7028 = vmatprep.mubr.bf16.mxu1 %v8184_v24  ;;  %v1361_v52 = vadd.f32 %v8094_v23, %v1360_v40  ;;  %v6759_v55 = vpop.f32.mrb[38].mxu0 }
 0x13c   : > { %v8358_v4 = vpack.c.bf16 %v2550_v57, %v2549_v56  ;;  %v2405_v58 = vmax.f32 %v1369_v39, 0.0  ;;  %v1372_v60 = vadd.f32 %v6759_v55, %v8094_v23 }
 0x13d   : > { %v6906_v12 = vpop.f32.mrb[40].mxu1  ;;  %v8362_v38 = vpack.c.bf16 %v2548_v62, %v2547_v61  ;;  %v1363_v61 = vpop.f32.mrb[39].mxu0  ;;  %v2403_v0 = vmax.f32 %v1361_v52, 0.0 }
 0x13e   : > { %v1961_v14 = vadd.f32 %v6906_v12, %v8094_v23  ;;  %v1952_v15 = vpop.f32.mrb[41].mxu1  ;;  %v1364_v2 = vadd.f32 %v8094_v23, %v1363_v61  ;;  %v2406_v5 = vmax.f32 %v1372_v60, 0.0 }
 0x13f   : > { %v1953_v24 = vadd.f32 %v8094_v23, %v1952_v15  ;;  %v6907_v25 = vpop.f32.mrb[42].mxu1 }
 0x140   : > { %v1964_v26 = vadd.f32 %v6907_v25, %v8094_v23  ;;  %v1955_v29 = vpop.f32.mrb[43].mxu1  ;;  %v2553_v45 = vmax.f32 %v1961_v14, 0.0  ;;  %v2404_v13 = vmax.f32 %v1364_v2, 0.0  ;;  %v8384_v15 = vpack.c.bf16 %v2406_v5, %v2405_v58  ;;  %v6762_v25 = vpop.f32.mrb[40].mxu0 }
 0x141   : > { %v1956_v34 = vadd.f32 %v8094_v23, %v1955_v29  ;;  %v2551_v56 = vmax.f32 %v1953_v24, 0.0  ;;  %v1385_v31 = vadd.f32 %v6762_v25, %v8094_v23 }
 0x142   : > { %v2554_v46 = vmax.f32 %v1964_v26, 0.0  ;;  %7029 = vmatmul.mubr.bf16.gmra.mrb[148].mxu1 %v8179_v16  ;;  %v8387_v26 = vpack.c.bf16 %v2404_v13, %v2403_v0 }
 0x143   : > { %v2552_v57 = vmax.f32 %v1956_v34, 0.0  ;;  %7032 = vmatprep.mubr.bf16.mxu1 %v8215_v8  ;;  %v1376_v34 = vpop.f32.mrb[41].mxu0 }
 0x144   : > { %v8377_v62 = vpack.c.bf16 %v2554_v46, %v2553_v45  ;;  %v1377_v45 = vadd.f32 %v8094_v23, %v1376_v34  ;;  %v6763_v46 = vpop.f32.mrb[42].mxu0 }
 0x145   : > { %v6910_v3 = vpop.f32.mrb[44].mxu1  ;;  %v8380_v7 = vpack.c.bf16 %v2552_v57, %v2551_v56  ;;  %v2409_v56 = vmax.f32 %v1385_v31, 0.0  ;;  %v1388_v57 = vadd.f32 %v6763_v46, %v8094_v23  ;;  %v1379_v58 = vpop.f32.mrb[43].mxu0 }
 0x146   : > { %v1977_v16 = vadd.f32 %v6910_v3, %v8094_v23  ;;  %v1968_v12 = vpop.f32.mrb[45].mxu1  ;;  %v2407_v61 = vmax.f32 %v1377_v45, 0.0  ;;  %v1380_v0 = vadd.f32 %v8094_v23, %v1379_v58 }
 0x147   : > { %v1969_v14 = vadd.f32 %v8094_v23, %v1968_v12  ;;  %v6911_v8 = vpop.f32.mrb[46].mxu1  ;;  %v2410_v3 = vmax.f32 %v1388_v57, 0.0 }
 0x148   : > { %v1980_v22 = vadd.f32 %v6911_v8, %v8094_v23  ;;  %v1971_v24 = vpop.f32.mrb[47].mxu1  ;;  %v2557_v39 = vmax.f32 %v1977_v16, 0.0  ;;  %v2408_v12 = vmax.f32 %v1380_v0, 0.0 }
 0x149   : > { %v1972_v29 = vadd.f32 %v8094_v23, %v1971_v24  ;;  %v2555_v52 = vmax.f32 %v1969_v14, 0.0  ;;  %v8402_v14 = vpack.c.bf16 %v2410_v3, %v2409_v56  ;;  %v6766_v24 = vpop.f32.mrb[44].mxu0 }
 0x14a   : > { %v2558_v40 = vmax.f32 %v1980_v22, 0.0  ;;  %7033 = vmatmul.mubr.bf16.gmra.mrb[152].mxu1 %v8210_v1  ;;  %v8405_v25 = vpack.c.bf16 %v2408_v12, %v2407_v61  ;;  %v1401_v31 = vadd.f32 %v6766_v24, %v8094_v23  ;;  %v1392_v34 = vpop.f32.mrb[45].mxu0 }
 0x14b   : > { %v2556_v55 = vmax.f32 %v1972_v29, 0.0  ;;  %7036 = vmatprep.mubr.bf16.mxu1 %v8243_v59  ;;  %v1393_v45 = vadd.f32 %v8094_v23, %v1392_v34  ;;  %v6767_v46 = vpop.f32.mrb[46].mxu0 }
 0x14c   : > { %v8395_v60 = vpack.c.bf16 %v2558_v40, %v2557_v39  ;;  %v2413_v56 = vmax.f32 %v1401_v31, 0.0  ;;  %v1404_v57 = vadd.f32 %v6767_v46, %v8094_v23  ;;  %v1395_v58 = vpop.f32.mrb[47].mxu0 }
 0x14d   : > { %v6914_v2 = vpop.f32.mrb[48].mxu1  ;;  %v8398_v5 = vpack.c.bf16 %v2556_v55, %v2555_v52  ;;  %v2411_v0 = vmax.f32 %v1393_v45, 0.0 }
 0x14e   : > { %v1993_v1 = vadd.f32 %v6914_v2, %v8094_v23  ;;  %v1984_v16 = vpop.f32.mrb[49].mxu1  ;;  %v1396_v2 = vadd.f32 %v8094_v23, %v1395_v58 }
 0x14f   : > { %v1985_v13 = vadd.f32 %v8094_v23, %v1984_v16  ;;  %v6915_v59 = vpop.f32.mrb[50].mxu1 }
 0x150   : > { %v1996_v8 = vadd.f32 %v6915_v59, %v8094_v23  ;;  %v1987_v22 = vpop.f32.mrb[51].mxu1  ;;  %v2561_v39 = vmax.f32 %v1993_v1, 0.0  ;;  %v2414_v1 = vmax.f32 %v1404_v57, 0.0  ;;  %v2412_v59 = vmax.f32 %v1396_v2, 0.0  ;;  %v6770_v31 = vpop.f32.mrb[48].mxu0 }
 0x151   : > { %v1988_v29 = vadd.f32 %v8094_v23, %v1987_v22  ;;  %v2559_v52 = vmax.f32 %v1985_v13, 0.0  ;;  %v1408_v45 = vpop.f32.mrb[49].mxu0 }
 0x152   : > { %v2562_v40 = vmax.f32 %v1996_v8, 0.0  ;;  %7037 = vmatmul.mubr.bf16.gmra.mrb[156].mxu1 %v8238_v51  ;;  %v7648_v51 = vld [vmem:[%s10156_s5 + $0x30] sm:$0xff]   ;;  %v8428_v22 = vpack.c.bf16 %v2414_v1, %v2413_v56  ;;  %v8431_v34 = vpack.c.bf16 %v2412_v59, %v2411_v0  ;;  %v6771_v56 = vpop.f32.mrb[50].mxu0 }
 0x153   : > { %v2560_v55 = vmax.f32 %v1988_v29, 0.0  ;;  %7040 = vmatprep.mubr.bf16.mxu1 %v8271_v49  ;;  %v8424_v49 = vld [vmem:[%s10153_s2] ss:$0 sm:$0xff]  ;;  %7324 = vmatprep.subr.bf16.mxu0 %v7648_v51 }
 0x154   : > { %v8413_v61 = vpack.c.bf16 %v2562_v40, %v2561_v39  ;;  %7325 = vmatpush3.bf16.msra.mxu0 %v7648_v51  ;;  %v1417_v40 = vadd.f32 %v8424_v49, %v6770_v31  ;;  %v1420_v0 = vadd.f32 %v8424_v49, %v6771_v56  ;;  %v1411_v51 = vpop.f32.mrb[51].mxu0 }
 0x155   : > { %v6918_v3 = vpop.f32.mrb[52].mxu1  ;;  %v8419_v16 = vpack.c.bf16 %v2560_v55, %v2559_v52  ;;  %v1409_v55 = vadd.f32 %v8424_v49, %v1408_v45 }
 0x156   : > { %v2009_v12 = vadd.f32 %v8424_v49, %v6918_v3  ;;  %v2000_v13 = vpop.f32.mrb[53].mxu1  ;;  %v2417_v2 = vmax.f32 %v1417_v40, 0.0  ;;  %v2418_v59 = vmax.f32 %v1420_v0, 0.0 }
 0x157   : > { %v2001_v23 = vadd.f32 %v8424_v49, %v2000_v13  ;;  %v6919_v8 = vpop.f32.mrb[54].mxu1  ;;  %v2415_v1 = vmax.f32 %v1409_v55, 0.0  ;;  %v1412_v13 = vadd.f32 %v8424_v49, %v1411_v51 }
 0x158   : > { %v2012_v24 = vadd.f32 %v8424_v49, %v6919_v8  ;;  %v2003_v29 = vpop.f32.mrb[55].mxu1  ;;  %v2565_v46 = vmax.f32 %v2009_v12, 0.0  ;;  %v8446_v31 = vpack.c.bf16 %v2418_v59, %v2417_v2  ;;  %v6774_v45 = vpop.f32.mrb[52].mxu0 }
 0x159   : > { %v2004_v39 = vadd.f32 %v8424_v49, %v2003_v29  ;;  %v2563_v57 = vmax.f32 %v2001_v23, 0.0  ;;  %v2416_v23 = vmax.f32 %v1412_v13, 0.0  ;;  %v1433_v55 = vadd.f32 %v8424_v49, %v6774_v45  ;;  %v1424_v56 = vpop.f32.mrb[53].mxu0 }
 0x15a   : > { %v2566_v52 = vmax.f32 %v2012_v24, 0.0  ;;  %7041 = vmatmul.mubr.bf16.gmra.mrb[160].mxu1 %v8266_v41  ;;  %v1425_v0 = vadd.f32 %v8424_v49, %v1424_v56  ;;  %v6775_v51 = vpop.f32.mrb[54].mxu0 }
 0x15b   : > { %v2564_v58 = vmax.f32 %v2004_v39, 0.0  ;;  %7044 = vmatprep.mubr.bf16.mxu1 %v8299_v47  ;;  %v1427_v59 = vpop.f32.mrb[55].mxu0 }
 0x15c   : > { %v8439_v3 = vpack.c.bf16 %v2566_v52, %v2565_v46  ;;  %v8449_v46 = vpack.c.bf16 %v2416_v23, %v2415_v1  ;;  %v1436_v1 = vadd.f32 %v8424_v49, %v6775_v51  ;;  %v2419_v23 = vmax.f32 %v1425_v0, 0.0 }
 0x15d   : > { %v6922_v12 = vpop.f32.mrb[56].mxu1  ;;  %v8442_v8 = vpack.c.bf16 %v2564_v58, %v2563_v57 }
 0x15e   : > { %10159 = vst [vmem:[#allocation2_spill] sm:$0xff] %v8439_v3  ;;  %v2025_v41 = vadd.f32 %v8424_v49, %v6922_v12  ;;  %v2016_v24 = vpop.f32.mrb[57].mxu1  ;;  %v2421_v12 = vmax.f32 %v1433_v55, 0.0 }
 0x15f   : > { %v2017_v29 = vadd.f32 %v8424_v49, %v2016_v24  ;;  %v6923_v47 = vpop.f32.mrb[58].mxu1 }
 0x160   : > { %v2028_v39 = vadd.f32 %v8424_v49, %v6923_v47  ;;  %v2019_v40 = vpop.f32.mrb[59].mxu1  ;;  %v2569_v57 = vmax.f32 %v2025_v41, 0.0  ;;  %v1428_v47 = vadd.f32 %v8424_v49, %v1427_v59 }
 0x161   : > { %v2020_v52 = vadd.f32 %v8424_v49, %v2019_v40  ;;  %v2567_v2 = vmax.f32 %v2017_v29, 0.0 }
 0x162   : > { %v2570_v58 = vmax.f32 %v2028_v39, 0.0  ;;  %7045 = vmatmul.mubr.bf16.gmra.mrb[164].mxu1 %v8294_v36  ;;  %v2422_v39 = vmax.f32 %v1436_v1, 0.0  ;;  %v2420_v29 = vmax.f32 %v1428_v47, 0.0 }
 0x163   : > { %v2568_v13 = vmax.f32 %v2020_v52, 0.0  ;;  %7048 = vmatprep.mubr.bf16.mxu1 %v8328_v48 }
 0x164   : > { %v8457_v24 = vpack.c.bf16 %v2570_v58, %v2569_v57  ;;  %v8464_v55 = vpack.c.bf16 %v2422_v39, %v2421_v12  ;;  %v6778_v58 = vpop.f32.mrb[56].mxu0  ;;  %v8467_v0 = vpack.c.bf16 %v2420_v29, %v2419_v23 }
 0x165   : > { %v6926_v41 = vpop.f32.mrb[60].mxu1  ;;  %v8460_v40 = vpack.c.bf16 %v2568_v13, %v2567_v2  ;;  %v1449_v2 = vadd.f32 %v8424_v49, %v6778_v58  ;;  %v1440_v13 = vpop.f32.mrb[57].mxu0 }
 0x166   : > { %10160 = vst [vmem:[#allocation3_spill] sm:$0xff] %v8457_v24  ;;  %v2041_v36 = vadd.f32 %v8424_v49, %v6926_v41  ;;  %v2032_v45 = vpop.f32.mrb[61].mxu1  ;;  %v1441_v47 = vadd.f32 %v8424_v49, %v1440_v13  ;;  %v6779_v41 = vpop.f32.mrb[58].mxu0 }
 0x167   : > { %10161 = vst [vmem:[#allocation4_spill] sm:$0xff] %v8460_v40  ;;  %v2033_v52 = vadd.f32 %v8424_v49, %v2032_v45  ;;  %v6927_v48 = vpop.f32.mrb[62].mxu1  ;;  %v2425_v45 = vmax.f32 %v1449_v2, 0.0  ;;  %v1452_v23 = vadd.f32 %v8424_v49, %v6779_v41  ;;  %v1443_v29 = vpop.f32.mrb[59].mxu0 }
 0x168   : > { %v2044_v56 = vadd.f32 %v8424_v49, %v6927_v48  ;;  %v2035_v57 = vpop.f32.mrb[63].mxu1  ;;  %v2573_v1 = vmax.f32 %v2041_v36, 0.0  ;;  %v1444_v58 = vadd.f32 %v8424_v49, %v1443_v29 }
 0x169   : > { %v2036_v51 = vadd.f32 %v8424_v49, %v2035_v57  ;;  %v2571_v12 = vmax.f32 %v2033_v52, 0.0  ;;  %v2423_v57 = vmax.f32 %v1441_v47, 0.0 }
 0x16a   : > { %v2574_v59 = vmax.f32 %v2044_v56, 0.0  ;;  %7049 = vmatmul.mubr.bf16.gmra.mrb[168].mxu1 %v8323_v35  ;;  %v2426_v56 = vmax.f32 %v1452_v23, 0.0  ;;  %v2424_v52 = vmax.f32 %v1444_v58, 0.0 }
 0x16b   : > { %v2572_v39 = vmax.f32 %v2036_v51, 0.0  ;;  %7052 = vmatprep.mubr.bf16.mxu1 %v8350_v42 }
 0x16c   : > { %v8475_v48 = vpack.c.bf16 %v2574_v59, %v2573_v1  ;;  %v8482_v2 = vpack.c.bf16 %v2426_v56, %v2425_v45  ;;  %v6782_v59 = vpop.f32.mrb[60].mxu0  ;;  %v8485_v47 = vpack.c.bf16 %v2424_v52, %v2423_v57 }
 0x16d   : > { %v6930_v36 = vpop.f32.mrb[64].mxu1  ;;  %v8478_v24 = vpack.c.bf16 %v2572_v39, %v2571_v12  ;;  %v1465_v12 = vadd.f32 %v8424_v49, %v6782_v59  ;;  %v1456_v39 = vpop.f32.mrb[61].mxu0 }
 0x16e   : > { %10162 = vst [vmem:[#allocation5_spill] sm:$0xff] %v8475_v48  ;;  %v2057_v35 = vadd.f32 %v8424_v49, %v6930_v36  ;;  %v2048_v13 = vpop.f32.mrb[65].mxu1  ;;  %v1457_v58 = vadd.f32 %v8424_v49, %v1456_v39 }
 0x16f   : > { %10163 = vst [vmem:[#allocation6_spill] sm:$0xff] %v8478_v24  ;;  %v2049_v51 = vadd.f32 %v8424_v49, %v2048_v13  ;;  %v6931_v42 = vpop.f32.mrb[66].mxu1  ;;  %v6783_v13 = vpop.f32.mrb[62].mxu0 }
 0x170   : > { %v2060_v41 = vadd.f32 %v8424_v49, %v6931_v42  ;;  %v2051_v1 = vpop.f32.mrb[67].mxu1  ;;  %v2577_v23 = vmax.f32 %v2057_v35, 0.0  ;;  %v2429_v42 = vmax.f32 %v1465_v12, 0.0  ;;  %v1468_v57 = vadd.f32 %v8424_v49, %v6783_v13  ;;  %v1459_v52 = vpop.f32.mrb[63].mxu0 }
 0x171   : > { %v2052_v29 = vadd.f32 %v8424_v49, %v2051_v1  ;;  %v2575_v45 = vmax.f32 %v2049_v51, 0.0  ;;  %v2427_v1 = vmax.f32 %v1457_v58, 0.0  ;;  %v1460_v59 = vadd.f32 %v8424_v49, %v1459_v52  ;;  %v6786_v52 = vpop.f32.mrb[64].mxu0 }
 0x172   : > { %v2578_v36 = vmax.f32 %v2060_v41, 0.0  ;;  %7053 = vmatmul.mubr.bf16.gmra.mrb[172].mxu1 %v8347_v33  ;;  %v7649_v33 = vld [vmem:[%s10156_s5 + $0x38] sm:$0xff]   ;;  %v2430_v41 = vmax.f32 %v1468_v57, 0.0  ;;  %v1472_v57 = vpop.f32.mrb[65].mxu0 }
 0x173   : > { %v2576_v56 = vmax.f32 %v2052_v29, 0.0  ;;  %7056 = vmatprep.mubr.bf16.mxu1 %v8369_v32  ;;  %v2428_v29 = vmax.f32 %v1460_v59, 0.0  ;;  %7326 = vmatprep.subr.bf16.mxu0 %v7649_v33 }
 0x174   : > { %v8493_v48 = vpack.c.bf16 %v2578_v36, %v2577_v23  ;;  %v8503_v36 = vpack.c.bf16 %v2430_v41, %v2429_v42  ;;  %7327 = vmatpush3.bf16.msra.mxu0 %v7649_v33  ;;  %v6787_v42 = vpop.f32.mrb[66].mxu0 }
 0x175   : > { %v6934_v35 = vpop.f32.mrb[68].mxu1  ;;  %v8499_v39 = vpack.c.bf16 %v2576_v56, %v2575_v45  ;;  %v1481_v56 = vadd.f32 %v8424_v49, %v6786_v52 }
 0x176   : > { %10164 = vst [vmem:[#allocation7_spill] sm:$0xff] %v8493_v48  ;;  %v2073_v51 = vadd.f32 %v8424_v49, %v6934_v35  ;;  %v2064_v32 = vpop.f32.mrb[69].mxu1  ;;  %v8506_v48 = vpack.c.bf16 %v2428_v29, %v2427_v1  ;;  %v1484_v1 = vadd.f32 %v8424_v49, %v6787_v42  ;;  %v1475_v29 = vpop.f32.mrb[67].mxu0 }
 0x177   : > { %10165 = vst [vmem:[#allocation8_spill] sm:$0xff] %v8499_v39  ;;  %v2065_v12 = vadd.f32 %v8424_v49, %v2064_v32  ;;  %v6935_v23 = vpop.f32.mrb[70].mxu1  ;;  %v1473_v32 = vadd.f32 %v8424_v49, %v1472_v57  ;;  %v1476_v52 = vadd.f32 %v8424_v49, %v1475_v29 }
 0x178   : > { %v2076_v58 = vadd.f32 %v8424_v49, %v6935_v23  ;;  %v2067_v13 = vpop.f32.mrb[71].mxu1  ;;  %v2581_v35 = vmax.f32 %v2073_v51, 0.0  ;;  %v2433_v23 = vmax.f32 %v1481_v56, 0.0 }
 0x179   : > { %v2068_v45 = vadd.f32 %v8424_v49, %v2067_v13  ;;  %v2579_v41 = vmax.f32 %v2065_v12, 0.0  ;;  %v2431_v13 = vmax.f32 %v1473_v32, 0.0  ;;  %v2432_v12 = vmax.f32 %v1476_v52, 0.0 }
 0x17a   : > { %v2582_v59 = vmax.f32 %v2076_v58, 0.0  ;;  %7057 = vmatmul.mubr.bf16.gmra.mrb[176].mxu1 %v8366_v44  ;;  %v2434_v58 = vmax.f32 %v1484_v1, 0.0 }
 0x17b   : > { %v2580_v33 = vmax.f32 %v2068_v45, 0.0  ;;  %7060 = vmatprep.mubr.bf16.mxu1 %v8387_v26  ;;  %v8524_v32 = vpack.c.bf16 %v2432_v12, %v2431_v13 }
 0x17c   : > { %v8514_v39 = vpack.c.bf16 %v2582_v59, %v2581_v35  ;;  %v8521_v56 = vpack.c.bf16 %v2434_v58, %v2433_v23  ;;  %v6790_v59 = vpop.f32.mrb[68].mxu0 }
 0x17d   : > { %v6938_v51 = vpop.f32.mrb[72].mxu1  ;;  %v8517_v24 = vpack.c.bf16 %v2580_v33, %v2579_v41  ;;  %v1497_v41 = vadd.f32 %v8424_v49, %v6790_v59  ;;  %v1488_v33 = vpop.f32.mrb[69].mxu0 }
 0x17e   : > { %10166 = vst [vmem:[#allocation9_spill] sm:$0xff] %v8514_v39  ;;  %v2089_v44 = vadd.f32 %v8424_v49, %v6938_v51  ;;  %v2080_v57 = vpop.f32.mrb[73].mxu1  ;;  %v1489_v52 = vadd.f32 %v8424_v49, %v1488_v33 }
 0x17f   : > { %10167 = vst [vmem:[#allocation10_spill] sm:$0xff] %v8517_v24  ;;  %v2081_v45 = vadd.f32 %v8424_v49, %v2080_v57  ;;  %v6939_v26 = vpop.f32.mrb[74].mxu1  ;;  %v6791_v57 = vpop.f32.mrb[70].mxu0 }
 0x180   : > { %v2092_v42 = vadd.f32 %v8424_v49, %v6939_v26  ;;  %v2083_v35 = vpop.f32.mrb[75].mxu1  ;;  %v2585_v1 = vmax.f32 %v2089_v44, 0.0  ;;  %v2437_v26 = vmax.f32 %v1497_v41, 0.0  ;;  %v1500_v13 = vadd.f32 %v8424_v49, %v6791_v57  ;;  %v1491_v12 = vpop.f32.mrb[71].mxu0 }
 0x181   : > { %v2084_v29 = vadd.f32 %v8424_v49, %v2083_v35  ;;  %v2583_v23 = vmax.f32 %v2081_v45, 0.0  ;;  %v2435_v35 = vmax.f32 %v1489_v52, 0.0  ;;  %v1492_v59 = vadd.f32 %v8424_v49, %v1491_v12 }
 0x182   : > { %v2586_v51 = vmax.f32 %v2092_v42, 0.0  ;;  %7061 = vmatmul.mubr.bf16.gmra.mrb[180].mxu1 %v8384_v15  ;;  %v2438_v42 = vmax.f32 %v1500_v13, 0.0 }
 0x183   : > { %v2584_v58 = vmax.f32 %v2084_v29, 0.0  ;;  %7064 = vmatprep.mubr.bf16.mxu1 %v8405_v25  ;;  %v2436_v45 = vmax.f32 %v1492_v59, 0.0 }
 0x184   : > { %v8532_v39 = vpack.c.bf16 %v2586_v51, %v2585_v1  ;;  %v8539_v41 = vpack.c.bf16 %v2438_v42, %v2437_v26  ;;  %v6794_v51 = vpop.f32.mrb[72].mxu0 }
 0x185   : > { %v6942_v44 = vpop.f32.mrb[76].mxu1  ;;  %v8535_v24 = vpack.c.bf16 %v2584_v58, %v2583_v23  ;;  %v8542_v52 = vpack.c.bf16 %v2436_v45, %v2435_v35  ;;  %v1513_v23 = vadd.f32 %v8424_v49, %v6794_v51  ;;  %v1504_v58 = vpop.f32.mrb[73].mxu0 }
 0x186   : > { %10168 = vst [vmem:[#allocation11_spill] sm:$0xff] %v8532_v39  ;;  %v2105_v15 = vadd.f32 %v8424_v49, %v6942_v44  ;;  %v2096_v33 = vpop.f32.mrb[77].mxu1  ;;  %v1505_v59 = vadd.f32 %v8424_v49, %v1504_v58 }
 0x187   : > { %10169 = vst [vmem:[#allocation12_spill] sm:$0xff] %v8535_v24  ;;  %v2097_v29 = vadd.f32 %v8424_v49, %v2096_v33  ;;  %v6943_v25 = vpop.f32.mrb[78].mxu1  ;;  %v6795_v33 = vpop.f32.mrb[74].mxu0 }
 0x188   : > { %v2108_v57 = vadd.f32 %v8424_v49, %v6943_v25  ;;  %v2099_v1 = vpop.f32.mrb[79].mxu1  ;;  %v2589_v13 = vmax.f32 %v2105_v15, 0.0  ;;  %v2441_v25 = vmax.f32 %v1513_v23, 0.0  ;;  %v1516_v35 = vadd.f32 %v8424_v49, %v6795_v33  ;;  %v1507_v45 = vpop.f32.mrb[75].mxu0 }
 0x189   : > { %v2100_v12 = vadd.f32 %v8424_v49, %v2099_v1  ;;  %v2587_v26 = vmax.f32 %v2097_v29, 0.0  ;;  %v2439_v1 = vmax.f32 %v1505_v59, 0.0  ;;  %v1508_v51 = vadd.f32 %v8424_v49, %v1507_v45 }
 0x18a   : > { %v2590_v44 = vmax.f32 %v2108_v57, 0.0  ;;  %7065 = vmatmul.mubr.bf16.gmra.mrb[184].mxu1 %v8402_v14  ;;  %v2442_v57 = vmax.f32 %v1516_v35, 0.0 }
 0x18b   : > { %v2588_v42 = vmax.f32 %v2100_v12, 0.0  ;;  %7068 = vmatprep.mubr.bf16.mxu1 %v8431_v34  ;;  %v2440_v29 = vmax.f32 %v1508_v51, 0.0 }
 0x18c   : > { %v8550_v39 = vpack.c.bf16 %v2590_v44, %v2589_v13  ;;  %v8557_v23 = vpack.c.bf16 %v2442_v57, %v2441_v25  ;;  %v6798_v44 = vpop.f32.mrb[76].mxu0 }
 0x18d   : > { %v6946_v15 = vpop.f32.mrb[80].mxu1  ;;  %v8553_v24 = vpack.c.bf16 %v2588_v42, %v2587_v26  ;;  %v8560_v59 = vpack.c.bf16 %v2440_v29, %v2439_v1  ;;  %v1529_v26 = vadd.f32 %v8424_v49, %v6798_v44  ;;  %v1520_v42 = vpop.f32.mrb[77].mxu0 }
 0x18e   : > { %10170 = vst [vmem:[#allocation13_spill] sm:$0xff] %v8550_v39  ;;  %v2121_v14 = vadd.f32 %v8424_v49, %v6946_v15  ;;  %v2112_v58 = vpop.f32.mrb[81].mxu1  ;;  %v1521_v51 = vadd.f32 %v8424_v49, %v1520_v42 }
 0x18f   : > { %10171 = vst [vmem:[#allocation14_spill] sm:$0xff] %v8553_v24  ;;  %v2113_v12 = vadd.f32 %v8424_v49, %v2112_v58  ;;  %v6947_v34 = vpop.f32.mrb[82].mxu1  ;;  %v6799_v58 = vpop.f32.mrb[78].mxu0 }
 0x190   : > { %v2124_v33 = vadd.f32 %v8424_v49, %v6947_v34  ;;  %v2115_v13 = vpop.f32.mrb[83].mxu1  ;;  %v2593_v35 = vmax.f32 %v2121_v14, 0.0  ;;  %v2445_v34 = vmax.f32 %v1529_v26, 0.0  ;;  %v1532_v1 = vadd.f32 %v8424_v49, %v6799_v58  ;;  %v1523_v29 = vpop.f32.mrb[79].mxu0 }
 0x191   : > { %v2116_v45 = vadd.f32 %v8424_v49, %v2115_v13  ;;  %v2591_v25 = vmax.f32 %v2113_v12, 0.0  ;;  %v2443_v13 = vmax.f32 %v1521_v51, 0.0  ;;  %v1524_v44 = vadd.f32 %v8424_v49, %v1523_v29 }
 0x192   : > { %v2594_v15 = vmax.f32 %v2124_v33, 0.0  ;;  %7069 = vmatmul.mubr.bf16.gmra.mrb[188].mxu1 %v8428_v22  ;;  %v2446_v33 = vmax.f32 %v1532_v1, 0.0 }
 0x193   : > { %v2592_v57 = vmax.f32 %v2116_v45, 0.0  ;;  %7072 = vmatprep.mubr.bf16.mxu1 %v8449_v46  ;;  %v2444_v12 = vmax.f32 %v1524_v44, 0.0 }
 0x194   : > { %v8568_v39 = vpack.c.bf16 %v2594_v15, %v2593_v35  ;;  %v8575_v26 = vpack.c.bf16 %v2446_v33, %v2445_v34  ;;  %v6802_v15 = vpop.f32.mrb[80].mxu0 }
 0x195   : > { %v6950_v14 = vpop.f32.mrb[84].mxu1  ;;  %v8571_v24 = vpack.c.bf16 %v2592_v57, %v2591_v25  ;;  %v8578_v51 = vpack.c.bf16 %v2444_v12, %v2443_v13  ;;  %v1545_v25 = vadd.f32 %v8424_v49, %v6802_v15  ;;  %v1536_v57 = vpop.f32.mrb[81].mxu0 }
 0x196   : > { %10172 = vst [vmem:[#allocation15_spill] sm:$0xff] %v8568_v39  ;;  %v2137_v22 = vadd.f32 %v8424_v49, %v6950_v14  ;;  %v2128_v42 = vpop.f32.mrb[85].mxu1  ;;  %v1537_v44 = vadd.f32 %v8424_v49, %v1536_v57 }
 0x197   : > { %10173 = vst [vmem:[#allocation16_spill] sm:$0xff] %v8571_v24  ;;  %v2129_v45 = vadd.f32 %v8424_v49, %v2128_v42  ;;  %v6951_v46 = vpop.f32.mrb[86].mxu1  ;;  %v6803_v42 = vpop.f32.mrb[82].mxu0 }
 0x198   : > { %v2140_v58 = vadd.f32 %v8424_v49, %v6951_v46  ;;  %v2131_v35 = vpop.f32.mrb[87].mxu1  ;;  %v2597_v1 = vmax.f32 %v2137_v22, 0.0  ;;  %v2449_v46 = vmax.f32 %v1545_v25, 0.0  ;;  %v1548_v13 = vadd.f32 %v8424_v49, %v6803_v42  ;;  %v1539_v12 = vpop.f32.mrb[83].mxu0 }
 0x199   : > { %v2132_v29 = vadd.f32 %v8424_v49, %v2131_v35  ;;  %v2595_v34 = vmax.f32 %v2129_v45, 0.0  ;;  %v2447_v35 = vmax.f32 %v1537_v44, 0.0  ;;  %v1540_v15 = vadd.f32 %v8424_v49, %v1539_v12 }
 0x19a   : > { %v2598_v14 = vmax.f32 %v2140_v58, 0.0  ;;  %7073 = vmatmul.mubr.bf16.gmra.mrb[192].mxu1 %v8446_v31  ;;  %v2450_v58 = vmax.f32 %v1548_v13, 0.0 }
 0x19b   : > { %v2596_v33 = vmax.f32 %v2132_v29, 0.0  ;;  %7076 = vmatprep.mubr.bf16.mxu1 %v8467_v0  ;;  %v2448_v45 = vmax.f32 %v1540_v15, 0.0 }
 0x19c   : > { %v8586_v39 = vpack.c.bf16 %v2598_v14, %v2597_v1  ;;  %v8593_v25 = vpack.c.bf16 %v2450_v58, %v2449_v46  ;;  %v6806_v14 = vpop.f32.mrb[84].mxu0 }
 0x19d   : > { %v6954_v22 = vpop.f32.mrb[88].mxu1  ;;  %v8589_v24 = vpack.c.bf16 %v2596_v33, %v2595_v34  ;;  %v8596_v44 = vpack.c.bf16 %v2448_v45, %v2447_v35  ;;  %v1561_v34 = vadd.f32 %v8424_v49, %v6806_v14  ;;  %v1552_v33 = vpop.f32.mrb[85].mxu0 }
 0x19e   : > { %10174 = vst [vmem:[#allocation17_spill] sm:$0xff] %v8586_v39  ;;  %v2153_v31 = vadd.f32 %v8424_v49, %v6954_v22  ;;  %v2144_v57 = vpop.f32.mrb[89].mxu1  ;;  %v1553_v15 = vadd.f32 %v8424_v49, %v1552_v33 }
 0x19f   : > { %10175 = vst [vmem:[#allocation18_spill] sm:$0xff] %v8589_v24  ;;  %v2145_v29 = vadd.f32 %v8424_v49, %v2144_v57  ;;  %v6955_v0 = vpop.f32.mrb[90].mxu1  ;;  %v6807_v57 = vpop.f32.mrb[86].mxu0 }
 0x1a0   : > { %v2156_v42 = vadd.f32 %v8424_v49, %v6955_v0  ;;  %v2147_v1 = vpop.f32.mrb[91].mxu1  ;;  %v2601_v13 = vmax.f32 %v2153_v31, 0.0  ;;  %v2453_v0 = vmax.f32 %v1561_v34, 0.0  ;;  %v1564_v35 = vadd.f32 %v8424_v49, %v6807_v57  ;;  %v1555_v45 = vpop.f32.mrb[87].mxu0 }
 0x1a1   : > { %v2148_v12 = vadd.f32 %v8424_v49, %v2147_v1  ;;  %v2599_v46 = vmax.f32 %v2145_v29, 0.0  ;;  %v2451_v1 = vmax.f32 %v1553_v15, 0.0  ;;  %v1556_v14 = vadd.f32 %v8424_v49, %v1555_v45 }
 0x1a2   : > { %v2602_v22 = vmax.f32 %v2156_v42, 0.0  ;;  %7077 = vmatmul.mubr.bf16.gmra.mrb[196].mxu1 %v8464_v55  ;;  %v2454_v42 = vmax.f32 %v1564_v35, 0.0 }
 0x1a3   : > { %v2600_v58 = vmax.f32 %v2148_v12, 0.0  ;;  %7080 = vmatprep.mubr.bf16.mxu1 %v8485_v47  ;;  %v2452_v29 = vmax.f32 %v1556_v14, 0.0 }
 0x1a4   : > { %v8604_v39 = vpack.c.bf16 %v2602_v22, %v2601_v13  ;;  %v8611_v34 = vpack.c.bf16 %v2454_v42, %v2453_v0  ;;  %v6810_v22 = vpop.f32.mrb[88].mxu0 }
 0x1a5   : > { %v6958_v31 = vpop.f32.mrb[92].mxu1  ;;  %v8607_v24 = vpack.c.bf16 %v2600_v58, %v2599_v46  ;;  %v8614_v15 = vpack.c.bf16 %v2452_v29, %v2451_v1  ;;  %v1577_v46 = vadd.f32 %v8424_v49, %v6810_v22  ;;  %v1568_v58 = vpop.f32.mrb[89].mxu0 }
 0x1a6   : > { %10176 = vst [vmem:[#allocation19_spill] sm:$0xff] %v8604_v39  ;;  %v2169_v55 = vadd.f32 %v8424_v49, %v6958_v31  ;;  %v2160_v33 = vpop.f32.mrb[93].mxu1  ;;  %v1569_v14 = vadd.f32 %v8424_v49, %v1568_v58 }
 0x1a7   : > { %10177 = vst [vmem:[#allocation20_spill] sm:$0xff] %v8607_v24  ;;  %v2161_v12 = vadd.f32 %v8424_v49, %v2160_v33  ;;  %v6959_v47 = vpop.f32.mrb[94].mxu1  ;;  %v6811_v33 = vpop.f32.mrb[90].mxu0 }
 0x1a8   : > { %v2172_v57 = vadd.f32 %v8424_v49, %v6959_v47  ;;  %v2163_v13 = vpop.f32.mrb[95].mxu1  ;;  %v2605_v35 = vmax.f32 %v2169_v55, 0.0  ;;  %v2457_v47 = vmax.f32 %v1577_v46, 0.0  ;;  %v1580_v1 = vadd.f32 %v8424_v49, %v6811_v33  ;;  %v1571_v29 = vpop.f32.mrb[91].mxu0 }
 0x1a9   : > { %v2164_v45 = vadd.f32 %v8424_v49, %v2163_v13  ;;  %v2603_v0 = vmax.f32 %v2161_v12, 0.0  ;;  %v2455_v13 = vmax.f32 %v1569_v14, 0.0  ;;  %v1572_v22 = vadd.f32 %v8424_v49, %v1571_v29 }
 0x1aa   : > { %v2606_v31 = vmax.f32 %v2172_v57, 0.0  ;;  %7081 = vmatmul.mubr.bf16.gmra.mrb[200].mxu1 %v8482_v2  ;;  %v2458_v57 = vmax.f32 %v1580_v1, 0.0 }
 0x1ab   : > { %v2604_v42 = vmax.f32 %v2164_v45, 0.0  ;;  %7084 = vmatprep.mubr.bf16.mxu1 %v8506_v48  ;;  %v2456_v12 = vmax.f32 %v1572_v22, 0.0 }
 0x1ac   : > { %v8622_v39 = vpack.c.bf16 %v2606_v31, %v2605_v35  ;;  %v8629_v46 = vpack.c.bf16 %v2458_v57, %v2457_v47  ;;  %v6814_v31 = vpop.f32.mrb[92].mxu0 }
 0x1ad   : > { %v6962_v55 = vpop.f32.mrb[96].mxu1  ;;  %v8625_v24 = vpack.c.bf16 %v2604_v42, %v2603_v0  ;;  %v8632_v14 = vpack.c.bf16 %v2456_v12, %v2455_v13  ;;  %v1593_v0 = vadd.f32 %v8424_v49, %v6814_v31  ;;  %v1584_v42 = vpop.f32.mrb[93].mxu0 }
 0x1ae   : > { %10178 = vst [vmem:[#allocation21_spill] sm:$0xff] %v8622_v39  ;;  %v2185_v2 = vadd.f32 %v8424_v49, %v6962_v55  ;;  %v2176_v58 = vpop.f32.mrb[97].mxu1  ;;  %v1585_v22 = vadd.f32 %v8424_v49, %v1584_v42 }
 0x1af   : > { %10179 = vst [vmem:[#allocation22_spill] sm:$0xff] %v8625_v24  ;;  %v2177_v45 = vadd.f32 %v8424_v49, %v2176_v58  ;;  %v6963_v48 = vpop.f32.mrb[98].mxu1  ;;  %v6815_v58 = vpop.f32.mrb[94].mxu0 }
 0x1b0   : > { %v2188_v33 = vadd.f32 %v8424_v49, %v6963_v48  ;;  %v2179_v35 = vpop.f32.mrb[99].mxu1  ;;  %v2609_v1 = vmax.f32 %v2185_v2, 0.0  ;;  %v2461_v48 = vmax.f32 %v1593_v0, 0.0  ;;  %v1596_v13 = vadd.f32 %v8424_v49, %v6815_v58  ;;  %v1587_v12 = vpop.f32.mrb[95].mxu0 }
 0x1b1   : > { %v2180_v29 = vadd.f32 %v8424_v49, %v2179_v35  ;;  %v2607_v47 = vmax.f32 %v2177_v45, 0.0  ;;  %v2459_v35 = vmax.f32 %v1585_v22, 0.0  ;;  %v1588_v31 = vadd.f32 %v8424_v49, %v1587_v12 }
 0x1b2   : > { %v2610_v55 = vmax.f32 %v2188_v33, 0.0  ;;  %7085 = vmatmul.mubr.bf16.gmra.mrb[204].mxu1 %v8503_v36  ;;  %v2462_v33 = vmax.f32 %v1596_v13, 0.0 }
 0x1b3   : > { %v2608_v57 = vmax.f32 %v2180_v29, 0.0  ;;  %7088 = vmatprep.mubr.bf16.mxu1 %v8524_v32  ;;  %v2460_v45 = vmax.f32 %v1588_v31, 0.0 }
 0x1b4   : > { %v8640_v39 = vpack.c.bf16 %v2610_v55, %v2609_v1  ;;  %v8647_v0 = vpack.c.bf16 %v2462_v33, %v2461_v48  ;;  %v6818_v55 = vpop.f32.mrb[96].mxu0 }
 0x1b5   : > { %v6966_v2 = vpop.f32.mrb[100].mxu1  ;;  %v8643_v24 = vpack.c.bf16 %v2608_v57, %v2607_v47  ;;  %v8650_v22 = vpack.c.bf16 %v2460_v45, %v2459_v35  ;;  %v1609_v47 = vadd.f32 %v8424_v49, %v6818_v55  ;;  %v1600_v57 = vpop.f32.mrb[97].mxu0 }
 0x1b6   : > { %10180 = vst [vmem:[#allocation23_spill] sm:$0xff] %v8640_v39  ;;  %v2201_v36 = vadd.f32 %v8424_v49, %v6966_v2  ;;  %v2192_v42 = vpop.f32.mrb[101].mxu1  ;;  %v1601_v31 = vadd.f32 %v8424_v49, %v1600_v57 }
 0x1b7   : > { %10181 = vst [vmem:[#allocation24_spill] sm:$0xff] %v8643_v24  ;;  %v2193_v29 = vadd.f32 %v8424_v49, %v2192_v42  ;;  %v6967_v32 = vpop.f32.mrb[102].mxu1  ;;  %v6819_v42 = vpop.f32.mrb[98].mxu0 }
 0x1b8   : > { %v2204_v58 = vadd.f32 %v8424_v49, %v6967_v32  ;;  %v2195_v1 = vpop.f32.mrb[103].mxu1  ;;  %v2613_v13 = vmax.f32 %v2201_v36, 0.0  ;;  %v2465_v32 = vmax.f32 %v1609_v47, 0.0  ;;  %v1612_v35 = vadd.f32 %v8424_v49, %v6819_v42  ;;  %v1603_v45 = vpop.f32.mrb[99].mxu0 }
 0x1b9   : > { %v2196_v12 = vadd.f32 %v8424_v49, %v2195_v1  ;;  %v2611_v48 = vmax.f32 %v2193_v29, 0.0  ;;  %v2463_v1 = vmax.f32 %v1601_v31, 0.0  ;;  %v1604_v55 = vadd.f32 %v8424_v49, %v1603_v45 }
 0x1ba   : > { %v2614_v2 = vmax.f32 %v2204_v58, 0.0  ;;  %7089 = vmatmul.mubr.bf16.gmra.mrb[208].mxu1 %v8521_v56  ;;  %v2466_v58 = vmax.f32 %v1612_v35, 0.0 }
 0x1bb   : > { %v2612_v33 = vmax.f32 %v2196_v12, 0.0  ;;  %7092 = vmatprep.mubr.bf16.mxu1 %v8542_v52  ;;  %v2464_v29 = vmax.f32 %v1604_v55, 0.0 }
 0x1bc   : > { %v8658_v39 = vpack.c.bf16 %v2614_v2, %v2613_v13  ;;  %v8665_v47 = vpack.c.bf16 %v2466_v58, %v2465_v32  ;;  %v6822_v2 = vpop.f32.mrb[100].mxu0 }
 0x1bd   : > { %v6970_v36 = vpop.f32.mrb[104].mxu1  ;;  %v8661_v24 = vpack.c.bf16 %v2612_v33, %v2611_v48  ;;  %v8668_v31 = vpack.c.bf16 %v2464_v29, %v2463_v1  ;;  %v1625_v48 = vadd.f32 %v8424_v49, %v6822_v2  ;;  %v1616_v33 = vpop.f32.mrb[101].mxu0 }
 0x1be   : > { %10182 = vst [vmem:[#allocation25_spill] sm:$0xff] %v8658_v39  ;;  %v2217_v56 = vadd.f32 %v8424_v49, %v6970_v36  ;;  %v2208_v57 = vpop.f32.mrb[105].mxu1  ;;  %v1617_v55 = vadd.f32 %v8424_v49, %v1616_v33 }
 0x1bf   : > { %10183 = vst [vmem:[#allocation26_spill] sm:$0xff] %v8661_v24  ;;  %v2209_v12 = vadd.f32 %v8424_v49, %v2208_v57  ;;  %v6971_v52 = vpop.f32.mrb[106].mxu1  ;;  %v6823_v57 = vpop.f32.mrb[102].mxu0 }
 0x1c0   : > { %v2220_v42 = vadd.f32 %v8424_v49, %v6971_v52  ;;  %v2211_v13 = vpop.f32.mrb[107].mxu1  ;;  %v2617_v35 = vmax.f32 %v2217_v56, 0.0  ;;  %v2469_v52 = vmax.f32 %v1625_v48, 0.0  ;;  %v1628_v1 = vadd.f32 %v8424_v49, %v6823_v57  ;;  %v1619_v29 = vpop.f32.mrb[103].mxu0 }
 0x1c1   : > { %v2212_v45 = vadd.f32 %v8424_v49, %v2211_v13  ;;  %v2615_v32 = vmax.f32 %v2209_v12, 0.0  ;;  %v2467_v13 = vmax.f32 %v1617_v55, 0.0  ;;  %v1620_v2 = vadd.f32 %v8424_v49, %v1619_v29 }
 0x1c2   : > { %v2618_v36 = vmax.f32 %v2220_v42, 0.0  ;;  %7093 = vmatmul.mubr.bf16.gmra.mrb[212].mxu1 %v8539_v41  ;;  %v2470_v42 = vmax.f32 %v1628_v1, 0.0 }
 0x1c3   : > { %v2616_v58 = vmax.f32 %v2212_v45, 0.0  ;;  %7096 = vmatprep.mubr.bf16.mxu1 %v8560_v59  ;;  %v2468_v12 = vmax.f32 %v1620_v2, 0.0 }
 0x1c4   : > { %v8676_v39 = vpack.c.bf16 %v2618_v36, %v2617_v35  ;;  %v8683_v48 = vpack.c.bf16 %v2470_v42, %v2469_v52  ;;  %v6826_v36 = vpop.f32.mrb[104].mxu0 }
 0x1c5   : > { %v6974_v56 = vpop.f32.mrb[108].mxu1  ;;  %v8679_v24 = vpack.c.bf16 %v2616_v58, %v2615_v32  ;;  %v8686_v55 = vpack.c.bf16 %v2468_v12, %v2467_v13  ;;  %v1641_v32 = vadd.f32 %v8424_v49, %v6826_v36  ;;  %v1632_v58 = vpop.f32.mrb[105].mxu0 }
 0x1c6   : > { %10184 = vst [vmem:[#allocation27_spill] sm:$0xff] %v8676_v39  ;;  %v2233_v41 = vadd.f32 %v8424_v49, %v6974_v56  ;;  %v2224_v33 = vpop.f32.mrb[109].mxu1  ;;  %v1633_v2 = vadd.f32 %v8424_v49, %v1632_v58 }
 0x1c7   : > { %10185 = vst [vmem:[#allocation28_spill] sm:$0xff] %v8679_v24  ;;  %v2225_v45 = vadd.f32 %v8424_v49, %v2224_v33  ;;  %v6975_v59 = vpop.f32.mrb[110].mxu1  ;;  %v6827_v33 = vpop.f32.mrb[106].mxu0 }
 0x1c8   : > { %v2236_v57 = vadd.f32 %v8424_v49, %v6975_v59  ;;  %v2227_v35 = vpop.f32.mrb[111].mxu1  ;;  %v2621_v1 = vmax.f32 %v2233_v41, 0.0  ;;  %v2473_v59 = vmax.f32 %v1641_v32, 0.0  ;;  %v1644_v13 = vadd.f32 %v8424_v49, %v6827_v33  ;;  %v1635_v12 = vpop.f32.mrb[107].mxu0 }
 0x1c9   : > { %v2228_v29 = vadd.f32 %v8424_v49, %v2227_v35  ;;  %v2619_v52 = vmax.f32 %v2225_v45, 0.0  ;;  %v2471_v35 = vmax.f32 %v1633_v2, 0.0  ;;  %v1636_v36 = vadd.f32 %v8424_v49, %v1635_v12 }
 0x1ca   : > { %v2622_v56 = vmax.f32 %v2236_v57, 0.0  ;;  %7097 = vmatmul.mubr.bf16.gmra.mrb[216].mxu1 %v8557_v23  ;;  %v2474_v57 = vmax.f32 %v1644_v13, 0.0 }
 0x1cb   : > { %v2620_v42 = vmax.f32 %v2228_v29, 0.0  ;;  %7100 = vmatprep.mubr.bf16.mxu1 %v8578_v51  ;;  %v2472_v45 = vmax.f32 %v1636_v36, 0.0 }
 0x1cc   : > { %v8694_v39 = vpack.c.bf16 %v2622_v56, %v2621_v1  ;;  %v8701_v32 = vpack.c.bf16 %v2474_v57, %v2473_v59  ;;  %v6830_v56 = vpop.f32.mrb[108].mxu0 }
 0x1cd   : > { %v6978_v41 = vpop.f32.mrb[112].mxu1  ;;  %v8697_v24 = vpack.c.bf16 %v2620_v42, %v2619_v52  ;;  %v8704_v2 = vpack.c.bf16 %v2472_v45, %v2471_v35  ;;  %v1657_v52 = vadd.f32 %v8424_v49, %v6830_v56  ;;  %v1648_v42 = vpop.f32.mrb[109].mxu0 }
 0x1ce   : > { %10186 = vst [vmem:[#allocation29_spill] sm:$0xff] %v8694_v39  ;;  %v2249_v23 = vadd.f32 %v8424_v49, %v6978_v41  ;;  %v2240_v58 = vpop.f32.mrb[113].mxu1  ;;  %v1649_v36 = vadd.f32 %v8424_v49, %v1648_v42 }
 0x1cf   : > { %10187 = vst [vmem:[#allocation30_spill] sm:$0xff] %v8697_v24  ;;  %v2241_v29 = vadd.f32 %v8424_v49, %v2240_v58  ;;  %v6979_v51 = vpop.f32.mrb[114].mxu1  ;;  %v6831_v58 = vpop.f32.mrb[110].mxu0 }
 0x1d0   : > { %v2252_v33 = vadd.f32 %v8424_v49, %v6979_v51  ;;  %v2243_v1 = vpop.f32.mrb[115].mxu1  ;;  %v2625_v13 = vmax.f32 %v2249_v23, 0.0  ;;  %v2477_v51 = vmax.f32 %v1657_v52, 0.0  ;;  %v1660_v35 = vadd.f32 %v8424_v49, %v6831_v58  ;;  %v1651_v45 = vpop.f32.mrb[111].mxu0 }
 0x1d1   : > { %v2244_v12 = vadd.f32 %v8424_v49, %v2243_v1  ;;  %v2623_v59 = vmax.f32 %v2241_v29, 0.0  ;;  %v2475_v1 = vmax.f32 %v1649_v36, 0.0  ;;  %v1652_v56 = vadd.f32 %v8424_v49, %v1651_v45 }
 0x1d2   : > { %v2626_v41 = vmax.f32 %v2252_v33, 0.0  ;;  %7101 = vmatmul.mubr.bf16.gmra.mrb[220].mxu1 %v8575_v26  ;;  %v2478_v33 = vmax.f32 %v1660_v35, 0.0 }
 0x1d3   : > { %v2624_v57 = vmax.f32 %v2244_v12, 0.0  ;;  %7104 = vmatprep.mubr.bf16.mxu1 %v8596_v44  ;;  %v2476_v29 = vmax.f32 %v1652_v56, 0.0 }
 0x1d4   : > { %v8712_v39 = vpack.c.bf16 %v2626_v41, %v2625_v13  ;;  %v8719_v52 = vpack.c.bf16 %v2478_v33, %v2477_v51  ;;  %v6834_v41 = vpop.f32.mrb[112].mxu0 }
 0x1d5   : > { %v6982_v23 = vpop.f32.mrb[116].mxu1  ;;  %v8715_v24 = vpack.c.bf16 %v2624_v57, %v2623_v59  ;;  %v8722_v36 = vpack.c.bf16 %v2476_v29, %v2475_v1  ;;  %v1673_v59 = vadd.f32 %v8424_v49, %v6834_v41  ;;  %v1664_v57 = vpop.f32.mrb[113].mxu0 }
 0x1d6   : > { %10188 = vst [vmem:[#allocation31_spill] sm:$0xff] %v8712_v39  ;;  %v2265_v26 = vadd.f32 %v8424_v49, %v6982_v23  ;;  %v2256_v42 = vpop.f32.mrb[117].mxu1  ;;  %v1665_v56 = vadd.f32 %v8424_v49, %v1664_v57 }
 0x1d7   : > { %10189 = vst [vmem:[#allocation32_spill] sm:$0xff] %v8715_v24  ;;  %v2257_v12 = vadd.f32 %v8424_v49, %v2256_v42  ;;  %v6983_v44 = vpop.f32.mrb[118].mxu1  ;;  %v6835_v42 = vpop.f32.mrb[114].mxu0 }
 0x1d8   : > { %v2268_v58 = vadd.f32 %v8424_v49, %v6983_v44  ;;  %v2259_v13 = vpop.f32.mrb[119].mxu1  ;;  %v2629_v35 = vmax.f32 %v2265_v26, 0.0  ;;  %v2481_v44 = vmax.f32 %v1673_v59, 0.0  ;;  %v1676_v1 = vadd.f32 %v8424_v49, %v6835_v42  ;;  %v1667_v29 = vpop.f32.mrb[115].mxu0 }
 0x1d9   : > { %v2260_v45 = vadd.f32 %v8424_v49, %v2259_v13  ;;  %v2627_v51 = vmax.f32 %v2257_v12, 0.0  ;;  %v2479_v13 = vmax.f32 %v1665_v56, 0.0  ;;  %v1668_v41 = vadd.f32 %v8424_v49, %v1667_v29  ;;  %v6838_v56 = vpop.f32.mrb[116].mxu0 }
 0x1da   : > { %v2630_v23 = vmax.f32 %v2268_v58, 0.0  ;;  %7105 = vmatmul.mubr.bf16.gmra.mrb[224].mxu1 %v8593_v25  ;;  %v2482_v58 = vmax.f32 %v1676_v1, 0.0  ;;  %v8738_v25 = vld [vmem:[%s10153_s2] ss:$0 sm:$0xff]  ;;  %v1680_v1 = vpop.f32.mrb[117].mxu0 }
 0x1db   : > { %v2628_v33 = vmax.f32 %v2260_v45, 0.0  ;;  %7108 = vmatprep.mubr.bf16.mxu1 %v8614_v15  ;;  %v2480_v45 = vmax.f32 %v1668_v41, 0.0  ;;  %v1681_v41 = vadd.f32 %v8738_v25, %v1680_v1 }
 0x1dc   : > { %v8730_v39 = vpack.c.bf16 %v2630_v23, %v2629_v35  ;;  %v8742_v35 = vpack.c.bf16 %v2482_v58, %v2481_v44 }
 0x1dd   : > { %v6986_v26 = vpop.f32.mrb[120].mxu1  ;;  %v8733_v24 = vpack.c.bf16 %v2628_v33, %v2627_v51  ;;  %v8745_v42 = vpack.c.bf16 %v2480_v45, %v2479_v13  ;;  %v1689_v33 = vadd.f32 %v8738_v25, %v6838_v56 }
 0x1de   : > { %10190 = vst [vmem:[#allocation33_spill] sm:$0xff] %v8730_v39  ;;  %v2281_v15 = vadd.f32 %v8738_v25, %v6986_v26  ;;  %v2272_v12 = vpop.f32.mrb[121].mxu1 }
 0x1df   : > { %10191 = vst [vmem:[#allocation34_spill] sm:$0xff] %v8733_v24  ;;  %v2273_v59 = vadd.f32 %v8738_v25, %v2272_v12  ;;  %v6987_v57 = vpop.f32.mrb[122].mxu1  ;;  %v6839_v12 = vpop.f32.mrb[118].mxu0 }
 0x1e0   : > { %v2284_v49 = vadd.f32 %v8738_v25, %v6987_v57  ;;  %v2275_v23 = vpop.f32.mrb[123].mxu1  ;;  %v2633_v29 = vmax.f32 %v2281_v15, 0.0  ;;  %v2485_v57 = vmax.f32 %v1689_v33, 0.0  ;;  %v1692_v13 = vadd.f32 %v8738_v25, %v6839_v12  ;;  %v1683_v45 = vpop.f32.mrb[119].mxu0 }
 0x1e1   : > { %v2276_v51 = vadd.f32 %v8738_v25, %v2275_v23  ;;  %v2631_v44 = vmax.f32 %v2273_v59, 0.0  ;;  %v2483_v23 = vmax.f32 %v1681_v41, 0.0  ;;  %v1684_v56 = vadd.f32 %v8738_v25, %v1683_v45 }
 0x1e2   : > { %v2634_v26 = vmax.f32 %v2284_v49, 0.0  ;;  %7109 = vmatmul.mubr.bf16.gmra.mrb[228].mxu1 %v8611_v34  ;;  %v2486_v49 = vmax.f32 %v1692_v13, 0.0 }
 0x1e3   : > { %v2632_v58 = vmax.f32 %v2276_v51, 0.0  ;;  %7112 = vmatprep.mubr.bf16.mxu1 %v8632_v14  ;;  %v2484_v59 = vmax.f32 %v1684_v56, 0.0 }
 0x1e4   : > { %v8753_v39 = vpack.c.bf16 %v2634_v26, %v2633_v29  ;;  %v8760_v33 = vpack.c.bf16 %v2486_v49, %v2485_v57  ;;  %v6842_v26 = vpop.f32.mrb[120].mxu0 }
 0x1e5   : > { %v6990_v15 = vpop.f32.mrb[124].mxu1  ;;  %v8756_v24 = vpack.c.bf16 %v2632_v58, %v2631_v44  ;;  %v8763_v41 = vpack.c.bf16 %v2484_v59, %v2483_v23  ;;  %v1705_v44 = vadd.f32 %v8738_v25, %v6842_v26  ;;  %v1696_v58 = vpop.f32.mrb[121].mxu0 }
 0x1e6   : > { %10192 = vst [vmem:[#allocation35_spill] sm:$0xff] %v8753_v39  ;;  %v2297_v34 = vadd.f32 %v8738_v25, %v6990_v15  ;;  %v2288_v1 = vpop.f32.mrb[125].mxu1  ;;  %v1697_v56 = vadd.f32 %v8738_v25, %v1696_v58 }
 0x1e7   : > { %10193 = vst [vmem:[#allocation36_spill] sm:$0xff] %v8756_v24  ;;  %v2289_v51 = vadd.f32 %v8738_v25, %v2288_v1  ;;  %v6991_v14 = vpop.f32.mrb[126].mxu1  ;;  %v6843_v1 = vpop.f32.mrb[122].mxu0 }
 0x1e8   : > { %v2300_v12 = vadd.f32 %v8738_v25, %v6991_v14  ;;  %v2291_v29 = vpop.f32.mrb[127].mxu1  ;;  %v2637_v13 = vmax.f32 %v2297_v34, 0.0  ;;  %v2489_v14 = vmax.f32 %v1705_v44, 0.0  ;;  %v1708_v23 = vadd.f32 %v8738_v25, %v6843_v1  ;;  %v1699_v59 = vpop.f32.mrb[123].mxu0 }
 0x1e9   : > { %v2292_v45 = vadd.f32 %v8738_v25, %v2291_v29  ;;  %v2635_v57 = vmax.f32 %v2289_v51, 0.0  ;;  %v2487_v29 = vmax.f32 %v1697_v56, 0.0  ;;  %v1700_v26 = vadd.f32 %v8738_v25, %v1699_v59 }
 0x1ea   : > { %v2638_v15 = vmax.f32 %v2300_v12, 0.0  ;;  %7113 = vmatmul.mubr.bf16.gmra.mrb[232].mxu1 %v8629_v46  ;;  %v2490_v12 = vmax.f32 %v1708_v23, 0.0 }
 0x1eb   : > { %v2636_v49 = vmax.f32 %v2292_v45, 0.0  ;;  %7116 = vmatprep.mubr.bf16.mxu1 %v8650_v22  ;;  %v2488_v51 = vmax.f32 %v1700_v26, 0.0 }
 0x1ec   : > { %v8771_v39 = vpack.c.bf16 %v2638_v15, %v2637_v13  ;;  %v8778_v44 = vpack.c.bf16 %v2490_v12, %v2489_v14  ;;  %v6846_v15 = vpop.f32.mrb[124].mxu0 }
 0x1ed   : > { %v6994_v34 = vpop.f32.mrb[128].mxu1  ;;  %v8774_v24 = vpack.c.bf16 %v2636_v49, %v2635_v57  ;;  %v8781_v56 = vpack.c.bf16 %v2488_v51, %v2487_v29  ;;  %v1721_v57 = vadd.f32 %v8738_v25, %v6846_v15  ;;  %v1712_v49 = vpop.f32.mrb[125].mxu0 }
 0x1ee   : > { %10194 = vst [vmem:[#allocation37_spill] sm:$0xff] %v8771_v39  ;;  %v2313_v46 = vadd.f32 %v8738_v25, %v6994_v34  ;;  %v2304_v58 = vpop.f32.mrb[129].mxu1  ;;  %v1713_v26 = vadd.f32 %v8738_v25, %v1712_v49 }
 0x1ef   : > { %10195 = vst [vmem:[#allocation38_spill] sm:$0xff] %v8774_v24  ;;  %v2305_v45 = vadd.f32 %v8738_v25, %v2304_v58  ;;  %v6995_v22 = vpop.f32.mrb[130].mxu1  ;;  %v6847_v58 = vpop.f32.mrb[126].mxu0 }
 0x1f0   : > { %v2316_v1 = vadd.f32 %v8738_v25, %v6995_v22  ;;  %v2307_v13 = vpop.f32.mrb[131].mxu1  ;;  %v2641_v23 = vmax.f32 %v2313_v46, 0.0  ;;  %v2493_v22 = vmax.f32 %v1721_v57, 0.0  ;;  %v1724_v29 = vadd.f32 %v8738_v25, %v6847_v58  ;;  %v1715_v51 = vpop.f32.mrb[127].mxu0 }
 0x1f1   : > { %v2308_v59 = vadd.f32 %v8738_v25, %v2307_v13  ;;  %v2639_v14 = vmax.f32 %v2305_v45, 0.0  ;;  %v2491_v13 = vmax.f32 %v1713_v26, 0.0  ;;  %v1716_v15 = vadd.f32 %v8738_v25, %v1715_v51 }
 0x1f2   : > { %v2642_v34 = vmax.f32 %v2316_v1, 0.0  ;;  %7117 = vmatmul.mubr.bf16.gmra.mrb[236].mxu1 %v8647_v0  ;;  %v2494_v1 = vmax.f32 %v1724_v29, 0.0 }
 0x1f3   : > { %v2640_v12 = vmax.f32 %v2308_v59, 0.0  ;;  %7120 = vmatprep.mubr.bf16.mxu1 %v8668_v31  ;;  %v2492_v45 = vmax.f32 %v1716_v15, 0.0 }
 0x1f4   : > { %v8789_v39 = vpack.c.bf16 %v2642_v34, %v2641_v23  ;;  %v8796_v57 = vpack.c.bf16 %v2494_v1, %v2493_v22  ;;  %v6850_v34 = vpop.f32.mrb[128].mxu0 }
 0x1f5   : > { %v6998_v46 = vpop.f32.mrb[132].mxu1  ;;  %v8792_v24 = vpack.c.bf16 %v2640_v12, %v2639_v14  ;;  %v8799_v26 = vpack.c.bf16 %v2492_v45, %v2491_v13  ;;  %v1737_v14 = vadd.f32 %v8738_v25, %v6850_v34  ;;  %v1728_v12 = vpop.f32.mrb[129].mxu0 }
 0x1f6   : > { %10196 = vst [vmem:[#allocation39_spill] sm:$0xff] %v8789_v39  ;;  %v2329_v0 = vadd.f32 %v8738_v25, %v6998_v46  ;;  %v2320_v49 = vpop.f32.mrb[133].mxu1  ;;  %v1729_v15 = vadd.f32 %v8738_v25, %v1728_v12 }
 0x1f7   : > { %10197 = vst [vmem:[#allocation40_spill] sm:$0xff] %v8792_v24  ;;  %v2321_v59 = vadd.f32 %v8738_v25, %v2320_v49  ;;  %v6999_v31 = vpop.f32.mrb[134].mxu1  ;;  %v6851_v49 = vpop.f32.mrb[130].mxu0 }
 0x1f8   : > { %v2332_v58 = vadd.f32 %v8738_v25, %v6999_v31  ;;  %v2323_v23 = vpop.f32.mrb[135].mxu1  ;;  %v2645_v29 = vmax.f32 %v2329_v0, 0.0  ;;  %v2497_v31 = vmax.f32 %v1737_v14, 0.0  ;;  %v1740_v13 = vadd.f32 %v8738_v25, %v6851_v49  ;;  %v1731_v45 = vpop.f32.mrb[131].mxu0 }
 0x1f9   : > { %v2324_v51 = vadd.f32 %v8738_v25, %v2323_v23  ;;  %v2643_v22 = vmax.f32 %v2321_v59, 0.0  ;;  %v2495_v23 = vmax.f32 %v1729_v15, 0.0  ;;  %v1732_v34 = vadd.f32 %v8738_v25, %v1731_v45 }
 0x1fa   : > { %v2646_v46 = vmax.f32 %v2332_v58, 0.0  ;;  %7121 = vmatmul.mubr.bf16.gmra.mrb[240].mxu1 %v8665_v47  ;;  %v2498_v58 = vmax.f32 %v1740_v13, 0.0 }
 0x1fb   : > { %v2644_v1 = vmax.f32 %v2324_v51, 0.0  ;;  %7124 = vmatprep.mubr.bf16.mxu1 %v8686_v55  ;;  %v2496_v59 = vmax.f32 %v1732_v34, 0.0 }
 0x1fc   : > { %v8807_v39 = vpack.c.bf16 %v2646_v46, %v2645_v29  ;;  %v8814_v14 = vpack.c.bf16 %v2498_v58, %v2497_v31  ;;  %v6854_v46 = vpop.f32.mrb[132].mxu0 }
 0x1fd   : > { %v7002_v0 = vpop.f32.mrb[136].mxu1  ;;  %v8810_v24 = vpack.c.bf16 %v2644_v1, %v2643_v22  ;;  %v8817_v15 = vpack.c.bf16 %v2496_v59, %v2495_v23  ;;  %v1753_v22 = vadd.f32 %v8738_v25, %v6854_v46  ;;  %v1744_v1 = vpop.f32.mrb[133].mxu0 }
 0x1fe   : > { %10198 = vst [vmem:[#allocation41_spill] sm:$0xff] %v8807_v39  ;;  %v2345_v47 = vadd.f32 %v8738_v25, %v7002_v0  ;;  %v2336_v12 = vpop.f32.mrb[137].mxu1  ;;  %v1745_v34 = vadd.f32 %v8738_v25, %v1744_v1 }
 0x1ff   : > { %10199 = vst [vmem:[#allocation42_spill] sm:$0xff] %v8810_v24  ;;  %v2337_v51 = vadd.f32 %v8738_v25, %v2336_v12  ;;  %v7003_v55 = vpop.f32.mrb[138].mxu1  ;;  %v6855_v12 = vpop.f32.mrb[134].mxu0 }
 0x200   : > { %v2348_v49 = vadd.f32 %v8738_v25, %v7003_v55  ;;  %v2339_v29 = vpop.f32.mrb[139].mxu1  ;;  %v2649_v13 = vmax.f32 %v2345_v47, 0.0  ;;  %v2501_v55 = vmax.f32 %v1753_v22, 0.0  ;;  %v1756_v23 = vadd.f32 %v8738_v25, %v6855_v12  ;;  %v1747_v59 = vpop.f32.mrb[135].mxu0 }
 0x201   : > { %v2340_v45 = vadd.f32 %v8738_v25, %v2339_v29  ;;  %v2647_v31 = vmax.f32 %v2337_v51, 0.0  ;;  %v2499_v29 = vmax.f32 %v1745_v34, 0.0  ;;  %v1748_v46 = vadd.f32 %v8738_v25, %v1747_v59 }
 0x202   : > { %v2650_v0 = vmax.f32 %v2348_v49, 0.0  ;;  %7125 = vmatmul.mubr.bf16.gmra.mrb[244].mxu1 %v8683_v48  ;;  %v2502_v49 = vmax.f32 %v1756_v23, 0.0 }
 0x203   : > { %v2648_v58 = vmax.f32 %v2340_v45, 0.0  ;;  %7128 = vmatprep.mubr.bf16.mxu1 %v8704_v2  ;;  %v2500_v51 = vmax.f32 %v1748_v46, 0.0 }
 0x204   : > { %v8825_v39 = vpack.c.bf16 %v2650_v0, %v2649_v13  ;;  %v8832_v22 = vpack.c.bf16 %v2502_v49, %v2501_v55  ;;  %v6858_v0 = vpop.f32.mrb[136].mxu0 }
 0x205   : > { %v7006_v47 = vpop.f32.mrb[140].mxu1  ;;  %v8828_v24 = vpack.c.bf16 %v2648_v58, %v2647_v31  ;;  %v8835_v34 = vpack.c.bf16 %v2500_v51, %v2499_v29  ;;  %v1769_v31 = vadd.f32 %v8738_v25, %v6858_v0  ;;  %v1760_v58 = vpop.f32.mrb[137].mxu0 }
 0x206   : > { %10200 = vst [vmem:[#allocation43_spill] sm:$0xff] %v8825_v39  ;;  %v2361_v48 = vadd.f32 %v8738_v25, %v7006_v47  ;;  %v2352_v1 = vpop.f32.mrb[141].mxu1  ;;  %v1761_v46 = vadd.f32 %v8738_v25, %v1760_v58 }
 0x207   : > { %10201 = vst [vmem:[#allocation44_spill] sm:$0xff] %v8828_v24  ;;  %v2353_v45 = vadd.f32 %v8738_v25, %v2352_v1  ;;  %v7007_v2 = vpop.f32.mrb[142].mxu1  ;;  %v6859_v1 = vpop.f32.mrb[138].mxu0  ;;  %v2505_v29 = vmax.f32 %v1769_v31, 0.0 }
 0x208   : > { %v2364_v12 = vadd.f32 %v8738_v25, %v7007_v2  ;;  %v2355_v13 = vpop.f32.mrb[143].mxu1  ;;  %v2653_v23 = vmax.f32 %v2361_v48, 0.0  ;;  %v8844_v2 = vld [vmem:[%s10155_s4] ss:$0 sm:$0xff]  ;;  %v1772_v51 = vadd.f32 %v8738_v25, %v6859_v1 }
 0x209   : > { %v2356_v59 = vadd.f32 %v8738_v25, %v2355_v13  ;;  %v2651_v55 = vmax.f32 %v2353_v45, 0.0  ;;  %v1763_v13 = vpop.f32.mrb[139].mxu0 }
 0x20a   : > { %v2654_v47 = vmax.f32 %v2364_v12, 0.0  ;;  %7129 = vmatmul.mubr.bf16.gmra.mrb[248].mxu1 %v8701_v32  ;;  %v2503_v12 = vmax.f32 %v1761_v46, 0.0  ;;  %v1764_v32 = vadd.f32 %v8738_v25, %v1763_v13  ;;  %v2506_v58 = vmax.f32 %v1772_v51, 0.0 }
 0x20b   : > { %v2652_v49 = vmax.f32 %v2356_v59, 0.0  ;;  %7132 = vmatprep.mubr.bf16.mxu1 %v8722_v36 }
 0x20c   : > { %v8848_v48 = vpack.c.bf16 %v2654_v47, %v2653_v23  ;;  %v2504_v24 = vmax.f32 %v1764_v32, 0.0  ;;  %v8855_v31 = vpack.c.bf16 %v2506_v58, %v2505_v29  ;;  %v6862_v47 = vpop.f32.mrb[140].mxu0 }
 0x20d   : > { %v7026_v0 = vpop.f32.mrb[144].mxu1  ;;  %v8851_v45 = vpack.c.bf16 %v2652_v49, %v2651_v55  ;;  %v1785_v55 = vadd.f32 %v8738_v25, %v6862_v47  ;;  %v1776_v49 = vpop.f32.mrb[141].mxu0 }
 0x20e   : > { %10202 = vst [vmem:[#allocation45_spill] sm:$0xff] %v8848_v48  ;;  %v2913_v59 = vadd.f32 %v7026_v0, %v8844_v2  ;;  %v2904_v39 = vpop.f32.mrb[145].mxu1  ;;  %v8858_v46 = vpack.c.bf16 %v2504_v24, %v2503_v12  ;;  %v6863_v32 = vpop.f32.mrb[142].mxu0 }
 0x20f   : > { %10203 = vst [vmem:[#allocation46_spill] sm:$0xff] %v8851_v45  ;;  %v2905_v40 = vadd.f32 %v8844_v2, %v2904_v39  ;;  %v7027_v36 = vpop.f32.mrb[146].mxu1  ;;  %v1777_v39 = vadd.f32 %v8738_v25, %v1776_v49  ;;  %v1788_v24 = vadd.f32 %v8738_v25, %v6863_v32  ;;  %v1779_v12 = vpop.f32.mrb[143].mxu0 }
 0x210   : > { %v2916_v1 = vadd.f32 %v7027_v36, %v8844_v2  ;;  %v2907_v23 = vpop.f32.mrb[147].mxu1  ;;  %v4057_v51 = vmax.f32 %v2913_v59, 0.0  ;;  %v2509_v36 = vmax.f32 %v1785_v55, 0.0  ;;  %v1780_v47 = vadd.f32 %v8738_v25, %v1779_v12 }
 0x211   : > { %v2908_v13 = vadd.f32 %v8844_v2, %v2907_v23  ;;  %v4055_v29 = vmax.f32 %v2905_v40, 0.0  ;;  %v2507_v23 = vmax.f32 %v1777_v39, 0.0 }
 0x212   : > { %v4058_v0 = vmax.f32 %v2916_v1, 0.0  ;;  %7133 = vmatmul.mubr.bf16.gmra.mrb[252].mxu1 %v8719_v52  ;;  %v2510_v1 = vmax.f32 %v1788_v24, 0.0  ;;  %v2508_v49 = vmax.f32 %v1780_v47, 0.0 }
 0x213   : > { %v4056_v58 = vmax.f32 %v2908_v13, 0.0  ;;  %7136 = vmatprep.mubr.bf16.mxu1 %v8745_v42 }
 0x214   : > { %v4344_v48 = vpack.c.bf16 %v4058_v0, %v4057_v51  ;;  %v8869_v42 = vpack.c.bf16 %v2510_v1, %v2509_v36  ;;  %v8872_v51 = vpack.c.bf16 %v2508_v49, %v2507_v23 }
 0x215   : > { %v7030_v45 = vpop.f32.mrb[148].mxu1  ;;  %v4343_v59 = vpack.c.bf16 %v4056_v58, %v4055_v29 }
 0x216   : > { %v2929_v52 = vadd.f32 %v7030_v45, %v8844_v2  ;;  %v2920_v3 = vpop.f32.mrb[149].mxu1 }
 0x217   : > { %v2921_v40 = vadd.f32 %v8844_v2, %v2920_v3  ;;  %v7031_v13 = vpop.f32.mrb[150].mxu1  ;;  %7328 = vmatprep.mubr.bf16.mxu0 %v4343_v59 }
 0x218   : > { %v2932_v55 = vadd.f32 %v7031_v13, %v8844_v2  ;;  %v2923_v32 = vpop.f32.mrb[151].mxu1  ;;  %7329 = vmatmul.mubr.bf16.vlgmr.msra.gmra.mrb[144].mxu0 %v4344_v48  ;;  %v4061_v0 = vmax.f32 %v2929_v52, 0.0 }
 0x219   : > { %v2924_v25 = vadd.f32 %v8844_v2, %v2923_v32  ;;  %v4059_v45 = vmax.f32 %v2921_v40, 0.0 }
 0x21a   : > { %v4062_v39 = vmax.f32 %v2932_v55, 0.0  ;;  %7137 = vmatmul.mubr.bf16.gmra.mrb[0].mxu1 %v8742_v35 }
 0x21b   : > { %v4060_v29 = vmax.f32 %v2924_v25, 0.0  ;;  %7140 = vmatprep.mubr.bf16.mxu1 %v8763_v41 }
 0x21c   : > { %v4346_v3 = vpack.c.bf16 %v4062_v39, %v4061_v0 }
 0x21d   : > { %v7034_v58 = vpop.f32.mrb[152].mxu1  ;;  %v4345_v36 = vpack.c.bf16 %v4060_v29, %v4059_v45 }
 0x21e   : > { %v2945_v24 = vadd.f32 %v7034_v58, %v8844_v2  ;;  %v2936_v12 = vpop.f32.mrb[153].mxu1 }
 0x21f   : > { %v2937_v48 = vadd.f32 %v8844_v2, %v2936_v12  ;;  %v7035_v23 = vpop.f32.mrb[154].mxu1  ;;  %7332 = vmatprep.mubr.bf16.mxu0 %v4345_v36 }
 0x220   : > { %v2948_v47 = vadd.f32 %v7035_v23, %v8844_v2  ;;  %v2939_v59 = vpop.f32.mrb[155].mxu1  ;;  %7333 = vmatmul.mubr.bf16.gmra.mrb[148].mxu0 %v4346_v3  ;;  %v4065_v1 = vmax.f32 %v2945_v24, 0.0 }
 0x221   : > { %v2940_v35 = vadd.f32 %v8844_v2, %v2939_v59  ;;  %v4063_v41 = vmax.f32 %v2937_v48, 0.0 }
 0x222   : > { %v4066_v52 = vmax.f32 %v2948_v47, 0.0  ;;  %7141 = vmatmul.mubr.bf16.gmra.mrb[4].mxu1 %v8760_v33 }
 0x223   : > { %v4064_v49 = vmax.f32 %v2940_v35, 0.0  ;;  %7144 = vmatprep.mubr.bf16.mxu1 %v8781_v56 }
 0x224   : > { %v4348_v40 = vpack.c.bf16 %v4066_v52, %v4065_v1 }
 0x225   : > { %v7038_v13 = vpop.f32.mrb[156].mxu1  ;;  %v4347_v55 = vpack.c.bf16 %v4064_v49, %v4063_v41 }
 0x226   : > { %v2961_v32 = vadd.f32 %v7038_v13, %v8844_v2  ;;  %v2952_v25 = vpop.f32.mrb[157].mxu1 }
 0x227   : > { %v2953_v0 = vadd.f32 %v8844_v2, %v2952_v25  ;;  %v7039_v39 = vpop.f32.mrb[158].mxu1  ;;  %7336 = vmatprep.mubr.bf16.mxu0 %v4347_v55 }
 0x228   : > { %v2964_v45 = vadd.f32 %v7039_v39, %v8844_v2  ;;  %v2955_v29 = vpop.f32.mrb[159].mxu1  ;;  %7337 = vmatmul.mubr.bf16.gmra.mrb[152].mxu0 %v4348_v40  ;;  %v4069_v3 = vmax.f32 %v2961_v32, 0.0 }
 0x229   : > { %v2956_v33 = vadd.f32 %v8844_v2, %v2955_v29  ;;  %v4067_v56 = vmax.f32 %v2953_v0, 0.0 }
 0x22a   : > { %v4070_v58 = vmax.f32 %v2964_v45, 0.0  ;;  %7145 = vmatmul.mubr.bf16.gmra.mrb[8].mxu1 %v8778_v44 }
 0x22b   : > { %v4068_v36 = vmax.f32 %v2956_v33, 0.0  ;;  %7148 = vmatprep.mubr.bf16.mxu1 %v8799_v26 }
 0x22c   : > { %v4350_v24 = vpack.c.bf16 %v4070_v58, %v4069_v3 }
 0x22d   : > { %v7042_v12 = vpop.f32.mrb[160].mxu1  ;;  %v4349_v48 = vpack.c.bf16 %v4068_v36, %v4067_v56 }
 0x22e   : > { %v2977_v23 = vadd.f32 %v7042_v12, %v8844_v2  ;;  %v2968_v47 = vpop.f32.mrb[161].mxu1 }
 0x22f   : > { %v2969_v59 = vadd.f32 %v8844_v2, %v2968_v47  ;;  %v7043_v35 = vpop.f32.mrb[162].mxu1  ;;  %7340 = vmatprep.mubr.bf16.mxu0 %v4349_v48 }
 0x230   : > { %v2980_v1 = vadd.f32 %v7043_v35, %v8844_v2  ;;  %v2971_v52 = vpop.f32.mrb[163].mxu1  ;;  %7341 = vmatmul.mubr.bf16.gmra.mrb[156].mxu0 %v4350_v24  ;;  %v4073_v41 = vmax.f32 %v2977_v23, 0.0 }
 0x231   : > { %v2972_v44 = vadd.f32 %v8844_v2, %v2971_v52  ;;  %v4071_v26 = vmax.f32 %v2969_v59, 0.0 }
 0x232   : > { %v4074_v49 = vmax.f32 %v2980_v1, 0.0  ;;  %7149 = vmatmul.mubr.bf16.gmra.mrb[12].mxu1 %v8796_v57 }
 0x233   : > { %v4072_v40 = vmax.f32 %v2972_v44, 0.0  ;;  %7152 = vmatprep.mubr.bf16.mxu1 %v8817_v15 }
 0x234   : > { %v4352_v13 = vpack.c.bf16 %v4074_v49, %v4073_v41 }
 0x235   : > { %v7046_v55 = vpop.f32.mrb[164].mxu1  ;;  %v4351_v32 = vpack.c.bf16 %v4072_v40, %v4071_v26 }
 0x236   : > { %v2993_v25 = vadd.f32 %v7046_v55, %v8844_v2  ;;  %v2984_v0 = vpop.f32.mrb[165].mxu1 }
 0x237   : > { %v2985_v39 = vadd.f32 %v8844_v2, %v2984_v0  ;;  %v7047_v45 = vpop.f32.mrb[166].mxu1  ;;  %7344 = vmatprep.mubr.bf16.mxu0 %v4351_v32 }
 0x238   : > { %v2996_v29 = vadd.f32 %v7047_v45, %v8844_v2  ;;  %v2987_v33 = vpop.f32.mrb[167].mxu1  ;;  %7345 = vmatmul.mubr.bf16.gmra.mrb[160].mxu0 %v4352_v13  ;;  %v4077_v3 = vmax.f32 %v2993_v25, 0.0 }
 0x239   : > { %v2988_v57 = vadd.f32 %v8844_v2, %v2987_v33  ;;  %v4075_v15 = vmax.f32 %v2985_v39, 0.0 }
 0x23a   : > { %v4078_v58 = vmax.f32 %v2996_v29, 0.0  ;;  %7153 = vmatmul.mubr.bf16.gmra.mrb[16].mxu1 %v8814_v14 }
 0x23b   : > { %v4076_v56 = vmax.f32 %v2988_v57, 0.0  ;;  %7156 = vmatprep.mubr.bf16.mxu1 %v8835_v34 }
 0x23c   : > { %v4354_v36 = vpack.c.bf16 %v4078_v58, %v4077_v3 }
 0x23d   : > { %v7050_v24 = vpop.f32.mrb[168].mxu1  ;;  %v4353_v12 = vpack.c.bf16 %v4076_v56, %v4075_v15 }
 0x23e   : > { %v3009_v48 = vadd.f32 %v7050_v24, %v8844_v2  ;;  %v3000_v23 = vpop.f32.mrb[169].mxu1 }
 0x23f   : > { %v3001_v47 = vadd.f32 %v8844_v2, %v3000_v23  ;;  %v7051_v59 = vpop.f32.mrb[170].mxu1  ;;  %7348 = vmatprep.mubr.bf16.mxu0 %v4353_v12 }
 0x240   : > { %v3012_v35 = vadd.f32 %v7051_v59, %v8844_v2  ;;  %v3003_v1 = vpop.f32.mrb[171].mxu1  ;;  %7349 = vmatmul.mubr.bf16.gmra.mrb[164].mxu0 %v4354_v36  ;;  %v4081_v52 = vmax.f32 %v3009_v48, 0.0 }
 0x241   : > { %v3004_v14 = vadd.f32 %v8844_v2, %v3003_v1  ;;  %v4079_v34 = vmax.f32 %v3001_v47, 0.0 }
 0x242   : > { %v4082_v44 = vmax.f32 %v3012_v35, 0.0  ;;  %7157 = vmatmul.mubr.bf16.gmra.mrb[20].mxu1 %v8832_v22 }
 0x243   : > { %v4080_v41 = vmax.f32 %v3004_v14, 0.0  ;;  %7160 = vmatprep.mubr.bf16.mxu1 %v8858_v46 }
 0x244   : > { %v4356_v49 = vpack.c.bf16 %v4082_v44, %v4081_v52 }
 0x245   : > { %v7054_v26 = vpop.f32.mrb[172].mxu1  ;;  %v4355_v40 = vpack.c.bf16 %v4080_v41, %v4079_v34 }
 0x246   : > { %v3025_v13 = vadd.f32 %v7054_v26, %v8844_v2  ;;  %v3016_v55 = vpop.f32.mrb[173].mxu1 }
 0x247   : > { %v3017_v32 = vadd.f32 %v8844_v2, %v3016_v55  ;;  %v7055_v25 = vpop.f32.mrb[174].mxu1  ;;  %7352 = vmatprep.mubr.bf16.mxu0 %v4355_v40 }
 0x248   : > { %v3028_v0 = vadd.f32 %v7055_v25, %v8844_v2  ;;  %v3019_v39 = vpop.f32.mrb[175].mxu1  ;;  %7353 = vmatmul.mubr.bf16.gmra.mrb[168].mxu0 %v4356_v49  ;;  %v4085_v45 = vmax.f32 %v3025_v13, 0.0 }
 0x249   : > { %v3020_v22 = vadd.f32 %v8844_v2, %v3019_v39  ;;  %v4083_v46 = vmax.f32 %v3017_v32, 0.0 }
 0x24a   : > { %v4086_v29 = vmax.f32 %v3028_v0, 0.0  ;;  %7161 = vmatmul.mubr.bf16.gmra.mrb[24].mxu1 %v8855_v31 }
 0x24b   : > { %v4084_v33 = vmax.f32 %v3020_v22, 0.0  ;;  %7164 = vmatprep.mubr.bf16.mxu1 %v8872_v51 }
 0x24c   : > { %v4358_v57 = vpack.c.bf16 %v4086_v29, %v4085_v45 }
 0x24d   : > { %v7058_v3 = vpop.f32.mrb[176].mxu1  ;;  %v4357_v58 = vpack.c.bf16 %v4084_v33, %v4083_v46 }
 0x24e   : > { %v3041_v15 = vadd.f32 %v7058_v3, %v8844_v2  ;;  %v3032_v56 = vpop.f32.mrb[177].mxu1 }
 0x24f   : > { %v3033_v36 = vadd.f32 %v8844_v2, %v3032_v56  ;;  %v7059_v24 = vpop.f32.mrb[178].mxu1  ;;  %7356 = vmatprep.mubr.bf16.mxu0 %v4357_v58 }
 0x250   : > { %v3044_v12 = vadd.f32 %v7059_v24, %v8844_v2  ;;  %v3035_v48 = vpop.f32.mrb[179].mxu1  ;;  %7357 = vmatmul.mubr.bf16.gmra.mrb[172].mxu0 %v4358_v57  ;;  %v4089_v23 = vmax.f32 %v3041_v15, 0.0 }
 0x251   : > { %v3036_v31 = vadd.f32 %v8844_v2, %v3035_v48  ;;  %v4087_v51 = vmax.f32 %v3033_v36, 0.0 }
 0x252   : > { %v4090_v47 = vmax.f32 %v3044_v12, 0.0  ;;  %7165 = vmatmul.mubr.bf16.gmra.mrb[28].mxu1 %v8869_v42 }
 0x253   : > { %v4088_v59 = vmax.f32 %v3036_v31, 0.0  ;;  %7168 = vmatprep.mubr.bf16.mxu1 %v8120_v54 }
 0x254   : > { %v4360_v35 = vpack.c.bf16 %v4090_v47, %v4089_v23 }
 0x255   : > { %v4359_v1 = vpack.c.bf16 %v4088_v59, %v4087_v51  ;;  %v7062_v14 = vpop.f32.mrb[180].mxu1 }
 0x256   : > { %v3057_v52 = vadd.f32 %v7062_v14, %v8844_v2  ;;  %v3048_v44 = vpop.f32.mrb[181].mxu1 }
 0x257   : > { %v3049_v34 = vadd.f32 %v8844_v2, %v3048_v44  ;;  %v7063_v41 = vpop.f32.mrb[182].mxu1  ;;  %7360 = vmatprep.mubr.bf16.mxu0 %v4359_v1 }
 0x258   : > { %v3060_v49 = vadd.f32 %v7063_v41, %v8844_v2  ;;  %v3051_v26 = vpop.f32.mrb[183].mxu1  ;;  %7361 = vmatmul.mubr.bf16.gmra.mrb[176].mxu0 %v4360_v35  ;;  %v4093_v40 = vmax.f32 %v3057_v52, 0.0 }
 0x259   : > { %v3052_v42 = vadd.f32 %v8844_v2, %v3051_v26  ;;  %v4091_v54 = vmax.f32 %v3049_v34, 0.0 }
 0x25a   : > { %v4094_v13 = vmax.f32 %v3060_v49, 0.0  ;;  %7169 = vmatmul.mubr.bf16.gmra.mrb[32].mxu1 %v8115_v50 }
 0x25b   : > { %v4092_v55 = vmax.f32 %v3052_v42, 0.0  ;;  %7172 = vmatprep.mubr.bf16.mxu1 %v8144_v28 }
 0x25c   : > { %v4362_v32 = vpack.c.bf16 %v4094_v13, %v4093_v40 }
 0x25d   : > { %v4361_v25 = vpack.c.bf16 %v4092_v55, %v4091_v54  ;;  %v7066_v0 = vpop.f32.mrb[184].mxu1 }
 0x25e   : > { %v3073_v39 = vadd.f32 %v7066_v0, %v8844_v2  ;;  %v3064_v22 = vpop.f32.mrb[185].mxu1 }
 0x25f   : > { %v3065_v45 = vadd.f32 %v8844_v2, %v3064_v22  ;;  %v7067_v29 = vpop.f32.mrb[186].mxu1  ;;  %7364 = vmatprep.mubr.bf16.mxu0 %v4361_v25 }
 0x260   : > { %v3076_v46 = vadd.f32 %v7067_v29, %v8844_v2  ;;  %v3067_v33 = vpop.f32.mrb[187].mxu1  ;;  %7365 = vmatmul.mubr.bf16.gmra.mrb[180].mxu0 %v4362_v32  ;;  %v4097_v57 = vmax.f32 %v3073_v39, 0.0 }
 0x261   : > { %v3068_v50 = vadd.f32 %v8844_v2, %v3067_v33  ;;  %v4095_v28 = vmax.f32 %v3065_v45, 0.0 }
 0x262   : > { %v4098_v3 = vmax.f32 %v3076_v46, 0.0  ;;  %7173 = vmatmul.mubr.bf16.gmra.mrb[36].mxu1 %v8138_v20 }
 0x263   : > { %v4096_v58 = vmax.f32 %v3068_v50, 0.0  ;;  %7176 = vmatprep.mubr.bf16.mxu1 %v8172_v6 }
 0x264   : > { %v4364_v15 = vpack.c.bf16 %v4098_v3, %v4097_v57 }
 0x265   : > { %v4363_v56 = vpack.c.bf16 %v4096_v58, %v4095_v28  ;;  %v7070_v36 = vpop.f32.mrb[188].mxu1 }
 0x266   : > { %v3089_v24 = vadd.f32 %v7070_v36, %v8844_v2  ;;  %v3080_v12 = vpop.f32.mrb[189].mxu1 }
 0x267   : > { %v3081_v48 = vadd.f32 %v8844_v2, %v3080_v12  ;;  %v7071_v31 = vpop.f32.mrb[190].mxu1  ;;  %7368 = vmatprep.mubr.bf16.mxu0 %v4363_v56 }
 0x268   : > { %v3092_v23 = vadd.f32 %v7071_v31, %v8844_v2  ;;  %v3083_v47 = vpop.f32.mrb[191].mxu1  ;;  %7369 = vmatmul.mubr.bf16.gmra.mrb[184].mxu0 %v4364_v15  ;;  %v4101_v51 = vmax.f32 %v3089_v24, 0.0 }
 0x269   : > { %v3084_v20 = vadd.f32 %v8844_v2, %v3083_v47  ;;  %v4099_v6 = vmax.f32 %v3081_v48, 0.0 }
 0x26a   : > { %v4102_v59 = vmax.f32 %v3092_v23, 0.0  ;;  %7177 = vmatmul.mubr.bf16.gmra.mrb[40].mxu1 %v8166_v63 }
 0x26b   : > { %v4100_v35 = vmax.f32 %v3084_v20, 0.0  ;;  %7180 = vmatprep.mubr.bf16.mxu1 %v8203_v53 }
 0x26c   : > { %v4366_v1 = vpack.c.bf16 %v4102_v59, %v4101_v51 }
 0x26d   : > { %v4365_v14 = vpack.c.bf16 %v4100_v35, %v4099_v6  ;;  %v7074_v52 = vpop.f32.mrb[192].mxu1 }
 0x26e   : > { %v3105_v44 = vadd.f32 %v7074_v52, %v8844_v2  ;;  %v3096_v34 = vpop.f32.mrb[193].mxu1 }
 0x26f   : > { %v3097_v41 = vadd.f32 %v8844_v2, %v3096_v34  ;;  %v7075_v49 = vpop.f32.mrb[194].mxu1  ;;  %7372 = vmatprep.mubr.bf16.mxu0 %v4365_v14 }
 0x270   : > { %v3108_v26 = vadd.f32 %v7075_v49, %v8844_v2  ;;  %v3099_v42 = vpop.f32.mrb[195].mxu1  ;;  %7373 = vmatmul.mubr.bf16.gmra.mrb[188].mxu0 %v4366_v1  ;;  %v4105_v40 = vmax.f32 %v3105_v44, 0.0 }
 0x271   : > { %v3100_v63 = vadd.f32 %v8844_v2, %v3099_v42  ;;  %v4103_v53 = vmax.f32 %v3097_v41, 0.0 }
 0x272   : > { %v4106_v13 = vmax.f32 %v3108_v26, 0.0  ;;  %7181 = vmatmul.mubr.bf16.gmra.mrb[44].mxu1 %v8194_v43 }
 0x273   : > { %v4104_v54 = vmax.f32 %v3100_v63, 0.0  ;;  %7184 = vmatprep.mubr.bf16.mxu1 %v8231_v37 }
 0x274   : > { %v4368_v55 = vpack.c.bf16 %v4106_v13, %v4105_v40 }
 0x275   : > { %v4367_v32 = vpack.c.bf16 %v4104_v54, %v4103_v53  ;;  %v7078_v25 = vpop.f32.mrb[196].mxu1 }
 0x276   : > { %v3121_v0 = vadd.f32 %v7078_v25, %v8844_v2  ;;  %v3112_v39 = vpop.f32.mrb[197].mxu1 }
 0x277   : > { %v3113_v22 = vadd.f32 %v8844_v2, %v3112_v39  ;;  %v7079_v45 = vpop.f32.mrb[198].mxu1  ;;  %7376 = vmatprep.mubr.bf16.mxu0 %v4367_v32 }
 0x278   : > { %v3124_v29 = vadd.f32 %v7079_v45, %v8844_v2  ;;  %v3115_v46 = vpop.f32.mrb[199].mxu1  ;;  %7377 = vmatmul.mubr.bf16.gmra.mrb[192].mxu0 %v4368_v55  ;;  %v4109_v33 = vmax.f32 %v3121_v0, 0.0 }
 0x279   : > { %v3116_v43 = vadd.f32 %v8844_v2, %v3115_v46  ;;  %v4107_v37 = vmax.f32 %v3113_v22, 0.0 }
 0x27a   : > { %v4110_v50 = vmax.f32 %v3124_v29, 0.0  ;;  %7185 = vmatmul.mubr.bf16.gmra.mrb[48].mxu1 %v8225_v30 }
 0x27b   : > { %v4108_v57 = vmax.f32 %v3116_v43, 0.0  ;;  %7188 = vmatprep.mubr.bf16.mxu1 %v8259_v27 }
 0x27c   : > { %v4370_v3 = vpack.c.bf16 %v4110_v50, %v4109_v33 }
 0x27d   : > { %v4369_v28 = vpack.c.bf16 %v4108_v57, %v4107_v37  ;;  %v7082_v58 = vpop.f32.mrb[200].mxu1 }
 0x27e   : > { %v3137_v15 = vadd.f32 %v7082_v58, %v8844_v2  ;;  %v3128_v56 = vpop.f32.mrb[201].mxu1 }
 0x27f   : > { %v3129_v36 = vadd.f32 %v8844_v2, %v3128_v56  ;;  %v7083_v24 = vpop.f32.mrb[202].mxu1  ;;  %7380 = vmatprep.mubr.bf16.mxu0 %v4369_v28 }
 0x280   : > { %v3140_v12 = vadd.f32 %v7083_v24, %v8844_v2  ;;  %v3131_v48 = vpop.f32.mrb[203].mxu1  ;;  %7381 = vmatmul.mubr.bf16.gmra.mrb[196].mxu0 %v4370_v3  ;;  %v4113_v31 = vmax.f32 %v3137_v15, 0.0 }
 0x281   : > { %v3132_v30 = vadd.f32 %v8844_v2, %v3131_v48  ;;  %v4111_v27 = vmax.f32 %v3129_v36, 0.0 }
 0x282   : > { %v4114_v23 = vmax.f32 %v3140_v12, 0.0  ;;  %7189 = vmatmul.mubr.bf16.gmra.mrb[52].mxu1 %v8253_v17 }
 0x283   : > { %v4112_v47 = vmax.f32 %v3132_v30, 0.0  ;;  %7192 = vmatprep.mubr.bf16.mxu1 %v8287_v21 }
 0x284   : > { %v4372_v20 = vpack.c.bf16 %v4114_v23, %v4113_v31 }
 0x285   : > { %v4371_v51 = vpack.c.bf16 %v4112_v47, %v4111_v27  ;;  %v7086_v59 = vpop.f32.mrb[204].mxu1 }
 0x286   : > { %v3153_v6 = vadd.f32 %v7086_v59, %v8844_v2  ;;  %v3144_v35 = vpop.f32.mrb[205].mxu1 }
 0x287   : > { %v3145_v1 = vadd.f32 %v8844_v2, %v3144_v35  ;;  %v7087_v14 = vpop.f32.mrb[206].mxu1  ;;  %7384 = vmatprep.mubr.bf16.mxu0 %v4371_v51 }
 0x288   : > { %v3156_v52 = vadd.f32 %v7087_v14, %v8844_v2  ;;  %v3147_v44 = vpop.f32.mrb[207].mxu1  ;;  %7385 = vmatmul.mubr.bf16.gmra.mrb[200].mxu0 %v4372_v20  ;;  %v4117_v34 = vmax.f32 %v3153_v6, 0.0 }
 0x289   : > { %v3148_v17 = vadd.f32 %v8844_v2, %v3147_v44  ;;  %v4115_v21 = vmax.f32 %v3145_v1, 0.0 }
 0x28a   : > { %v4118_v41 = vmax.f32 %v3156_v52, 0.0  ;;  %7193 = vmatmul.mubr.bf16.gmra.mrb[56].mxu1 %v8281_v11 }
 0x28b   : > { %v4116_v49 = vmax.f32 %v3148_v17, 0.0  ;;  %7196 = vmatprep.mubr.bf16.mxu1 %v8316_v19 }
 0x28c   : > { %v4374_v26 = vpack.c.bf16 %v4118_v41, %v4117_v34 }
 0x28d   : > { %v4373_v42 = vpack.c.bf16 %v4116_v49, %v4115_v21  ;;  %v7090_v63 = vpop.f32.mrb[208].mxu1 }
 0x28e   : > { %v3169_v40 = vadd.f32 %v7090_v63, %v8844_v2  ;;  %v3160_v13 = vpop.f32.mrb[209].mxu1 }
 0x28f   : > { %v3161_v53 = vadd.f32 %v8844_v2, %v3160_v13  ;;  %v7091_v54 = vpop.f32.mrb[210].mxu1  ;;  %7388 = vmatprep.mubr.bf16.mxu0 %v4373_v42 }
 0x290   : > { %v3172_v55 = vadd.f32 %v7091_v54, %v8844_v2  ;;  %v3163_v32 = vpop.f32.mrb[211].mxu1  ;;  %7389 = vmatmul.mubr.bf16.gmra.mrb[204].mxu0 %v4374_v26  ;;  %v4121_v25 = vmax.f32 %v3169_v40, 0.0 }
 0x291   : > { %v3164_v11 = vadd.f32 %v8844_v2, %v3163_v32  ;;  %v4119_v19 = vmax.f32 %v3161_v53, 0.0 }
 0x292   : > { %v4122_v0 = vmax.f32 %v3172_v55, 0.0  ;;  %7197 = vmatmul.mubr.bf16.gmra.mrb[60].mxu1 %v8309_v10 }
 0x293   : > { %v4120_v39 = vmax.f32 %v3164_v11, 0.0  ;;  %7200 = vmatprep.mubr.bf16.mxu1 %v8340_v18 }
 0x294   : > { %v4376_v22 = vpack.c.bf16 %v4122_v0, %v4121_v25 }
 0x295   : > { %v4375_v45 = vpack.c.bf16 %v4120_v39, %v4119_v19  ;;  %v7094_v29 = vpop.f32.mrb[212].mxu1 }
 0x296   : > { %v3185_v46 = vadd.f32 %v7094_v29, %v8844_v2  ;;  %v3176_v43 = vpop.f32.mrb[213].mxu1 }
 0x297   : > { %v3177_v33 = vadd.f32 %v8844_v2, %v3176_v43  ;;  %v7095_v50 = vpop.f32.mrb[214].mxu1  ;;  %7392 = vmatprep.mubr.bf16.mxu0 %v4375_v45 }
 0x298   : > { %v3188_v37 = vadd.f32 %v7095_v50, %v8844_v2  ;;  %v3179_v57 = vpop.f32.mrb[215].mxu1  ;;  %7393 = vmatmul.mubr.bf16.gmra.mrb[208].mxu0 %v4376_v22  ;;  %v4125_v3 = vmax.f32 %v3185_v46, 0.0 }
 0x299   : > { %v3180_v10 = vadd.f32 %v8844_v2, %v3179_v57  ;;  %v4123_v18 = vmax.f32 %v3177_v33, 0.0 }
 0x29a   : > { %v4126_v28 = vmax.f32 %v3188_v37, 0.0  ;;  %7201 = vmatmul.mubr.bf16.gmra.mrb[64].mxu1 %v8336_v9 }
 0x29b   : > { %v4124_v58 = vmax.f32 %v3180_v10, 0.0  ;;  %7204 = vmatprep.mubr.bf16.mxu1 %v8362_v38 }
 0x29c   : > { %v4378_v15 = vpack.c.bf16 %v4126_v28, %v4125_v3 }
 0x29d   : > { %v4377_v56 = vpack.c.bf16 %v4124_v58, %v4123_v18  ;;  %v7098_v36 = vpop.f32.mrb[216].mxu1 }
 0x29e   : > { %v3201_v24 = vadd.f32 %v7098_v36, %v8844_v2  ;;  %v3192_v12 = vpop.f32.mrb[217].mxu1 }
 0x29f   : > { %v3193_v48 = vadd.f32 %v8844_v2, %v3192_v12  ;;  %v7099_v30 = vpop.f32.mrb[218].mxu1  ;;  %7396 = vmatprep.mubr.bf16.mxu0 %v4377_v56 }
 0x2a0   : > { %v3204_v31 = vadd.f32 %v7099_v30, %v8844_v2  ;;  %v3195_v23 = vpop.f32.mrb[219].mxu1  ;;  %7397 = vmatmul.mubr.bf16.gmra.mrb[212].mxu0 %v4378_v15  ;;  %v4129_v27 = vmax.f32 %v3201_v24, 0.0  ;;  %v10204_v30 = vld [vmem:[#allocation2_spill] sm:$0xff] }
 0x2a1   : > { %v3196_v9 = vadd.f32 %v8844_v2, %v3195_v23  ;;  %v4127_v38 = vmax.f32 %v3193_v48, 0.0  ;;  %v10205_v23 = vld [vmem:[#allocation4_spill] sm:$0xff] }
 0x2a2   : > { %v4130_v47 = vmax.f32 %v3204_v31, 0.0  ;;  %7205 = vmatmul.mubr.bf16.gmra.mrb[68].mxu1 %v8358_v4 }
 0x2a3   : > { %v4128_v20 = vmax.f32 %v3196_v9, 0.0  ;;  %7208 = vmatprep.mubr.bf16.mxu1 %v8380_v7 }
 0x2a4   : > { %v4380_v51 = vpack.c.bf16 %v4130_v47, %v4129_v27 }
 0x2a5   : > { %v4379_v59 = vpack.c.bf16 %v4128_v20, %v4127_v38  ;;  %v7102_v6 = vpop.f32.mrb[220].mxu1 }
 0x2a6   : > { %v3217_v35 = vadd.f32 %v7102_v6, %v8844_v2  ;;  %v3208_v1 = vpop.f32.mrb[221].mxu1 }
 0x2a7   : > { %v3209_v14 = vadd.f32 %v8844_v2, %v3208_v1  ;;  %v7103_v52 = vpop.f32.mrb[222].mxu1  ;;  %7400 = vmatprep.mubr.bf16.mxu0 %v4379_v59 }
 0x2a8   : > { %v3220_v44 = vadd.f32 %v7103_v52, %v8844_v2  ;;  %v3211_v17 = vpop.f32.mrb[223].mxu1  ;;  %7401 = vmatmul.mubr.bf16.gmra.mrb[216].mxu0 %v4380_v51  ;;  %v4133_v34 = vmax.f32 %v3217_v35, 0.0 }
 0x2a9   : > { %v3212_v4 = vadd.f32 %v8844_v2, %v3211_v17  ;;  %v4131_v7 = vmax.f32 %v3209_v14, 0.0 }
 0x2aa   : > { %v4134_v41 = vmax.f32 %v3220_v44, 0.0  ;;  %7209 = vmatmul.mubr.bf16.gmra.mrb[72].mxu1 %v8377_v62  ;;  %v10206_v44 = vld [vmem:[#allocation3_spill] sm:$0xff] }
 0x2ab   : > { %v4132_v21 = vmax.f32 %v3212_v4, 0.0  ;;  %7212 = vmatprep.mubr.bf16.mxu1 %v8398_v5 }
 0x2ac   : > { %v4382_v49 = vpack.c.bf16 %v4134_v41, %v4133_v34  ;;  %v10207_v34 = vld [vmem:[#allocation6_spill] sm:$0xff] }
 0x2ad   : > { %v4381_v26 = vpack.c.bf16 %v4132_v21, %v4131_v7  ;;  %v7106_v42 = vpop.f32.mrb[224].mxu1 }
 0x2ae   : > { %v3233_v63 = vadd.f32 %v7106_v42, %v8844_v2  ;;  %v3224_v40 = vpop.f32.mrb[225].mxu1 }
 0x2af   : > { %v3225_v13 = vadd.f32 %v8844_v2, %v3224_v40  ;;  %v7107_v53 = vpop.f32.mrb[226].mxu1  ;;  %7404 = vmatprep.mubr.bf16.mxu0 %v4381_v26 }
 0x2b0   : > { %v3236_v54 = vadd.f32 %v7107_v53, %v8844_v2  ;;  %v3227_v55 = vpop.f32.mrb[227].mxu1  ;;  %7405 = vmatmul.mubr.bf16.gmra.mrb[220].mxu0 %v4382_v49  ;;  %v4137_v32 = vmax.f32 %v3233_v63, 0.0 }
 0x2b1   : > { %v3228_v62 = vadd.f32 %v8844_v2, %v3227_v55  ;;  %v4135_v5 = vmax.f32 %v3225_v13, 0.0 }
 0x2b2   : > { %v4138_v11 = vmax.f32 %v3236_v54, 0.0  ;;  %7213 = vmatmul.mubr.bf16.gmra.mrb[76].mxu1 %v8395_v60 }
 0x2b3   : > { %v4136_v25 = vmax.f32 %v3228_v62, 0.0  ;;  %7216 = vmatprep.mubr.bf16.mxu1 %v8419_v16  ;;  %v10208_v62 = vld [vmem:[#allocation5_spill] sm:$0xff] }
 0x2b4   : > { %v4384_v0 = vpack.c.bf16 %v4138_v11, %v4137_v32 }
 0x2b5   : > { %v4383_v19 = vpack.c.bf16 %v4136_v25, %v4135_v5  ;;  %v7110_v39 = vpop.f32.mrb[228].mxu1  ;;  %v10209_v5 = vld [vmem:[#allocation8_spill] sm:$0xff] }
 0x2b6   : > { %v3249_v22 = vadd.f32 %v7110_v39, %v8844_v2  ;;  %v3240_v45 = vpop.f32.mrb[229].mxu1 }
 0x2b7   : > { %v3241_v29 = vadd.f32 %v8844_v2, %v3240_v45  ;;  %v7111_v46 = vpop.f32.mrb[230].mxu1  ;;  %7408 = vmatprep.mubr.bf16.mxu0 %v4383_v19 }
 0x2b8   : > { %v3252_v43 = vadd.f32 %v7111_v46, %v8844_v2  ;;  %v3243_v33 = vpop.f32.mrb[231].mxu1  ;;  %7409 = vmatmul.mubr.bf16.gmra.mrb[224].mxu0 %v4384_v0  ;;  %v4141_v50 = vmax.f32 %v3249_v22, 0.0 }
 0x2b9   : > { %v3244_v60 = vadd.f32 %v8844_v2, %v3243_v33  ;;  %v4139_v16 = vmax.f32 %v3241_v29, 0.0 }
 0x2ba   : > { %v4142_v37 = vmax.f32 %v3252_v43, 0.0  ;;  %7217 = vmatmul.mubr.bf16.gmra.mrb[80].mxu1 %v8413_v61 }
 0x2bb   : > { %v4140_v57 = vmax.f32 %v3244_v60, 0.0  ;;  %7220 = vmatprep.mubr.bf16.mxu1 %v8442_v8 }
 0x2bc   : > { %v4386_v10 = vpack.c.bf16 %v4142_v37, %v4141_v50  ;;  %v10210_v37 = vld [vmem:[#allocation7_spill] sm:$0xff] }
 0x2bd   : > { %v4385_v3 = vpack.c.bf16 %v4140_v57, %v4139_v16  ;;  %v7114_v28 = vpop.f32.mrb[232].mxu1 }
 0x2be   : > { %v3265_v18 = vadd.f32 %v7114_v28, %v8844_v2  ;;  %v3256_v58 = vpop.f32.mrb[233].mxu1 }
 0x2bf   : > { %v3257_v15 = vadd.f32 %v8844_v2, %v3256_v58  ;;  %v7115_v56 = vpop.f32.mrb[234].mxu1  ;;  %7412 = vmatprep.mubr.bf16.mxu0 %v4385_v3 }
 0x2c0   : > { %v3268_v36 = vadd.f32 %v7115_v56, %v8844_v2  ;;  %v3259_v24 = vpop.f32.mrb[235].mxu1  ;;  %7413 = vmatmul.mubr.bf16.gmra.mrb[228].mxu0 %v4386_v10  ;;  %v4145_v12 = vmax.f32 %v3265_v18, 0.0  ;;  %v10211_v10 = vld [vmem:[#allocation10_spill] sm:$0xff] }
 0x2c1   : > { %v3260_v61 = vadd.f32 %v8844_v2, %v3259_v24  ;;  %v4143_v8 = vmax.f32 %v3257_v15, 0.0 }
 0x2c2   : > { %v4146_v48 = vmax.f32 %v3268_v36, 0.0  ;;  %7221 = vmatmul.mubr.bf16.gmra.mrb[84].mxu1 %v10204_v30 }
 0x2c3   : > { %v4144_v31 = vmax.f32 %v3260_v61, 0.0  ;;  %7224 = vmatprep.mubr.bf16.mxu1 %v10205_v23 }
 0x2c4   : > { %v4388_v9 = vpack.c.bf16 %v4146_v48, %v4145_v12 }
 0x2c5   : > { %v4387_v27 = vpack.c.bf16 %v4144_v31, %v4143_v8  ;;  %v7118_v47 = vpop.f32.mrb[236].mxu1  ;;  %v10212_v8 = vld [vmem:[#allocation9_spill] sm:$0xff] }
 0x2c6   : > { %v3281_v38 = vadd.f32 %v7118_v47, %v8844_v2  ;;  %v3272_v20 = vpop.f32.mrb[237].mxu1 }
 0x2c7   : > { %v3273_v51 = vadd.f32 %v8844_v2, %v3272_v20  ;;  %v7119_v59 = vpop.f32.mrb[238].mxu1  ;;  %7416 = vmatprep.mubr.bf16.mxu0 %v4387_v27  ;;  %v9030_v20 = vld [vmem:[%s10155_s4] ss:$0 sm:$0xff] }
 0x2c8   : > { %v3284_v6 = vadd.f32 %v7119_v59, %v8844_v2  ;;  %v3275_v35 = vpop.f32.mrb[239].mxu1  ;;  %7417 = vmatmul.mubr.bf16.gmra.mrb[232].mxu0 %v4388_v9  ;;  %v4149_v14 = vmax.f32 %v3281_v38, 0.0  ;;  %v10213_v9 = vld [vmem:[#allocation12_spill] sm:$0xff] }
 0x2c9   : > { %v3276_v1 = vadd.f32 %v8844_v2, %v3275_v35  ;;  %v4147_v17 = vmax.f32 %v3273_v51, 0.0 }
 0x2ca   : > { %v4150_v52 = vmax.f32 %v3284_v6, 0.0  ;;  %7225 = vmatmul.mubr.bf16.gmra.mrb[88].mxu1 %v10206_v44 }
 0x2cb   : > { %v4148_v4 = vmax.f32 %v3276_v1, 0.0  ;;  %7228 = vmatprep.mubr.bf16.mxu1 %v10207_v34 }
 0x2cc   : > { %v4390_v41 = vpack.c.bf16 %v4150_v52, %v4149_v14  ;;  %v9039_v52 = vld [vmem:[%s10157_s6] ss:$0 sm:$0xff] }
 0x2cd   : > { %v4389_v7 = vpack.c.bf16 %v4148_v4, %v4147_v17  ;;  %v7122_v21 = vpop.f32.mrb[240].mxu1  ;;  %v10214_v4 = vld [vmem:[#allocation11_spill] sm:$0xff] }
 0x2ce   : > { %v3297_v49 = vadd.f32 %v7122_v21, %v8844_v2  ;;  %v3288_v26 = vpop.f32.mrb[241].mxu1 }
 0x2cf   : > { %v3289_v42 = vadd.f32 %v8844_v2, %v3288_v26  ;;  %v7123_v63 = vpop.f32.mrb[242].mxu1  ;;  %7420 = vmatprep.mubr.bf16.mxu0 %v4389_v7  ;;  %v10215_v7 = vld [vmem:[#allocation14_spill] sm:$0xff] }
 0x2d0   : > { %v3300_v40 = vadd.f32 %v7123_v63, %v8844_v2  ;;  %v3291_v13 = vpop.f32.mrb[243].mxu1  ;;  %7421 = vmatmul.mubr.bf16.gmra.mrb[236].mxu0 %v4390_v41  ;;  %v4153_v54 = vmax.f32 %v3297_v49, 0.0 }
 0x2d1   : > { %v3292_v53 = vadd.f32 %v8844_v2, %v3291_v13  ;;  %v4151_v32 = vmax.f32 %v3289_v42, 0.0 }
 0x2d2   : > { %v4154_v55 = vmax.f32 %v3300_v40, 0.0  ;;  %7229 = vmatmul.mubr.bf16.gmra.mrb[92].mxu1 %v10208_v62 }
 0x2d3   : > { %v4152_v11 = vmax.f32 %v3292_v53, 0.0  ;;  %7232 = vmatprep.mubr.bf16.mxu1 %v10209_v5 }
 0x2d4   : > { %v4392_v25 = vpack.c.bf16 %v4154_v55, %v4153_v54 }
 0x2d5   : > { %v4391_v0 = vpack.c.bf16 %v4152_v11, %v4151_v32  ;;  %v7126_v19 = vpop.f32.mrb[244].mxu1 }
 0x2d6   : > { %v3313_v39 = vadd.f32 %v7126_v19, %v8844_v2  ;;  %v3304_v22 = vpop.f32.mrb[245].mxu1 }
 0x2d7   : > { %v3305_v45 = vadd.f32 %v8844_v2, %v3304_v22  ;;  %v7127_v29 = vpop.f32.mrb[246].mxu1  ;;  %7424 = vmatprep.mubr.bf16.mxu0 %v4391_v0 }
 0x2d8   : > { %v3316_v46 = vadd.f32 %v7127_v29, %v8844_v2  ;;  %v3307_v43 = vpop.f32.mrb[247].mxu1  ;;  %7425 = vmatmul.mubr.bf16.gmra.mrb[240].mxu0 %v4392_v25  ;;  %v4157_v60 = vmax.f32 %v3313_v39, 0.0  ;;  %v10216_v29 = vld [vmem:[#allocation13_spill] sm:$0xff] }
 0x2d9   : > { %v3308_v33 = vadd.f32 %v8844_v2, %v3307_v43  ;;  %v4155_v16 = vmax.f32 %v3305_v45, 0.0 }
 0x2da   : > { %v4158_v50 = vmax.f32 %v3316_v46, 0.0  ;;  %7233 = vmatmul.mubr.bf16.gmra.mrb[96].mxu1 %v10210_v37 }
 0x2db   : > { %v4156_v57 = vmax.f32 %v3308_v33, 0.0  ;;  %7236 = vmatprep.mubr.bf16.mxu1 %v10211_v10  ;;  %v10217_v33 = vld [vmem:[#allocation16_spill] sm:$0xff] }
 0x2dc   : > { %v4394_v3 = vpack.c.bf16 %v4158_v50, %v4157_v60 }
 0x2dd   : > { %v4393_v28 = vpack.c.bf16 %v4156_v57, %v4155_v16  ;;  %v7130_v18 = vpop.f32.mrb[248].mxu1 }
 0x2de   : > { %v3329_v58 = vadd.f32 %v7130_v18, %v8844_v2  ;;  %v3320_v15 = vpop.f32.mrb[249].mxu1 }
 0x2df   : > { %v3321_v56 = vadd.f32 %v8844_v2, %v3320_v15  ;;  %v7131_v36 = vpop.f32.mrb[250].mxu1  ;;  %7428 = vmatprep.mubr.bf16.mxu0 %v4393_v28 }
 0x2e0   : > { %v3332_v24 = vadd.f32 %v7131_v36, %v8844_v2  ;;  %v3323_v61 = vpop.f32.mrb[251].mxu1  ;;  %7429 = vmatmul.mubr.bf16.gmra.mrb[244].mxu0 %v4394_v3  ;;  %v4161_v48 = vmax.f32 %v3329_v58, 0.0 }
 0x2e1   : > { %v3324_v12 = vadd.f32 %v8844_v2, %v3323_v61  ;;  %v4159_v31 = vmax.f32 %v3321_v56, 0.0 }
 0x2e2   : > { %v4162_v30 = vmax.f32 %v3332_v24, 0.0  ;;  %7237 = vmatmul.mubr.bf16.gmra.mrb[100].mxu1 %v10212_v8 }
 0x2e3   : > { %v4160_v23 = vmax.f32 %v3324_v12, 0.0  ;;  %7240 = vmatprep.mubr.bf16.mxu1 %v10213_v9 }
 0x2e4   : > { %v4396_v27 = vpack.c.bf16 %v4162_v30, %v4161_v48 }
 0x2e5   : > { %v4395_v47 = vpack.c.bf16 %v4160_v23, %v4159_v31  ;;  %v7134_v38 = vpop.f32.mrb[252].mxu1  ;;  %v10218_v23 = vld [vmem:[#allocation15_spill] sm:$0xff] }
 0x2e6   : > { %v3345_v51 = vadd.f32 %v9030_v20, %v7134_v38  ;;  %v3336_v2 = vpop.f32.mrb[253].mxu1 }
 0x2e7   : > { %v3337_v59 = vadd.f32 %v9030_v20, %v3336_v2  ;;  %v7135_v6 = vpop.f32.mrb[254].mxu1  ;;  %7432 = vmatprep.mubr.bf16.mxu0 %v4395_v47  ;;  %v10219_v47 = vld [vmem:[#allocation18_spill] sm:$0xff] }
 0x2e8   : > { %v3348_v35 = vadd.f32 %v9030_v20, %v7135_v6  ;;  %v3339_v1 = vpop.f32.mrb[255].mxu1  ;;  %7433 = vmatmul.mubr.bf16.gmra.mrb[248].mxu0 %v4396_v27  ;;  %v4165_v44 = vmax.f32 %v3345_v51, 0.0 }
 0x2e9   : > { %v3340_v14 = vadd.f32 %v9030_v20, %v3339_v1  ;;  %v4163_v34 = vmax.f32 %v3337_v59, 0.0 }
 0x2ea   : > { %v4166_v17 = vmax.f32 %v3348_v35, 0.0  ;;  %7241 = vmatmul.mubr.bf16.gmra.mrb[104].mxu1 %v10214_v4 }
 0x2eb   : > { %v4164_v41 = vmax.f32 %v3340_v14, 0.0  ;;  %7244 = vmatprep.mubr.bf16.mxu1 %v10215_v7  ;;  %v7330_v21 = vpop.f32.mrb[144].mxu0 }
 0x2ec   : > { %v4398_v49 = vpack.c.bf16 %v4166_v17, %v4165_v44  ;;  %v4601_v26 = vadd.f32 %v7330_v21, %v9039_v52  ;;  %v4592_v42 = vpop.f32.mrb[145].mxu0 }
 0x2ed   : > { %v4397_v63 = vpack.c.bf16 %v4164_v41, %v4163_v34  ;;  %v4593_v40 = vadd.f32 %v9039_v52, %v4592_v42  ;;  %v7138_v13 = vpop.f32.mrb[0].mxu1  ;;  %v7331_v53 = vpop.f32.mrb[146].mxu0 }
 0x2ee   : > { %5746 = vst.msk [vmem:[%s9047_s21 + $0x10] sm:$0xff] %vm5743_vm3, %v4601_v26  ;;  %v3361_v54 = vadd.f32 %v9030_v20, %v7138_v13  ;;  %v4604_v55 = vadd.f32 %v7331_v53, %v9039_v52  ;;  %v3352_v62 = vpop.f32.mrb[1].mxu1  ;;  %v4595_v32 = vpop.f32.mrb[147].mxu0  ;;  %v10220_v13 = vld [vmem:[#allocation17_spill] sm:$0xff] }
 0x2ef   : > { %5744 = vst.msk [vmem:[%s9047_s21] sm:$0xff] %vm5743_vm3, %v4593_v40  ;;  %v3353_v11 = vadd.f32 %v9030_v20, %v3352_v62  ;;  %v4596_v5 = vadd.f32 %v9039_v52, %v4595_v32  ;;  %v7139_v25 = vpop.f32.mrb[2].mxu1  ;;  %7436 = vmatprep.mubr.bf16.mxu0 %v4397_v63 }
 0x2f0   : > { %5747 = vst.msk [vmem:[%s9047_s21 + $0x18] sm:$0xff] %vm5743_vm3, %v4604_v55  ;;  %v3364_v0 = vadd.f32 %v9030_v20, %v7139_v25  ;;  %v3355_v19 = vpop.f32.mrb[3].mxu1  ;;  %7437 = vmatmul.mubr.bf16.gmra.mrb[252].mxu0 %v4398_v49  ;;  %v4169_v22 = vmax.f32 %v3361_v54, 0.0  ;;  %v10221_v55 = vld [vmem:[#allocation20_spill] sm:$0xff] }
 0x2f1   : > { %5745 = vst.msk [vmem:[%s9047_s21 + $0x8] sm:$0xff] %vm5743_vm3, %v4596_v5  ;;  %v3356_v39 = vadd.f32 %v9030_v20, %v3355_v19  ;;  %v4167_v46 = vmax.f32 %v3353_v11, 0.0 }
 0x2f2   : > { %v4170_v45 = vmax.f32 %v3364_v0, 0.0  ;;  %7245 = vmatmul.mubr.bf16.gmra.mrb[108].mxu1 %v10216_v29 }
 0x2f3   : > { %v4168_v43 = vmax.f32 %v3356_v39, 0.0  ;;  %7248 = vmatprep.mubr.bf16.mxu1 %v10217_v33  ;;  %v7334_v60 = vpop.f32.mrb[148].mxu0 }
 0x2f4   : > { %v4400_v50 = vpack.c.bf16 %v4170_v45, %v4169_v22  ;;  %v4617_v37 = vadd.f32 %v7334_v60, %v9039_v52  ;;  %v4608_v16 = vpop.f32.mrb[149].mxu0 }
 0x2f5   : > { %v4399_v57 = vpack.c.bf16 %v4168_v43, %v4167_v46  ;;  %v4609_v10 = vadd.f32 %v9039_v52, %v4608_v16  ;;  %v7142_v3 = vpop.f32.mrb[4].mxu1  ;;  %v7335_v28 = vpop.f32.mrb[150].mxu0 }
 0x2f6   : > { %5750 = vst.msk [vmem:[%s9047_s21 + $0x30] sm:$0xff] %vm5743_vm3, %v4617_v37  ;;  %v3377_v18 = vadd.f32 %v9030_v20, %v7142_v3  ;;  %v4620_v58 = vadd.f32 %v7335_v28, %v9039_v52  ;;  %v3368_v15 = vpop.f32.mrb[5].mxu1  ;;  %v4611_v56 = vpop.f32.mrb[151].mxu0  ;;  %v10222_v3 = vld [vmem:[#allocation19_spill] sm:$0xff] }
 0x2f7   : > { %5748 = vst.msk [vmem:[%s9047_s21 + $0x20] sm:$0xff] %vm5743_vm3, %v4609_v10  ;;  %v3369_v36 = vadd.f32 %v9030_v20, %v3368_v15  ;;  %v4612_v24 = vadd.f32 %v9039_v52, %v4611_v56  ;;  %v7143_v61 = vpop.f32.mrb[6].mxu1  ;;  %7440 = vmatprep.mubr.bf16.mxu0 %v4399_v57 }
 0x2f8   : > { %5751 = vst.msk [vmem:[%s9047_s21 + $0x38] sm:$0xff] %vm5743_vm3, %v4620_v58  ;;  %v3380_v12 = vadd.f32 %v9030_v20, %v7143_v61  ;;  %v3371_v48 = vpop.f32.mrb[7].mxu1  ;;  %7441 = vmatmul.mubr.bf16.gmra.mrb[0].mxu0 %v4400_v50  ;;  %v4173_v8 = vmax.f32 %v3377_v18, 0.0  ;;  %v10223_v58 = vld [vmem:[#allocation22_spill] sm:$0xff] }
 0x2f9   : > { %5749 = vst.msk [vmem:[%s9047_s21 + $0x28] sm:$0xff] %vm5743_vm3, %v4612_v24  ;;  %v3372_v30 = vadd.f32 %v9030_v20, %v3371_v48  ;;  %v4171_v9 = vmax.f32 %v3369_v36, 0.0 }
 0x2fa   : > { %v4174_v31 = vmax.f32 %v3380_v12, 0.0  ;;  %7249 = vmatmul.mubr.bf16.gmra.mrb[112].mxu1 %v10218_v23 }
 0x2fb   : > { %v4172_v27 = vmax.f32 %v3372_v30, 0.0  ;;  %7252 = vmatprep.mubr.bf16.mxu1 %v10219_v47  ;;  %v7338_v38 = vpop.f32.mrb[152].mxu0 }
 0x2fc   : > { %v4402_v51 = vpack.c.bf16 %v4174_v31, %v4173_v8  ;;  %v4633_v2 = vadd.f32 %v7338_v38, %v9039_v52  ;;  %v4624_v59 = vpop.f32.mrb[153].mxu0 }
 0x2fd   : > { %v4401_v6 = vpack.c.bf16 %v4172_v27, %v4171_v9  ;;  %v4625_v35 = vadd.f32 %v9039_v52, %v4624_v59  ;;  %v7146_v1 = vpop.f32.mrb[8].mxu1  ;;  %v7339_v14 = vpop.f32.mrb[154].mxu0 }
 0x2fe   : > { %5754 = vst.msk [vmem:[%s9047_s21 + $0x50] sm:$0xff] %vm5743_vm3, %v4633_v2  ;;  %v3393_v44 = vadd.f32 %v9030_v20, %v7146_v1  ;;  %v4636_v17 = vadd.f32 %v7339_v14, %v9039_v52  ;;  %v3384_v4 = vpop.f32.mrb[9].mxu1  ;;  %v4627_v34 = vpop.f32.mrb[155].mxu0  ;;  %v10224_v1 = vld [vmem:[#allocation21_spill] sm:$0xff] }
 0x2ff   : > { %5752 = vst.msk [vmem:[%s9047_s21 + $0x40] sm:$0xff] %vm5743_vm3, %v4625_v35  ;;  %v3385_v41 = vadd.f32 %v9030_v20, %v3384_v4  ;;  %v4628_v7 = vadd.f32 %v9039_v52, %v4627_v34  ;;  %v7147_v21 = vpop.f32.mrb[10].mxu1  ;;  %7444 = vmatprep.mubr.bf16.mxu0 %v4401_v6 }
 0x300   : > { %5755 = vst.msk [vmem:[%s9047_s21 + $0x58] sm:$0xff] %vm5743_vm3, %v4636_v17  ;;  %v3396_v49 = vadd.f32 %v9030_v20, %v7147_v21  ;;  %v3387_v26 = vpop.f32.mrb[11].mxu1  ;;  %7445 = vmatmul.mubr.bf16.gmra.mrb[4].mxu0 %v4402_v51  ;;  %v4177_v63 = vmax.f32 %v3393_v44, 0.0  ;;  %v10225_v17 = vld [vmem:[#allocation24_spill] sm:$0xff] }
 0x301   : > { %5753 = vst.msk [vmem:[%s9047_s21 + $0x48] sm:$0xff] %vm5743_vm3, %v4628_v7  ;;  %v3388_v42 = vadd.f32 %v9030_v20, %v3387_v26  ;;  %v4175_v53 = vmax.f32 %v3385_v41, 0.0 }
 0x302   : > { %v4178_v40 = vmax.f32 %v3396_v49, 0.0  ;;  %7253 = vmatmul.mubr.bf16.gmra.mrb[116].mxu1 %v10220_v13 }
 0x303   : > { %v4176_v54 = vmax.f32 %v3388_v42, 0.0  ;;  %7256 = vmatprep.mubr.bf16.mxu1 %v10221_v55  ;;  %v7342_v62 = vpop.f32.mrb[156].mxu0 }
 0x304   : > { %v4404_v32 = vpack.c.bf16 %v4178_v40, %v4177_v63  ;;  %v4649_v11 = vadd.f32 %v7342_v62, %v9039_v52  ;;  %v4640_v5 = vpop.f32.mrb[157].mxu0 }
 0x305   : > { %v4403_v25 = vpack.c.bf16 %v4176_v54, %v4175_v53  ;;  %v4641_v0 = vadd.f32 %v9039_v52, %v4640_v5  ;;  %v7150_v19 = vpop.f32.mrb[12].mxu1  ;;  %v7343_v39 = vpop.f32.mrb[158].mxu0 }
 0x306   : > { %5758 = vst.msk [vmem:[%s9047_s21 + $0x70] sm:$0xff] %vm5743_vm3, %v4649_v11  ;;  %v3409_v22 = vadd.f32 %v9030_v20, %v7150_v19  ;;  %v4652_v45 = vadd.f32 %v7343_v39, %v9039_v52  ;;  %v3400_v29 = vpop.f32.mrb[13].mxu1  ;;  %v4643_v46 = vpop.f32.mrb[159].mxu0  ;;  %v10226_v19 = vld [vmem:[#allocation23_spill] sm:$0xff] }
 0x307   : > { %5756 = vst.msk [vmem:[%s9047_s21 + $0x60] sm:$0xff] %vm5743_vm3, %v4641_v0  ;;  %v3401_v43 = vadd.f32 %v9030_v20, %v3400_v29  ;;  %v4644_v33 = vadd.f32 %v9039_v52, %v4643_v46  ;;  %v7151_v60 = vpop.f32.mrb[14].mxu1  ;;  %7448 = vmatprep.mubr.bf16.mxu0 %v4403_v25 }
 0x308   : > { %5759 = vst.msk [vmem:[%s9047_s21 + $0x78] sm:$0xff] %vm5743_vm3, %v4652_v45  ;;  %v3412_v50 = vadd.f32 %v9030_v20, %v7151_v60  ;;  %v3403_v37 = vpop.f32.mrb[15].mxu1  ;;  %7449 = vmatmul.mubr.bf16.gmra.mrb[8].mxu0 %v4404_v32  ;;  %v4181_v57 = vmax.f32 %v3409_v22, 0.0  ;;  %v10227_v45 = vld [vmem:[#allocation26_spill] sm:$0xff] }
 0x309   : > { %5757 = vst.msk [vmem:[%s9047_s21 + $0x68] sm:$0xff] %vm5743_vm3, %v4644_v33  ;;  %v3404_v16 = vadd.f32 %v9030_v20, %v3403_v37  ;;  %v4179_v28 = vmax.f32 %v3401_v43, 0.0 }
 0x30a   : > { %v4182_v10 = vmax.f32 %v3412_v50, 0.0  ;;  %7257 = vmatmul.mubr.bf16.gmra.mrb[120].mxu1 %v10222_v3 }
 0x30b   : > { %v4180_v18 = vmax.f32 %v3404_v16, 0.0  ;;  %7260 = vmatprep.mubr.bf16.mxu1 %v10223_v58  ;;  %v7346_v15 = vpop.f32.mrb[160].mxu0 }
 0x30c   : > { %v4406_v56 = vpack.c.bf16 %v4182_v10, %v4181_v57  ;;  %v4665_v36 = vadd.f32 %v7346_v15, %v9039_v52  ;;  %v4656_v24 = vpop.f32.mrb[161].mxu0 }
 0x30d   : > { %v4405_v61 = vpack.c.bf16 %v4180_v18, %v4179_v28  ;;  %v4657_v12 = vadd.f32 %v9039_v52, %v4656_v24  ;;  %v7154_v48 = vpop.f32.mrb[16].mxu1  ;;  %v7347_v30 = vpop.f32.mrb[162].mxu0 }
 0x30e   : > { %5762 = vst.msk [vmem:[%s9047_s21 + $0x90] sm:$0xff] %vm5743_vm3, %v4665_v36  ;;  %v3425_v8 = vadd.f32 %v9030_v20, %v7154_v48  ;;  %v4668_v31 = vadd.f32 %v7347_v30, %v9039_v52  ;;  %v3416_v23 = vpop.f32.mrb[17].mxu1  ;;  %v4659_v9 = vpop.f32.mrb[163].mxu0  ;;  %v10228_v48 = vld [vmem:[#allocation25_spill] sm:$0xff] }
 0x30f   : > { %5760 = vst.msk [vmem:[%s9047_s21 + $0x80] sm:$0xff] %vm5743_vm3, %v4657_v12  ;;  %v3417_v27 = vadd.f32 %v9030_v20, %v3416_v23  ;;  %v4660_v47 = vadd.f32 %v9039_v52, %v4659_v9  ;;  %v7155_v38 = vpop.f32.mrb[18].mxu1  ;;  %7452 = vmatprep.mubr.bf16.mxu0 %v4405_v61 }
 0x310   : > { %5763 = vst.msk [vmem:[%s9047_s21 + $0x98] sm:$0xff] %vm5743_vm3, %v4668_v31  ;;  %v3428_v51 = vadd.f32 %v9030_v20, %v7155_v38  ;;  %v3419_v2 = vpop.f32.mrb[19].mxu1  ;;  %7453 = vmatmul.mubr.bf16.gmra.mrb[12].mxu0 %v4406_v56  ;;  %v4185_v6 = vmax.f32 %v3425_v8, 0.0  ;;  %v10229_v31 = vld [vmem:[#allocation28_spill] sm:$0xff] }
 0x311   : > { %5761 = vst.msk [vmem:[%s9047_s21 + $0x88] sm:$0xff] %vm5743_vm3, %v4660_v47  ;;  %v3420_v59 = vadd.f32 %v9030_v20, %v3419_v2  ;;  %v4183_v14 = vmax.f32 %v3417_v27, 0.0 }
 0x312   : > { %v4186_v35 = vmax.f32 %v3428_v51, 0.0  ;;  %7261 = vmatmul.mubr.bf16.gmra.mrb[124].mxu1 %v10224_v1 }
 0x313   : > { %v4184_v44 = vmax.f32 %v3420_v59, 0.0  ;;  %7264 = vmatprep.mubr.bf16.mxu1 %v10225_v17  ;;  %v7350_v4 = vpop.f32.mrb[164].mxu0 }
 0x314   : > { %v4408_v34 = vpack.c.bf16 %v4186_v35, %v4185_v6  ;;  %v4681_v41 = vadd.f32 %v7350_v4, %v9039_v52  ;;  %v4672_v7 = vpop.f32.mrb[165].mxu0 }
 0x315   : > { %v4407_v21 = vpack.c.bf16 %v4184_v44, %v4183_v14  ;;  %v4673_v49 = vadd.f32 %v9039_v52, %v4672_v7  ;;  %v7158_v26 = vpop.f32.mrb[20].mxu1  ;;  %v7351_v42 = vpop.f32.mrb[166].mxu0 }
 0x316   : > { %5766 = vst.msk [vmem:[%s9047_s21 + $0xb0] sm:$0xff] %vm5743_vm3, %v4681_v41  ;;  %v3441_v63 = vadd.f32 %v9030_v20, %v7158_v26  ;;  %v4684_v40 = vadd.f32 %v7351_v42, %v9039_v52  ;;  %v3432_v13 = vpop.f32.mrb[21].mxu1  ;;  %v4675_v53 = vpop.f32.mrb[167].mxu0  ;;  %v10230_v26 = vld [vmem:[#allocation27_spill] sm:$0xff] }
 0x317   : > { %5764 = vst.msk [vmem:[%s9047_s21 + $0xa0] sm:$0xff] %vm5743_vm3, %v4673_v49  ;;  %v3433_v54 = vadd.f32 %v9030_v20, %v3432_v13  ;;  %v4676_v55 = vadd.f32 %v9039_v52, %v4675_v53  ;;  %v7159_v62 = vpop.f32.mrb[22].mxu1  ;;  %7456 = vmatprep.mubr.bf16.mxu0 %v4407_v21 }
 0x318   : > { %5767 = vst.msk [vmem:[%s9047_s21 + $0xb8] sm:$0xff] %vm5743_vm3, %v4684_v40  ;;  %v3444_v32 = vadd.f32 %v9030_v20, %v7159_v62  ;;  %v3435_v11 = vpop.f32.mrb[23].mxu1  ;;  %7457 = vmatmul.mubr.bf16.gmra.mrb[16].mxu0 %v4408_v34  ;;  %v4189_v25 = vmax.f32 %v3441_v63, 0.0  ;;  %v10231_v40 = vld [vmem:[#allocation30_spill] sm:$0xff] }
 0x319   : > { %5765 = vst.msk [vmem:[%s9047_s21 + $0xa8] sm:$0xff] %vm5743_vm3, %v4676_v55  ;;  %v3436_v5 = vadd.f32 %v9030_v20, %v3435_v11  ;;  %v4187_v39 = vmax.f32 %v3433_v54, 0.0 }
 0x31a   : > { %v4190_v0 = vmax.f32 %v3444_v32, 0.0  ;;  %7265 = vmatmul.mubr.bf16.gmra.mrb[128].mxu1 %v10226_v19 }
 0x31b   : > { %v4188_v22 = vmax.f32 %v3436_v5, 0.0  ;;  %7268 = vmatprep.mubr.bf16.mxu1 %v10227_v45  ;;  %v7354_v29 = vpop.f32.mrb[168].mxu0 }
 0x31c   : > { %v4410_v46 = vpack.c.bf16 %v4190_v0, %v4189_v25  ;;  %v4697_v43 = vadd.f32 %v7354_v29, %v9039_v52  ;;  %v4688_v33 = vpop.f32.mrb[169].mxu0 }
 0x31d   : > { %v4409_v60 = vpack.c.bf16 %v4188_v22, %v4187_v39  ;;  %v4689_v50 = vadd.f32 %v9039_v52, %v4688_v33  ;;  %v7162_v37 = vpop.f32.mrb[24].mxu1  ;;  %v7355_v16 = vpop.f32.mrb[170].mxu0 }
 0x31e   : > { %5770 = vst.msk [vmem:[%s9047_s21 + $0xd0] sm:$0xff] %vm5743_vm3, %v4697_v43  ;;  %v3457_v57 = vadd.f32 %v9030_v20, %v7162_v37  ;;  %v4700_v10 = vadd.f32 %v7355_v16, %v9039_v52  ;;  %v3448_v3 = vpop.f32.mrb[25].mxu1  ;;  %v4691_v28 = vpop.f32.mrb[171].mxu0  ;;  %v10232_v37 = vld [vmem:[#allocation29_spill] sm:$0xff] }
 0x31f   : > { %5768 = vst.msk [vmem:[%s9047_s21 + $0xc0] sm:$0xff] %vm5743_vm3, %v4689_v50  ;;  %v3449_v18 = vadd.f32 %v9030_v20, %v3448_v3  ;;  %v4692_v58 = vadd.f32 %v9039_v52, %v4691_v28  ;;  %v7163_v15 = vpop.f32.mrb[26].mxu1  ;;  %7460 = vmatprep.mubr.bf16.mxu0 %v4409_v60 }
 0x320   : > { %5771 = vst.msk [vmem:[%s9047_s21 + $0xd8] sm:$0xff] %vm5743_vm3, %v4700_v10  ;;  %v3460_v56 = vadd.f32 %v9030_v20, %v7163_v15  ;;  %v3451_v36 = vpop.f32.mrb[27].mxu1  ;;  %7461 = vmatmul.mubr.bf16.gmra.mrb[20].mxu0 %v4410_v46  ;;  %v4193_v61 = vmax.f32 %v3457_v57, 0.0  ;;  %v10233_v10 = vld [vmem:[#allocation32_spill] sm:$0xff] }
 0x321   : > { %5769 = vst.msk [vmem:[%s9047_s21 + $0xc8] sm:$0xff] %vm5743_vm3, %v4692_v58  ;;  %v3452_v24 = vadd.f32 %v9030_v20, %v3451_v36  ;;  %v4191_v30 = vmax.f32 %v3449_v18, 0.0 }
 0x322   : > { %v4194_v12 = vmax.f32 %v3460_v56, 0.0  ;;  %7269 = vmatmul.mubr.bf16.gmra.mrb[132].mxu1 %v10228_v48 }
 0x323   : > { %v4192_v8 = vmax.f32 %v3452_v24, 0.0  ;;  %7272 = vmatprep.mubr.bf16.mxu1 %v10229_v31  ;;  %v7358_v23 = vpop.f32.mrb[172].mxu0 }
 0x324   : > { %v4412_v9 = vpack.c.bf16 %v4194_v12, %v4193_v61  ;;  %v4713_v27 = vadd.f32 %v7358_v23, %v9039_v52  ;;  %v4704_v47 = vpop.f32.mrb[173].mxu0 }
 0x325   : > { %v4411_v38 = vpack.c.bf16 %v4192_v8, %v4191_v30  ;;  %v4705_v51 = vadd.f32 %v9039_v52, %v4704_v47  ;;  %v7166_v2 = vpop.f32.mrb[28].mxu1  ;;  %v7359_v59 = vpop.f32.mrb[174].mxu0 }
 0x326   : > { %5774 = vst.msk [vmem:[%s9047_s21 + $0xf0] sm:$0xff] %vm5743_vm3, %v4713_v27  ;;  %v3473_v6 = vadd.f32 %v9030_v20, %v7166_v2  ;;  %v4716_v35 = vadd.f32 %v7359_v59, %v9039_v52  ;;  %v3464_v1 = vpop.f32.mrb[29].mxu1  ;;  %v4707_v14 = vpop.f32.mrb[175].mxu0  ;;  %v10234_v2 = vld [vmem:[#allocation31_spill] sm:$0xff] }
 0x327   : > { %5772 = vst.msk [vmem:[%s9047_s21 + $0xe0] sm:$0xff] %vm5743_vm3, %v4705_v51  ;;  %v3465_v44 = vadd.f32 %v9030_v20, %v3464_v1  ;;  %v4708_v17 = vadd.f32 %v9039_v52, %v4707_v14  ;;  %v7167_v4 = vpop.f32.mrb[30].mxu1  ;;  %7464 = vmatprep.mubr.bf16.mxu0 %v4411_v38 }
 0x328   : > { %5775 = vst.msk [vmem:[%s9047_s21 + $0xf8] sm:$0xff] %vm5743_vm3, %v4716_v35  ;;  %v3476_v34 = vadd.f32 %v9030_v20, %v7167_v4  ;;  %v3467_v41 = vpop.f32.mrb[31].mxu1  ;;  %7465 = vmatmul.mubr.bf16.gmra.mrb[24].mxu0 %v4412_v9  ;;  %v4197_v21 = vmax.f32 %v3473_v6, 0.0  ;;  %v10235_v35 = vld [vmem:[#allocation34_spill] sm:$0xff] }
 0x329   : > { %5773 = vst.msk [vmem:[%s9047_s21 + $0xe8] sm:$0xff] %vm5743_vm3, %v4708_v17  ;;  %v3468_v7 = vadd.f32 %v9030_v20, %v3467_v41  ;;  %v4195_v42 = vmax.f32 %v3465_v44, 0.0 }
 0x32a   : > { %v4198_v49 = vmax.f32 %v3476_v34, 0.0  ;;  %7273 = vmatmul.mubr.bf16.gmra.mrb[136].mxu1 %v10230_v26 }
 0x32b   : > { %v4196_v63 = vmax.f32 %v3468_v7, 0.0  ;;  %7276 = vmatprep.mubr.bf16.mxu1 %v10231_v40  ;;  %v7362_v13 = vpop.f32.mrb[176].mxu0 }
 0x32c   : > { %v4414_v53 = vpack.c.bf16 %v4198_v49, %v4197_v21  ;;  %v4729_v54 = vadd.f32 %v7362_v13, %v9039_v52  ;;  %v4720_v55 = vpop.f32.mrb[177].mxu0 }
 0x32d   : > { %v4413_v62 = vpack.c.bf16 %v4196_v63, %v4195_v42  ;;  %v4721_v32 = vadd.f32 %v9039_v52, %v4720_v55  ;;  %v7170_v11 = vpop.f32.mrb[32].mxu1  ;;  %v7363_v5 = vpop.f32.mrb[178].mxu0 }
 0x32e   : > { %5778 = vst.msk [vmem:[%s9047_s21 + $0x110] sm:$0xff] %vm5743_vm3, %v4729_v54  ;;  %v3489_v25 = vadd.f32 %v9030_v20, %v7170_v11  ;;  %v4732_v0 = vadd.f32 %v7363_v5, %v9039_v52  ;;  %v3480_v19 = vpop.f32.mrb[33].mxu1  ;;  %v4723_v39 = vpop.f32.mrb[179].mxu0  ;;  %v10236_v11 = vld [vmem:[#allocation33_spill] sm:$0xff] }
 0x32f   : > { %5776 = vst.msk [vmem:[%s9047_s21 + $0x100] sm:$0xff] %vm5743_vm3, %v4721_v32  ;;  %v3481_v22 = vadd.f32 %v9030_v20, %v3480_v19  ;;  %v4724_v45 = vadd.f32 %v9039_v52, %v4723_v39  ;;  %v7171_v29 = vpop.f32.mrb[34].mxu1  ;;  %7468 = vmatprep.mubr.bf16.mxu0 %v4413_v62 }
 0x330   : > { %5779 = vst.msk [vmem:[%s9047_s21 + $0x118] sm:$0xff] %vm5743_vm3, %v4732_v0  ;;  %v3492_v46 = vadd.f32 %v9030_v20, %v7171_v29  ;;  %v3483_v43 = vpop.f32.mrb[35].mxu1  ;;  %7469 = vmatmul.mubr.bf16.gmra.mrb[28].mxu0 %v4414_v53  ;;  %v4201_v60 = vmax.f32 %v3489_v25, 0.0  ;;  %v10237_v0 = vld [vmem:[#allocation36_spill] sm:$0xff] }
 0x331   : > { %5777 = vst.msk [vmem:[%s9047_s21 + $0x108] sm:$0xff] %vm5743_vm3, %v4724_v45  ;;  %v3484_v33 = vadd.f32 %v9030_v20, %v3483_v43  ;;  %v4199_v16 = vmax.f32 %v3481_v22, 0.0 }
 0x332   : > { %v4202_v50 = vmax.f32 %v3492_v46, 0.0  ;;  %7277 = vmatmul.mubr.bf16.gmra.mrb[140].mxu1 %v10232_v37 }
 0x333   : > { %v4200_v57 = vmax.f32 %v3484_v33, 0.0  ;;  %7280 = vmatprep.mubr.bf16.mxu1 %v10233_v10  ;;  %v7366_v3 = vpop.f32.mrb[180].mxu0 }
 0x334   : > { %v4416_v28 = vpack.c.bf16 %v4202_v50, %v4201_v60  ;;  %v4745_v18 = vadd.f32 %v7366_v3, %v9039_v52  ;;  %v4736_v58 = vpop.f32.mrb[181].mxu0 }
 0x335   : > { %v4415_v15 = vpack.c.bf16 %v4200_v57, %v4199_v16  ;;  %v4737_v56 = vadd.f32 %v9039_v52, %v4736_v58  ;;  %v7174_v36 = vpop.f32.mrb[36].mxu1  ;;  %v7367_v24 = vpop.f32.mrb[182].mxu0 }
 0x336   : > { %5782 = vst.msk [vmem:[%s9047_s21 + $0x130] sm:$0xff] %vm5743_vm3, %v4745_v18  ;;  %v3505_v61 = vadd.f32 %v9030_v20, %v7174_v36  ;;  %v4748_v12 = vadd.f32 %v7367_v24, %v9039_v52  ;;  %v3496_v48 = vpop.f32.mrb[37].mxu1  ;;  %v4739_v30 = vpop.f32.mrb[183].mxu0  ;;  %v10238_v36 = vld [vmem:[#allocation35_spill] sm:$0xff] }
 0x337   : > { %5780 = vst.msk [vmem:[%s9047_s21 + $0x120] sm:$0xff] %vm5743_vm3, %v4737_v56  ;;  %v3497_v8 = vadd.f32 %v9030_v20, %v3496_v48  ;;  %v4740_v31 = vadd.f32 %v9039_v52, %v4739_v30  ;;  %v7175_v23 = vpop.f32.mrb[38].mxu1  ;;  %7472 = vmatprep.mubr.bf16.mxu0 %v4415_v15 }
 0x338   : > { %5783 = vst.msk [vmem:[%s9047_s21 + $0x138] sm:$0xff] %vm5743_vm3, %v4748_v12  ;;  %v3508_v9 = vadd.f32 %v9030_v20, %v7175_v23  ;;  %v3499_v27 = vpop.f32.mrb[39].mxu1  ;;  %7473 = vmatmul.mubr.bf16.gmra.mrb[32].mxu0 %v4416_v28  ;;  %v4205_v38 = vmax.f32 %v3505_v61, 0.0  ;;  %v10239_v12 = vld [vmem:[#allocation38_spill] sm:$0xff] }
 0x339   : > { %5781 = vst.msk [vmem:[%s9047_s21 + $0x128] sm:$0xff] %vm5743_vm3, %v4740_v31  ;;  %v3500_v47 = vadd.f32 %v9030_v20, %v3499_v27  ;;  %v4203_v59 = vmax.f32 %v3497_v8, 0.0 }
 0x33a   : > { %v4206_v51 = vmax.f32 %v3508_v9, 0.0  ;;  %7281 = vmatmul.mubr.bf16.gmra.mrb[144].mxu1 %v10234_v2 }
 0x33b   : > { %v4204_v6 = vmax.f32 %v3500_v47, 0.0  ;;  %7284 = vmatprep.mubr.bf16.mxu1 %v10235_v35  ;;  %v7370_v1 = vpop.f32.mrb[184].mxu0 }
 0x33c   : > { %v4418_v14 = vpack.c.bf16 %v4206_v51, %v4205_v38  ;;  %v4761_v44 = vadd.f32 %v7370_v1, %v9039_v52  ;;  %v4752_v17 = vpop.f32.mrb[185].mxu0 }
 0x33d   : > { %v4417_v4 = vpack.c.bf16 %v4204_v6, %v4203_v59  ;;  %v4753_v34 = vadd.f32 %v9039_v52, %v4752_v17  ;;  %v7178_v41 = vpop.f32.mrb[40].mxu1  ;;  %v7371_v7 = vpop.f32.mrb[186].mxu0 }
 0x33e   : > { %5786 = vst.msk [vmem:[%s9047_s21 + $0x150] sm:$0xff] %vm5743_vm3, %v4761_v44  ;;  %v3521_v21 = vadd.f32 %v9030_v20, %v7178_v41  ;;  %v4764_v49 = vadd.f32 %v7371_v7, %v9039_v52  ;;  %v3512_v26 = vpop.f32.mrb[41].mxu1  ;;  %v4755_v42 = vpop.f32.mrb[187].mxu0  ;;  %v10240_v41 = vld [vmem:[#allocation37_spill] sm:$0xff] }
 0x33f   : > { %5784 = vst.msk [vmem:[%s9047_s21 + $0x140] sm:$0xff] %vm5743_vm3, %v4753_v34  ;;  %v3513_v63 = vadd.f32 %v9030_v20, %v3512_v26  ;;  %v4756_v40 = vadd.f32 %v9039_v52, %v4755_v42  ;;  %v7179_v13 = vpop.f32.mrb[42].mxu1  ;;  %7476 = vmatprep.mubr.bf16.mxu0 %v4417_v4 }
 0x340   : > { %5787 = vst.msk [vmem:[%s9047_s21 + $0x158] sm:$0xff] %vm5743_vm3, %v4764_v49  ;;  %v3524_v53 = vadd.f32 %v9030_v20, %v7179_v13  ;;  %v3515_v54 = vpop.f32.mrb[43].mxu1  ;;  %7477 = vmatmul.mubr.bf16.gmra.mrb[36].mxu0 %v4418_v14  ;;  %v4209_v62 = vmax.f32 %v3521_v21, 0.0  ;;  %v10241_v49 = vld [vmem:[#allocation40_spill] sm:$0xff] }
 0x341   : > { %5785 = vst.msk [vmem:[%s9047_s21 + $0x148] sm:$0xff] %vm5743_vm3, %v4756_v40  ;;  %v3516_v55 = vadd.f32 %v9030_v20, %v3515_v54  ;;  %v4207_v5 = vmax.f32 %v3513_v63, 0.0 }
 0x342   : > { %v4210_v32 = vmax.f32 %v3524_v53, 0.0  ;;  %7285 = vmatmul.mubr.bf16.gmra.mrb[148].mxu1 %v10236_v11 }
 0x343   : > { %v4208_v25 = vmax.f32 %v3516_v55, 0.0  ;;  %7288 = vmatprep.mubr.bf16.mxu1 %v10237_v0  ;;  %v7374_v19 = vpop.f32.mrb[188].mxu0 }
 0x344   : > { %v4420_v39 = vpack.c.bf16 %v4210_v32, %v4209_v62  ;;  %v4777_v22 = vadd.f32 %v7374_v19, %v9039_v52  ;;  %v4768_v45 = vpop.f32.mrb[189].mxu0 }
 0x345   : > { %v4419_v29 = vpack.c.bf16 %v4208_v25, %v4207_v5  ;;  %v4769_v46 = vadd.f32 %v9039_v52, %v4768_v45  ;;  %v7182_v43 = vpop.f32.mrb[44].mxu1  ;;  %v7375_v33 = vpop.f32.mrb[190].mxu0 }
 0x346   : > { %5790 = vst.msk [vmem:[%s9047_s21 + $0x170] sm:$0xff] %vm5743_vm3, %v4777_v22  ;;  %v3537_v60 = vadd.f32 %v9030_v20, %v7182_v43  ;;  %v4780_v50 = vadd.f32 %v7375_v33, %v9039_v52  ;;  %v3528_v37 = vpop.f32.mrb[45].mxu1  ;;  %v4771_v16 = vpop.f32.mrb[191].mxu0  ;;  %v10242_v43 = vld [vmem:[#allocation39_spill] sm:$0xff] }
 0x347   : > { %5788 = vst.msk [vmem:[%s9047_s21 + $0x160] sm:$0xff] %vm5743_vm3, %v4769_v46  ;;  %v3529_v57 = vadd.f32 %v9030_v20, %v3528_v37  ;;  %v4772_v10 = vadd.f32 %v9039_v52, %v4771_v16  ;;  %v7183_v3 = vpop.f32.mrb[46].mxu1  ;;  %7480 = vmatprep.mubr.bf16.mxu0 %v4419_v29 }
 0x348   : > { %5791 = vst.msk [vmem:[%s9047_s21 + $0x178] sm:$0xff] %vm5743_vm3, %v4780_v50  ;;  %v3540_v28 = vadd.f32 %v9030_v20, %v7183_v3  ;;  %v3531_v18 = vpop.f32.mrb[47].mxu1  ;;  %7481 = vmatmul.mubr.bf16.gmra.mrb[40].mxu0 %v4420_v39  ;;  %v4213_v15 = vmax.f32 %v3537_v60, 0.0  ;;  %v10243_v50 = vld [vmem:[#allocation42_spill] sm:$0xff] }
 0x349   : > { %5789 = vst.msk [vmem:[%s9047_s21 + $0x168] sm:$0xff] %vm5743_vm3, %v4772_v10  ;;  %v3532_v58 = vadd.f32 %v9030_v20, %v3531_v18  ;;  %v4211_v24 = vmax.f32 %v3529_v57, 0.0 }
 0x34a   : > { %v4214_v56 = vmax.f32 %v3540_v28, 0.0  ;;  %7289 = vmatmul.mubr.bf16.gmra.mrb[152].mxu1 %v10238_v36 }
 0x34b   : > { %v4212_v61 = vmax.f32 %v3532_v58, 0.0  ;;  %7292 = vmatprep.mubr.bf16.mxu1 %v10239_v12  ;;  %v7378_v48 = vpop.f32.mrb[192].mxu0 }
 0x34c   : > { %v4422_v30 = vpack.c.bf16 %v4214_v56, %v4213_v15  ;;  %v4793_v8 = vadd.f32 %v7378_v48, %v9039_v52  ;;  %v4784_v31 = vpop.f32.mrb[193].mxu0 }
 0x34d   : > { %v4421_v23 = vpack.c.bf16 %v4212_v61, %v4211_v24  ;;  %v4785_v9 = vadd.f32 %v9039_v52, %v4784_v31  ;;  %v7186_v27 = vpop.f32.mrb[48].mxu1  ;;  %v7379_v47 = vpop.f32.mrb[194].mxu0 }
 0x34e   : > { %5794 = vst.msk [vmem:[%s9047_s21 + $0x190] sm:$0xff] %vm5743_vm3, %v4793_v8  ;;  %v3553_v38 = vadd.f32 %v9030_v20, %v7186_v27  ;;  %v4796_v51 = vadd.f32 %v7379_v47, %v9039_v52  ;;  %v3544_v2 = vpop.f32.mrb[49].mxu1  ;;  %v4787_v59 = vpop.f32.mrb[195].mxu0  ;;  %v10244_v27 = vld [vmem:[#allocation41_spill] sm:$0xff] }
 0x34f   : > { %5792 = vst.msk [vmem:[%s9047_s21 + $0x180] sm:$0xff] %vm5743_vm3, %v4785_v9  ;;  %v3545_v6 = vadd.f32 %v9030_v20, %v3544_v2  ;;  %v4788_v35 = vadd.f32 %v9039_v52, %v4787_v59  ;;  %v7187_v1 = vpop.f32.mrb[50].mxu1  ;;  %7484 = vmatprep.mubr.bf16.mxu0 %v4421_v23 }
 0x350   : > { %5795 = vst.msk [vmem:[%s9047_s21 + $0x198] sm:$0xff] %vm5743_vm3, %v4796_v51  ;;  %v3556_v14 = vadd.f32 %v9030_v20, %v7187_v1  ;;  %v3547_v44 = vpop.f32.mrb[51].mxu1  ;;  %7485 = vmatmul.mubr.bf16.gmra.mrb[44].mxu0 %v4422_v30  ;;  %v4217_v4 = vmax.f32 %v3553_v38, 0.0  ;;  %v10245_v51 = vld [vmem:[#allocation44_spill] sm:$0xff] }
 0x351   : > { %5793 = vst.msk [vmem:[%s9047_s21 + $0x188] sm:$0xff] %vm5743_vm3, %v4788_v35  ;;  %v3548_v17 = vadd.f32 %v9030_v20, %v3547_v44  ;;  %v4215_v7 = vmax.f32 %v3545_v6, 0.0 }
 0x352   : > { %v4218_v34 = vmax.f32 %v3556_v14, 0.0  ;;  %7293 = vmatmul.mubr.bf16.gmra.mrb[156].mxu1 %v10240_v41 }
 0x353   : > { %v4216_v21 = vmax.f32 %v3548_v17, 0.0  ;;  %7296 = vmatprep.mubr.bf16.mxu1 %v10241_v49  ;;  %v7382_v26 = vpop.f32.mrb[196].mxu0 }
 0x354   : > { %v4424_v42 = vpack.c.bf16 %v4218_v34, %v4217_v4  ;;  %v4809_v63 = vadd.f32 %v7382_v26, %v9039_v52  ;;  %v4800_v40 = vpop.f32.mrb[197].mxu0 }
 0x355   : > { %v4423_v13 = vpack.c.bf16 %v4216_v21, %v4215_v7  ;;  %v4801_v53 = vadd.f32 %v9039_v52, %v4800_v40  ;;  %v7190_v54 = vpop.f32.mrb[52].mxu1  ;;  %v7383_v55 = vpop.f32.mrb[198].mxu0 }
 0x356   : > { %5798 = vst.msk [vmem:[%s9047_s21 + $0x1b0] sm:$0xff] %vm5743_vm3, %v4809_v63  ;;  %v3569_v62 = vadd.f32 %v9030_v20, %v7190_v54  ;;  %v4812_v32 = vadd.f32 %v7383_v55, %v9039_v52  ;;  %v3560_v11 = vpop.f32.mrb[53].mxu1  ;;  %v4803_v5 = vpop.f32.mrb[199].mxu0  ;;  %v10246_v54 = vld [vmem:[#allocation43_spill] sm:$0xff] }
 0x357   : > { %5796 = vst.msk [vmem:[%s9047_s21 + $0x1a0] sm:$0xff] %vm5743_vm3, %v4801_v53  ;;  %v3561_v25 = vadd.f32 %v9030_v20, %v3560_v11  ;;  %v4804_v0 = vadd.f32 %v9039_v52, %v4803_v5  ;;  %v7191_v19 = vpop.f32.mrb[54].mxu1  ;;  %7488 = vmatprep.mubr.bf16.mxu0 %v4423_v13 }
 0x358   : > { %5799 = vst.msk [vmem:[%s9047_s21 + $0x1b8] sm:$0xff] %vm5743_vm3, %v4812_v32  ;;  %v3572_v39 = vadd.f32 %v9030_v20, %v7191_v19  ;;  %v3563_v22 = vpop.f32.mrb[55].mxu1  ;;  %7489 = vmatmul.mubr.bf16.gmra.mrb[48].mxu0 %v4424_v42  ;;  %v4221_v29 = vmax.f32 %v3569_v62, 0.0  ;;  %v10247_v32 = vld [vmem:[#allocation46_spill] sm:$0xff] }
 0x359   : > { %5797 = vst.msk [vmem:[%s9047_s21 + $0x1a8] sm:$0xff] %vm5743_vm3, %v4804_v0  ;;  %v3564_v45 = vadd.f32 %v9030_v20, %v3563_v22  ;;  %v4219_v33 = vmax.f32 %v3561_v25, 0.0 }
 0x35a   : > { %v4222_v46 = vmax.f32 %v3572_v39, 0.0  ;;  %7297 = vmatmul.mubr.bf16.gmra.mrb[160].mxu1 %v10242_v43 }
 0x35b   : > { %v4220_v60 = vmax.f32 %v3564_v45, 0.0  ;;  %7300 = vmatprep.mubr.bf16.mxu1 %v10243_v50  ;;  %v7386_v37 = vpop.f32.mrb[200].mxu0 }
 0x35c   : > { %v4426_v16 = vpack.c.bf16 %v4222_v46, %v4221_v29  ;;  %v4825_v57 = vadd.f32 %v7386_v37, %v9039_v52  ;;  %v4816_v10 = vpop.f32.mrb[201].mxu0 }
 0x35d   : > { %v4425_v3 = vpack.c.bf16 %v4220_v60, %v4219_v33  ;;  %v4817_v28 = vadd.f32 %v9039_v52, %v4816_v10  ;;  %v7194_v18 = vpop.f32.mrb[56].mxu1  ;;  %v7387_v58 = vpop.f32.mrb[202].mxu0  ;;  %v9349_v60 = vld [vmem:[%s10155_s4] ss:$0 sm:$0xff] }
 0x35e   : > { %5802 = vst.msk [vmem:[%s9047_s21 + $0x1d0] sm:$0xff] %vm5743_vm3, %v4825_v57  ;;  %v3585_v15 = vadd.f32 %v9030_v20, %v7194_v18  ;;  %v4828_v56 = vadd.f32 %v7387_v58, %v9039_v52  ;;  %v3576_v36 = vpop.f32.mrb[57].mxu1  ;;  %v4819_v24 = vpop.f32.mrb[203].mxu0  ;;  %v10248_v18 = vld [vmem:[#allocation45_spill] sm:$0xff] }
 0x35f   : > { %5800 = vst.msk [vmem:[%s9047_s21 + $0x1c0] sm:$0xff] %vm5743_vm3, %v4817_v28  ;;  %v3577_v61 = vadd.f32 %v9030_v20, %v3576_v36  ;;  %v4820_v12 = vadd.f32 %v9039_v52, %v4819_v24  ;;  %v7195_v48 = vpop.f32.mrb[58].mxu1  ;;  %7492 = vmatprep.mubr.bf16.mxu0 %v4425_v3  ;;  %v9363_v36 = vld [vmem:[%s10157_s6] ss:$0 sm:$0xff] }
 0x360   : > { %5803 = vst.msk [vmem:[%s9047_s21 + $0x1d8] sm:$0xff] %vm5743_vm3, %v4828_v56  ;;  %v3588_v30 = vadd.f32 %v9030_v20, %v7195_v48  ;;  %v3579_v8 = vpop.f32.mrb[59].mxu1  ;;  %7493 = vmatmul.mubr.bf16.gmra.mrb[52].mxu0 %v4426_v16  ;;  %v4225_v23 = vmax.f32 %v3585_v15, 0.0 }
 0x361   : > { %5801 = vst.msk [vmem:[%s9047_s21 + $0x1c8] sm:$0xff] %vm5743_vm3, %v4820_v12  ;;  %v3580_v31 = vadd.f32 %v9030_v20, %v3579_v8  ;;  %v4223_v47 = vmax.f32 %v3577_v61, 0.0 }
 0x362   : > { %v4226_v9 = vmax.f32 %v3588_v30, 0.0  ;;  %7301 = vmatmul.mubr.bf16.gmra.mrb[164].mxu1 %v10244_v27 }
 0x363   : > { %v4224_v38 = vmax.f32 %v3580_v31, 0.0  ;;  %7304 = vmatprep.mubr.bf16.mxu1 %v10245_v51  ;;  %v7390_v2 = vpop.f32.mrb[204].mxu0 }
 0x364   : > { %v4428_v59 = vpack.c.bf16 %v4226_v9, %v4225_v23  ;;  %v4841_v6 = vadd.f32 %v7390_v2, %v9039_v52  ;;  %v4832_v35 = vpop.f32.mrb[205].mxu0 }
 0x365   : > { %v4427_v1 = vpack.c.bf16 %v4224_v38, %v4223_v47  ;;  %v4833_v14 = vadd.f32 %v9039_v52, %v4832_v35  ;;  %v7198_v44 = vpop.f32.mrb[60].mxu1  ;;  %v7391_v17 = vpop.f32.mrb[206].mxu0 }
 0x366   : > { %5806 = vst.msk [vmem:[%s9047_s21 + $0x1f0] sm:$0xff] %vm5743_vm3, %v4841_v6  ;;  %v3601_v4 = vadd.f32 %v9030_v20, %v7198_v44  ;;  %v4844_v34 = vadd.f32 %v7391_v17, %v9039_v52  ;;  %v3592_v41 = vpop.f32.mrb[61].mxu1  ;;  %v4835_v7 = vpop.f32.mrb[207].mxu0 }
 0x367   : > { %5804 = vst.msk [vmem:[%s9047_s21 + $0x1e0] sm:$0xff] %vm5743_vm3, %v4833_v14  ;;  %v3593_v21 = vadd.f32 %v9030_v20, %v3592_v41  ;;  %v4836_v49 = vadd.f32 %v9039_v52, %v4835_v7  ;;  %v7199_v26 = vpop.f32.mrb[62].mxu1  ;;  %7496 = vmatprep.mubr.bf16.mxu0 %v4427_v1 }
 0x368   : > { %5807 = vst.msk [vmem:[%s9047_s21 + $0x1f8] sm:$0xff] %vm5743_vm3, %v4844_v34  ;;  %v3604_v42 = vadd.f32 %v9030_v20, %v7199_v26  ;;  %v3595_v63 = vpop.f32.mrb[63].mxu1  ;;  %7497 = vmatmul.mubr.bf16.gmra.mrb[56].mxu0 %v4428_v59  ;;  %v4229_v13 = vmax.f32 %v3601_v4, 0.0 }
 0x369   : > { %5805 = vst.msk [vmem:[%s9047_s21 + $0x1e8] sm:$0xff] %vm5743_vm3, %v4836_v49  ;;  %v3596_v40 = vadd.f32 %v9030_v20, %v3595_v63  ;;  %v4227_v55 = vmax.f32 %v3593_v21, 0.0 }
 0x36a   : > { %v4230_v53 = vmax.f32 %v3604_v42, 0.0  ;;  %7305 = vmatmul.mubr.bf16.gmra.mrb[168].mxu1 %v10246_v54 }
 0x36b   : > { %v4228_v62 = vmax.f32 %v3596_v40, 0.0  ;;  %7308 = vmatprep.mubr.bf16.mxu1 %v10247_v32  ;;  %v7394_v11 = vpop.f32.mrb[208].mxu0 }
 0x36c   : > { %v4430_v5 = vpack.c.bf16 %v4230_v53, %v4229_v13  ;;  %v4857_v25 = vadd.f32 %v7394_v11, %v9039_v52  ;;  %v4848_v0 = vpop.f32.mrb[209].mxu0 }
 0x36d   : > { %v4429_v19 = vpack.c.bf16 %v4228_v62, %v4227_v55  ;;  %v4849_v39 = vadd.f32 %v9039_v52, %v4848_v0  ;;  %v7202_v22 = vpop.f32.mrb[64].mxu1  ;;  %v7395_v45 = vpop.f32.mrb[210].mxu0 }
 0x36e   : > { %5810 = vst.msk [vmem:[%s9047_s21 + $0x210] sm:$0xff] %vm5743_vm3, %v4857_v25  ;;  %v3617_v29 = vadd.f32 %v9030_v20, %v7202_v22  ;;  %v4860_v46 = vadd.f32 %v7395_v45, %v9039_v52  ;;  %v3608_v43 = vpop.f32.mrb[65].mxu1  ;;  %v4851_v33 = vpop.f32.mrb[211].mxu0 }
 0x36f   : > { %5808 = vst.msk [vmem:[%s9047_s21 + $0x200] sm:$0xff] %vm5743_vm3, %v4849_v39  ;;  %v3609_v50 = vadd.f32 %v9349_v60, %v3608_v43  ;;  %v4852_v37 = vadd.f32 %v9039_v52, %v4851_v33  ;;  %v7203_v16 = vpop.f32.mrb[66].mxu1  ;;  %7500 = vmatprep.mubr.bf16.mxu0 %v4429_v19 }
 0x370   : > { %5811 = vst.msk [vmem:[%s9047_s21 + $0x218] sm:$0xff] %vm5743_vm3, %v4860_v46  ;;  %v3620_v20 = vadd.f32 %v9349_v60, %v7203_v16  ;;  %v3611_v57 = vpop.f32.mrb[67].mxu1  ;;  %7501 = vmatmul.mubr.bf16.gmra.mrb[60].mxu0 %v4430_v5  ;;  %v4233_v3 = vmax.f32 %v3617_v29, 0.0 }
 0x371   : > { %5809 = vst.msk [vmem:[%s9047_s21 + $0x208] sm:$0xff] %vm5743_vm3, %v4852_v37  ;;  %v3612_v10 = vadd.f32 %v9349_v60, %v3611_v57  ;;  %v4231_v58 = vmax.f32 %v3609_v50, 0.0 }
 0x372   : > { %v4234_v28 = vmax.f32 %v3620_v20, 0.0  ;;  %7309 = vmatmul.mubr.bf16.gmra.mrb[172].mxu1 %v10248_v18 }
 0x373   : > { %v4232_v52 = vmax.f32 %v3612_v10, 0.0  ;;  %v7398_v15 = vpop.f32.mrb[212].mxu0 }
 0x374   : > { %v4432_v56 = vpack.c.bf16 %v4234_v28, %v4233_v3  ;;  %v4873_v24 = vadd.f32 %v9363_v36, %v7398_v15  ;;  %v4864_v61 = vpop.f32.mrb[213].mxu0 }
 0x375   : > { %v4431_v12 = vpack.c.bf16 %v4232_v52, %v4231_v58  ;;  %v4865_v48 = vadd.f32 %v9363_v36, %v4864_v61  ;;  %v7206_v30 = vpop.f32.mrb[68].mxu1  ;;  %v7399_v8 = vpop.f32.mrb[214].mxu0 }
 0x376   : > { %5814 = vst.msk [vmem:[%s9047_s21 + $0x230] sm:$0xff] %vm5743_vm3, %v4873_v24  ;;  %v3633_v31 = vadd.f32 %v9349_v60, %v7206_v30  ;;  %v4876_v23 = vadd.f32 %v9363_v36, %v7399_v8  ;;  %v3624_v9 = vpop.f32.mrb[69].mxu1  ;;  %v4867_v27 = vpop.f32.mrb[215].mxu0 }
 0x377   : > { %5812 = vst.msk [vmem:[%s9047_s21 + $0x220] sm:$0xff] %vm5743_vm3, %v4865_v48  ;;  %v3625_v47 = vadd.f32 %v9349_v60, %v3624_v9  ;;  %v4868_v38 = vadd.f32 %v9363_v36, %v4867_v27  ;;  %v7207_v51 = vpop.f32.mrb[70].mxu1  ;;  %7504 = vmatprep.mubr.bf16.mxu0 %v4431_v12 }
 0x378   : > { %5815 = vst.msk [vmem:[%s9047_s21 + $0x238] sm:$0xff] %vm5743_vm3, %v4876_v23  ;;  %v3636_v2 = vadd.f32 %v9349_v60, %v7207_v51  ;;  %v3627_v59 = vpop.f32.mrb[71].mxu1  ;;  %7505 = vmatmul.mubr.bf16.gmra.mrb[64].mxu0 %v4432_v56  ;;  %v4237_v35 = vmax.f32 %v3633_v31, 0.0 }
 0x379   : > { %5813 = vst.msk [vmem:[%s9047_s21 + $0x228] sm:$0xff] %vm5743_vm3, %v4868_v38  ;;  %v3628_v6 = vadd.f32 %v9349_v60, %v3627_v59  ;;  %v4235_v14 = vmax.f32 %v3625_v47, 0.0 }
 0x37a   : > { %v4238_v1 = vmax.f32 %v3636_v2, 0.0 }
 0x37b   : > { %v4236_v44 = vmax.f32 %v3628_v6, 0.0  ;;  %v7402_v17 = vpop.f32.mrb[216].mxu0 }
 0x37c   : > { %v4434_v4 = vpack.c.bf16 %v4238_v1, %v4237_v35  ;;  %v4889_v34 = vadd.f32 %v9363_v36, %v7402_v17  ;;  %v4880_v41 = vpop.f32.mrb[217].mxu0 }
 0x37d   : > { %v4433_v7 = vpack.c.bf16 %v4236_v44, %v4235_v14  ;;  %v4881_v21 = vadd.f32 %v9363_v36, %v4880_v41  ;;  %v7210_v49 = vpop.f32.mrb[72].mxu1  ;;  %v7403_v26 = vpop.f32.mrb[218].mxu0 }
 0x37e   : > { %5818 = vst.msk [vmem:[%s9047_s21 + $0x250] sm:$0xff] %vm5743_vm3, %v4889_v34  ;;  %v3649_v42 = vadd.f32 %v9349_v60, %v7210_v49  ;;  %v4892_v63 = vadd.f32 %v9363_v36, %v7403_v26  ;;  %v3640_v40 = vpop.f32.mrb[73].mxu1  ;;  %v4883_v13 = vpop.f32.mrb[219].mxu0 }
 0x37f   : > { %5816 = vst.msk [vmem:[%s9047_s21 + $0x240] sm:$0xff] %vm5743_vm3, %v4881_v21  ;;  %v3641_v53 = vadd.f32 %v9349_v60, %v3640_v40  ;;  %v4884_v54 = vadd.f32 %v9363_v36, %v4883_v13  ;;  %v7211_v55 = vpop.f32.mrb[74].mxu1  ;;  %7508 = vmatprep.mubr.bf16.mxu0 %v4433_v7 }
 0x380   : > { %5819 = vst.msk [vmem:[%s9047_s21 + $0x258] sm:$0xff] %vm5743_vm3, %v4892_v63  ;;  %v3652_v62 = vadd.f32 %v9349_v60, %v7211_v55  ;;  %v3643_v32 = vpop.f32.mrb[75].mxu1  ;;  %7509 = vmatmul.mubr.bf16.gmra.mrb[68].mxu0 %v4434_v4  ;;  %v4241_v5 = vmax.f32 %v3649_v42, 0.0 }
 0x381   : > { %5817 = vst.msk [vmem:[%s9047_s21 + $0x248] sm:$0xff] %vm5743_vm3, %v4884_v54  ;;  %v3644_v11 = vadd.f32 %v9349_v60, %v3643_v32  ;;  %v4239_v0 = vmax.f32 %v3641_v53, 0.0 }
 0x382   : > { %v4242_v25 = vmax.f32 %v3652_v62, 0.0 }
 0x383   : > { %v4240_v19 = vmax.f32 %v3644_v11, 0.0  ;;  %v7406_v39 = vpop.f32.mrb[220].mxu0 }
 0x384   : > { %v4436_v22 = vpack.c.bf16 %v4242_v25, %v4241_v5  ;;  %v4905_v45 = vadd.f32 %v9363_v36, %v7406_v39  ;;  %v4896_v29 = vpop.f32.mrb[221].mxu0 }
 0x385   : > { %v4435_v46 = vpack.c.bf16 %v4240_v19, %v4239_v0  ;;  %v4897_v43 = vadd.f32 %v9363_v36, %v4896_v29  ;;  %v7214_v33 = vpop.f32.mrb[76].mxu1  ;;  %v7407_v50 = vpop.f32.mrb[222].mxu0 }
 0x386   : > { %5822 = vst.msk [vmem:[%s9047_s21 + $0x270] sm:$0xff] %vm5743_vm3, %v4905_v45  ;;  %v3665_v37 = vadd.f32 %v9349_v60, %v7214_v33  ;;  %v4908_v16 = vadd.f32 %v9363_v36, %v7407_v50  ;;  %v3656_v20 = vpop.f32.mrb[77].mxu1  ;;  %v4899_v57 = vpop.f32.mrb[223].mxu0 }
 0x387   : > { %5820 = vst.msk [vmem:[%s9047_s21 + $0x260] sm:$0xff] %vm5743_vm3, %v4897_v43  ;;  %v3657_v10 = vadd.f32 %v9349_v60, %v3656_v20  ;;  %v4900_v3 = vadd.f32 %v9363_v36, %v4899_v57  ;;  %v7215_v28 = vpop.f32.mrb[78].mxu1  ;;  %7512 = vmatprep.mubr.bf16.mxu0 %v4435_v46 }
 0x388   : > { %5823 = vst.msk [vmem:[%s9047_s21 + $0x278] sm:$0xff] %vm5743_vm3, %v4908_v16  ;;  %v3668_v18 = vadd.f32 %v9349_v60, %v7215_v28  ;;  %v3659_v58 = vpop.f32.mrb[79].mxu1  ;;  %7513 = vmatmul.mubr.bf16.gmra.mrb[72].mxu0 %v4436_v22  ;;  %v4245_v15 = vmax.f32 %v3665_v37, 0.0 }
 0x389   : > { %5821 = vst.msk [vmem:[%s9047_s21 + $0x268] sm:$0xff] %vm5743_vm3, %v4900_v3  ;;  %v3660_v52 = vadd.f32 %v9349_v60, %v3659_v58  ;;  %v4243_v24 = vmax.f32 %v3657_v10, 0.0 }
 0x38a   : > { %v4246_v56 = vmax.f32 %v3668_v18, 0.0 }
 0x38b   : > { %v4244_v61 = vmax.f32 %v3660_v52, 0.0  ;;  %v7410_v12 = vpop.f32.mrb[224].mxu0 }
 0x38c   : > { %v4438_v48 = vpack.c.bf16 %v4246_v56, %v4245_v15  ;;  %v4921_v30 = vadd.f32 %v9363_v36, %v7410_v12  ;;  %v4912_v8 = vpop.f32.mrb[225].mxu0 }
 0x38d   : > { %v4437_v31 = vpack.c.bf16 %v4244_v61, %v4243_v24  ;;  %v4913_v23 = vadd.f32 %v9363_v36, %v4912_v8  ;;  %v7218_v9 = vpop.f32.mrb[80].mxu1  ;;  %v7411_v27 = vpop.f32.mrb[226].mxu0 }
 0x38e   : > { %5826 = vst.msk [vmem:[%s9047_s21 + $0x290] sm:$0xff] %vm5743_vm3, %v4921_v30  ;;  %v3681_v47 = vadd.f32 %v9349_v60, %v7218_v9  ;;  %v4924_v38 = vadd.f32 %v9363_v36, %v7411_v27  ;;  %v3672_v51 = vpop.f32.mrb[81].mxu1  ;;  %v4915_v2 = vpop.f32.mrb[227].mxu0 }
 0x38f   : > { %5824 = vst.msk [vmem:[%s9047_s21 + $0x280] sm:$0xff] %vm5743_vm3, %v4913_v23  ;;  %v3673_v59 = vadd.f32 %v9349_v60, %v3672_v51  ;;  %v4916_v6 = vadd.f32 %v9363_v36, %v4915_v2  ;;  %v7219_v35 = vpop.f32.mrb[82].mxu1  ;;  %7516 = vmatprep.mubr.bf16.mxu0 %v4437_v31 }
 0x390   : > { %5827 = vst.msk [vmem:[%s9047_s21 + $0x298] sm:$0xff] %vm5743_vm3, %v4924_v38  ;;  %v3684_v1 = vadd.f32 %v9349_v60, %v7219_v35  ;;  %v3675_v14 = vpop.f32.mrb[83].mxu1  ;;  %7517 = vmatmul.mubr.bf16.gmra.mrb[76].mxu0 %v4438_v48  ;;  %v4249_v17 = vmax.f32 %v3681_v47, 0.0 }
 0x391   : > { %5825 = vst.msk [vmem:[%s9047_s21 + $0x288] sm:$0xff] %vm5743_vm3, %v4916_v6  ;;  %v3676_v44 = vadd.f32 %v9349_v60, %v3675_v14  ;;  %v4247_v34 = vmax.f32 %v3673_v59, 0.0 }
 0x392   : > { %v4250_v4 = vmax.f32 %v3684_v1, 0.0 }
 0x393   : > { %v4248_v41 = vmax.f32 %v3676_v44, 0.0  ;;  %v7414_v7 = vpop.f32.mrb[228].mxu0 }
 0x394   : > { %v4440_v21 = vpack.c.bf16 %v4250_v4, %v4249_v17  ;;  %v4937_v49 = vadd.f32 %v9363_v36, %v7414_v7  ;;  %v4928_v26 = vpop.f32.mrb[229].mxu0 }
 0x395   : > { %v4439_v42 = vpack.c.bf16 %v4248_v41, %v4247_v34  ;;  %v4929_v63 = vadd.f32 %v9363_v36, %v4928_v26  ;;  %v7222_v40 = vpop.f32.mrb[84].mxu1  ;;  %v7415_v13 = vpop.f32.mrb[230].mxu0 }
 0x396   : > { %5830 = vst.msk [vmem:[%s9047_s21 + $0x2b0] sm:$0xff] %vm5743_vm3, %v4937_v49  ;;  %v3697_v53 = vadd.f32 %v9349_v60, %v7222_v40  ;;  %v4940_v54 = vadd.f32 %v9363_v36, %v7415_v13  ;;  %v3688_v55 = vpop.f32.mrb[85].mxu1  ;;  %v4931_v62 = vpop.f32.mrb[231].mxu0 }
 0x397   : > { %5828 = vst.msk [vmem:[%s9047_s21 + $0x2a0] sm:$0xff] %vm5743_vm3, %v4929_v63  ;;  %v3689_v32 = vadd.f32 %v9349_v60, %v3688_v55  ;;  %v4932_v11 = vadd.f32 %v9363_v36, %v4931_v62  ;;  %v7223_v5 = vpop.f32.mrb[86].mxu1  ;;  %7520 = vmatprep.mubr.bf16.mxu0 %v4439_v42 }
 0x398   : > { %5831 = vst.msk [vmem:[%s9047_s21 + $0x2b8] sm:$0xff] %vm5743_vm3, %v4940_v54  ;;  %v3700_v25 = vadd.f32 %v9349_v60, %v7223_v5  ;;  %v3691_v0 = vpop.f32.mrb[87].mxu1  ;;  %7521 = vmatmul.mubr.bf16.gmra.mrb[80].mxu0 %v4440_v21  ;;  %v4253_v39 = vmax.f32 %v3697_v53, 0.0 }
 0x399   : > { %5829 = vst.msk [vmem:[%s9047_s21 + $0x2a8] sm:$0xff] %vm5743_vm3, %v4932_v11  ;;  %v3692_v19 = vadd.f32 %v9349_v60, %v3691_v0  ;;  %v4251_v45 = vmax.f32 %v3689_v32, 0.0 }
 0x39a   : > { %v4254_v22 = vmax.f32 %v3700_v25, 0.0 }
 0x39b   : > { %v4252_v29 = vmax.f32 %v3692_v19, 0.0  ;;  %v7418_v46 = vpop.f32.mrb[232].mxu0 }
 0x39c   : > { %v4442_v43 = vpack.c.bf16 %v4254_v22, %v4253_v39  ;;  %v4953_v33 = vadd.f32 %v9363_v36, %v7418_v46  ;;  %v4944_v50 = vpop.f32.mrb[233].mxu0 }
 0x39d   : > { %v4441_v37 = vpack.c.bf16 %v4252_v29, %v4251_v45  ;;  %v4945_v16 = vadd.f32 %v9363_v36, %v4944_v50  ;;  %v7226_v20 = vpop.f32.mrb[88].mxu1  ;;  %v7419_v57 = vpop.f32.mrb[234].mxu0 }
 0x39e   : > { %5834 = vst.msk [vmem:[%s9047_s21 + $0x2d0] sm:$0xff] %vm5743_vm3, %v4953_v33  ;;  %v3713_v10 = vadd.f32 %v9349_v60, %v7226_v20  ;;  %v4956_v3 = vadd.f32 %v9363_v36, %v7419_v57  ;;  %v3704_v28 = vpop.f32.mrb[89].mxu1  ;;  %v4947_v18 = vpop.f32.mrb[235].mxu0 }
 0x39f   : > { %5832 = vst.msk [vmem:[%s9047_s21 + $0x2c0] sm:$0xff] %vm5743_vm3, %v4945_v16  ;;  %v3705_v58 = vadd.f32 %v9349_v60, %v3704_v28  ;;  %v4948_v52 = vadd.f32 %v9363_v36, %v4947_v18  ;;  %v7227_v15 = vpop.f32.mrb[90].mxu1  ;;  %7524 = vmatprep.mubr.bf16.mxu0 %v4441_v37 }
 0x3a0   : > { %5835 = vst.msk [vmem:[%s9047_s21 + $0x2d8] sm:$0xff] %vm5743_vm3, %v4956_v3  ;;  %v3716_v56 = vadd.f32 %v9349_v60, %v7227_v15  ;;  %v3707_v24 = vpop.f32.mrb[91].mxu1  ;;  %7525 = vmatmul.mubr.bf16.gmra.mrb[84].mxu0 %v4442_v43  ;;  %v4257_v12 = vmax.f32 %v3713_v10, 0.0 }
 0x3a1   : > { %5833 = vst.msk [vmem:[%s9047_s21 + $0x2c8] sm:$0xff] %vm5743_vm3, %v4948_v52  ;;  %v3708_v61 = vadd.f32 %v9349_v60, %v3707_v24  ;;  %v4255_v30 = vmax.f32 %v3705_v58, 0.0 }
 0x3a2   : > { %v4258_v48 = vmax.f32 %v3716_v56, 0.0 }
 0x3a3   : > { %v4256_v8 = vmax.f32 %v3708_v61, 0.0  ;;  %v7422_v31 = vpop.f32.mrb[236].mxu0 }
 0x3a4   : > { %v4444_v23 = vpack.c.bf16 %v4258_v48, %v4257_v12  ;;  %v4969_v9 = vadd.f32 %v9363_v36, %v7422_v31  ;;  %v4960_v27 = vpop.f32.mrb[237].mxu0 }
 0x3a5   : > { %v4443_v47 = vpack.c.bf16 %v4256_v8, %v4255_v30  ;;  %v4961_v38 = vadd.f32 %v9363_v36, %v4960_v27  ;;  %v7230_v51 = vpop.f32.mrb[92].mxu1  ;;  %v7423_v2 = vpop.f32.mrb[238].mxu0 }
 0x3a6   : > { %5838 = vst.msk [vmem:[%s9047_s21 + $0x2f0] sm:$0xff] %vm5743_vm3, %v4969_v9  ;;  %v3729_v59 = vadd.f32 %v9349_v60, %v7230_v51  ;;  %v4972_v6 = vadd.f32 %v9363_v36, %v7423_v2  ;;  %v3720_v35 = vpop.f32.mrb[93].mxu1  ;;  %v4963_v1 = vpop.f32.mrb[239].mxu0 }
 0x3a7   : > { %5836 = vst.msk [vmem:[%s9047_s21 + $0x2e0] sm:$0xff] %vm5743_vm3, %v4961_v38  ;;  %v3721_v14 = vadd.f32 %v9349_v60, %v3720_v35  ;;  %v4964_v44 = vadd.f32 %v9363_v36, %v4963_v1  ;;  %v7231_v17 = vpop.f32.mrb[94].mxu1  ;;  %7528 = vmatprep.mubr.bf16.mxu0 %v4443_v47 }
 0x3a8   : > { %5839 = vst.msk [vmem:[%s9047_s21 + $0x2f8] sm:$0xff] %vm5743_vm3, %v4972_v6  ;;  %v3732_v4 = vadd.f32 %v9349_v60, %v7231_v17  ;;  %v3723_v34 = vpop.f32.mrb[95].mxu1  ;;  %7529 = vmatmul.mubr.bf16.gmra.mrb[88].mxu0 %v4444_v23  ;;  %v4261_v7 = vmax.f32 %v3729_v59, 0.0 }
 0x3a9   : > { %5837 = vst.msk [vmem:[%s9047_s21 + $0x2e8] sm:$0xff] %vm5743_vm3, %v4964_v44  ;;  %v3724_v41 = vadd.f32 %v9349_v60, %v3723_v34  ;;  %v4259_v49 = vmax.f32 %v3721_v14, 0.0 }
 0x3aa   : > { %v4262_v21 = vmax.f32 %v3732_v4, 0.0 }
 0x3ab   : > { %v4260_v26 = vmax.f32 %v3724_v41, 0.0  ;;  %v7426_v42 = vpop.f32.mrb[240].mxu0 }
 0x3ac   : > { %v4446_v63 = vpack.c.bf16 %v4262_v21, %v4261_v7  ;;  %v4985_v40 = vadd.f32 %v9363_v36, %v7426_v42  ;;  %v4976_v13 = vpop.f32.mrb[241].mxu0 }
 0x3ad   : > { %v4445_v53 = vpack.c.bf16 %v4260_v26, %v4259_v49  ;;  %v4977_v54 = vadd.f32 %v9363_v36, %v4976_v13  ;;  %v7234_v55 = vpop.f32.mrb[96].mxu1  ;;  %v7427_v62 = vpop.f32.mrb[242].mxu0 }
 0x3ae   : > { %5842 = vst.msk [vmem:[%s9047_s21 + $0x310] sm:$0xff] %vm5743_vm3, %v4985_v40  ;;  %v3745_v32 = vadd.f32 %v9349_v60, %v7234_v55  ;;  %v4988_v11 = vadd.f32 %v9363_v36, %v7427_v62  ;;  %v3736_v5 = vpop.f32.mrb[97].mxu1  ;;  %v4979_v25 = vpop.f32.mrb[243].mxu0 }
 0x3af   : > { %5840 = vst.msk [vmem:[%s9047_s21 + $0x300] sm:$0xff] %vm5743_vm3, %v4977_v54  ;;  %v3737_v0 = vadd.f32 %v9349_v60, %v3736_v5  ;;  %v4980_v19 = vadd.f32 %v9363_v36, %v4979_v25  ;;  %v7235_v39 = vpop.f32.mrb[98].mxu1  ;;  %7532 = vmatprep.mubr.bf16.mxu0 %v4445_v53 }
 0x3b0   : > { %5843 = vst.msk [vmem:[%s9047_s21 + $0x318] sm:$0xff] %vm5743_vm3, %v4988_v11  ;;  %v3748_v22 = vadd.f32 %v9349_v60, %v7235_v39  ;;  %v3739_v45 = vpop.f32.mrb[99].mxu1  ;;  %7533 = vmatmul.mubr.bf16.gmra.mrb[92].mxu0 %v4446_v63  ;;  %v4265_v46 = vmax.f32 %v3745_v32, 0.0 }
 0x3b1   : > { %5841 = vst.msk [vmem:[%s9047_s21 + $0x308] sm:$0xff] %vm5743_vm3, %v4980_v19  ;;  %v3740_v29 = vadd.f32 %v9349_v60, %v3739_v45  ;;  %v4263_v33 = vmax.f32 %v3737_v0, 0.0 }
 0x3b2   : > { %v4266_v43 = vmax.f32 %v3748_v22, 0.0 }
 0x3b3   : > { %v4264_v50 = vmax.f32 %v3740_v29, 0.0  ;;  %v7430_v37 = vpop.f32.mrb[244].mxu0 }
 0x3b4   : > { %v4448_v16 = vpack.c.bf16 %v4266_v43, %v4265_v46  ;;  %v5001_v20 = vadd.f32 %v9363_v36, %v7430_v37  ;;  %v4992_v57 = vpop.f32.mrb[245].mxu0 }
 0x3b5   : > { %v4447_v10 = vpack.c.bf16 %v4264_v50, %v4263_v33  ;;  %v4993_v3 = vadd.f32 %v9363_v36, %v4992_v57  ;;  %v7238_v28 = vpop.f32.mrb[100].mxu1  ;;  %v7431_v18 = vpop.f32.mrb[246].mxu0 }
 0x3b6   : > { %5846 = vst.msk [vmem:[%s9047_s21 + $0x330] sm:$0xff] %vm5743_vm3, %v5001_v20  ;;  %v3761_v58 = vadd.f32 %v9349_v60, %v7238_v28  ;;  %v5004_v52 = vadd.f32 %v9363_v36, %v7431_v18  ;;  %v3752_v15 = vpop.f32.mrb[101].mxu1  ;;  %v4995_v56 = vpop.f32.mrb[247].mxu0 }
 0x3b7   : > { %5844 = vst.msk [vmem:[%s9047_s21 + $0x320] sm:$0xff] %vm5743_vm3, %v4993_v3  ;;  %v3753_v24 = vadd.f32 %v9349_v60, %v3752_v15  ;;  %v4996_v61 = vadd.f32 %v9363_v36, %v4995_v56  ;;  %v7239_v12 = vpop.f32.mrb[102].mxu1  ;;  %7536 = vmatprep.mubr.bf16.mxu0 %v4447_v10 }
 0x3b8   : > { %5847 = vst.msk [vmem:[%s9047_s21 + $0x338] sm:$0xff] %vm5743_vm3, %v5004_v52  ;;  %v3764_v48 = vadd.f32 %v9349_v60, %v7239_v12  ;;  %v3755_v30 = vpop.f32.mrb[103].mxu1  ;;  %7537 = vmatmul.mubr.bf16.gmra.mrb[96].mxu0 %v4448_v16  ;;  %v4269_v31 = vmax.f32 %v3761_v58, 0.0 }
 0x3b9   : > { %5845 = vst.msk [vmem:[%s9047_s21 + $0x328] sm:$0xff] %vm5743_vm3, %v4996_v61  ;;  %v3756_v8 = vadd.f32 %v9349_v60, %v3755_v30  ;;  %v4267_v9 = vmax.f32 %v3753_v24, 0.0 }
 0x3ba   : > { %v4270_v23 = vmax.f32 %v3764_v48, 0.0 }
 0x3bb   : > { %v4268_v27 = vmax.f32 %v3756_v8, 0.0  ;;  %v7434_v47 = vpop.f32.mrb[248].mxu0 }
 0x3bc   : > { %v4450_v38 = vpack.c.bf16 %v4270_v23, %v4269_v31  ;;  %v5017_v51 = vadd.f32 %v9363_v36, %v7434_v47  ;;  %v5008_v2 = vpop.f32.mrb[249].mxu0 }
 0x3bd   : > { %v4449_v59 = vpack.c.bf16 %v4268_v27, %v4267_v9  ;;  %v5009_v6 = vadd.f32 %v9363_v36, %v5008_v2  ;;  %v7242_v35 = vpop.f32.mrb[104].mxu1  ;;  %v7435_v1 = vpop.f32.mrb[250].mxu0 }
 0x3be   : > { %5850 = vst.msk [vmem:[%s9047_s21 + $0x350] sm:$0xff] %vm5743_vm3, %v5017_v51  ;;  %v3777_v14 = vadd.f32 %v9349_v60, %v7242_v35  ;;  %v5020_v44 = vadd.f32 %v9363_v36, %v7435_v1  ;;  %v3768_v17 = vpop.f32.mrb[105].mxu1  ;;  %v5011_v4 = vpop.f32.mrb[251].mxu0 }
 0x3bf   : > { %5848 = vst.msk [vmem:[%s9047_s21 + $0x340] sm:$0xff] %vm5743_vm3, %v5009_v6  ;;  %v3769_v34 = vadd.f32 %v9349_v60, %v3768_v17  ;;  %v5012_v41 = vadd.f32 %v9363_v36, %v5011_v4  ;;  %v7243_v7 = vpop.f32.mrb[106].mxu1  ;;  %7540 = vmatprep.mubr.bf16.mxu0 %v4449_v59 }
 0x3c0   : > { %5851 = vst.msk [vmem:[%s9047_s21 + $0x358] sm:$0xff] %vm5743_vm3, %v5020_v44  ;;  %v3780_v21 = vadd.f32 %v9349_v60, %v7243_v7  ;;  %v3771_v49 = vpop.f32.mrb[107].mxu1  ;;  %7541 = vmatmul.mubr.bf16.gmra.mrb[100].mxu0 %v4450_v38  ;;  %v4273_v42 = vmax.f32 %v3777_v14, 0.0 }
 0x3c1   : > { %5849 = vst.msk [vmem:[%s9047_s21 + $0x348] sm:$0xff] %vm5743_vm3, %v5012_v41  ;;  %v3772_v26 = vadd.f32 %v9349_v60, %v3771_v49  ;;  %v4271_v40 = vmax.f32 %v3769_v34, 0.0 }
 0x3c2   : > { %v4274_v63 = vmax.f32 %v3780_v21, 0.0 }
 0x3c3   : > { %v4272_v13 = vmax.f32 %v3772_v26, 0.0  ;;  %v7438_v53 = vpop.f32.mrb[252].mxu0 }
 0x3c4   : > { %v4452_v54 = vpack.c.bf16 %v4274_v63, %v4273_v42  ;;  %v5033_v55 = vadd.f32 %v9363_v36, %v7438_v53  ;;  %v5024_v62 = vpop.f32.mrb[253].mxu0 }
 0x3c5   : > { %v4451_v32 = vpack.c.bf16 %v4272_v13, %v4271_v40  ;;  %v5025_v11 = vadd.f32 %v9363_v36, %v5024_v62  ;;  %v7246_v5 = vpop.f32.mrb[108].mxu1  ;;  %v7439_v25 = vpop.f32.mrb[254].mxu0 }
 0x3c6   : > { %5854 = vst.msk [vmem:[%s9047_s21 + $0x370] sm:$0xff] %vm5743_vm3, %v5033_v55  ;;  %v3793_v0 = vadd.f32 %v9349_v60, %v7246_v5  ;;  %v5036_v19 = vadd.f32 %v9363_v36, %v7439_v25  ;;  %v3784_v39 = vpop.f32.mrb[109].mxu1  ;;  %v5027_v22 = vpop.f32.mrb[255].mxu0 }
 0x3c7   : > { %5852 = vst.msk [vmem:[%s9047_s21 + $0x360] sm:$0xff] %vm5743_vm3, %v5025_v11  ;;  %v3785_v45 = vadd.f32 %v9349_v60, %v3784_v39  ;;  %v5028_v29 = vadd.f32 %v9363_v36, %v5027_v22  ;;  %v7247_v46 = vpop.f32.mrb[110].mxu1  ;;  %7544 = vmatprep.mubr.bf16.mxu0 %v4451_v32 }
 0x3c8   : > { %5855 = vst.msk [vmem:[%s9047_s21 + $0x378] sm:$0xff] %vm5743_vm3, %v5036_v19  ;;  %v3796_v43 = vadd.f32 %v9349_v60, %v7247_v46  ;;  %v3787_v33 = vpop.f32.mrb[111].mxu1  ;;  %7545 = vmatmul.mubr.bf16.gmra.mrb[104].mxu0 %v4452_v54  ;;  %v4277_v37 = vmax.f32 %v3793_v0, 0.0 }
 0x3c9   : > { %5853 = vst.msk [vmem:[%s9047_s21 + $0x368] sm:$0xff] %vm5743_vm3, %v5028_v29  ;;  %v3788_v50 = vadd.f32 %v9349_v60, %v3787_v33  ;;  %v4275_v20 = vmax.f32 %v3785_v45, 0.0 }
 0x3ca   : > { %v4278_v16 = vmax.f32 %v3796_v43, 0.0 }
 0x3cb   : > { %v4276_v57 = vmax.f32 %v3788_v50, 0.0  ;;  %v7442_v10 = vpop.f32.mrb[0].mxu0 }
 0x3cc   : > { %v4454_v3 = vpack.c.bf16 %v4278_v16, %v4277_v37  ;;  %v5049_v28 = vadd.f32 %v9363_v36, %v7442_v10  ;;  %v5040_v18 = vpop.f32.mrb[1].mxu0 }
 0x3cd   : > { %v4453_v58 = vpack.c.bf16 %v4276_v57, %v4275_v20  ;;  %v5041_v52 = vadd.f32 %v9363_v36, %v5040_v18  ;;  %v7250_v15 = vpop.f32.mrb[112].mxu1  ;;  %v7443_v56 = vpop.f32.mrb[2].mxu0 }
 0x3ce   : > { %5858 = vst.msk [vmem:[%s9047_s21 + $0x390] sm:$0xff] %vm5743_vm3, %v5049_v28  ;;  %v3809_v24 = vadd.f32 %v9349_v60, %v7250_v15  ;;  %v5052_v61 = vadd.f32 %v9363_v36, %v7443_v56  ;;  %v3800_v12 = vpop.f32.mrb[113].mxu1  ;;  %v5043_v48 = vpop.f32.mrb[3].mxu0 }
 0x3cf   : > { %5856 = vst.msk [vmem:[%s9047_s21 + $0x380] sm:$0xff] %vm5743_vm3, %v5041_v52  ;;  %v3801_v30 = vadd.f32 %v9349_v60, %v3800_v12  ;;  %v5044_v8 = vadd.f32 %v9363_v36, %v5043_v48  ;;  %v7251_v31 = vpop.f32.mrb[114].mxu1  ;;  %7548 = vmatprep.mubr.bf16.mxu0 %v4453_v58 }
 0x3d0   : > { %5859 = vst.msk [vmem:[%s9047_s21 + $0x398] sm:$0xff] %vm5743_vm3, %v5052_v61  ;;  %v3812_v23 = vadd.f32 %v9349_v60, %v7251_v31  ;;  %v3803_v9 = vpop.f32.mrb[115].mxu1  ;;  %7549 = vmatmul.mubr.bf16.gmra.mrb[108].mxu0 %v4454_v3  ;;  %v4281_v47 = vmax.f32 %v3809_v24, 0.0 }
 0x3d1   : > { %5857 = vst.msk [vmem:[%s9047_s21 + $0x388] sm:$0xff] %vm5743_vm3, %v5044_v8  ;;  %v3804_v27 = vadd.f32 %v9349_v60, %v3803_v9  ;;  %v4279_v51 = vmax.f32 %v3801_v30, 0.0 }
 0x3d2   : > { %v4282_v38 = vmax.f32 %v3812_v23, 0.0 }
 0x3d3   : > { %v4280_v2 = vmax.f32 %v3804_v27, 0.0  ;;  %v7446_v59 = vpop.f32.mrb[4].mxu0 }
 0x3d4   : > { %v4456_v6 = vpack.c.bf16 %v4282_v38, %v4281_v47  ;;  %v5065_v35 = vadd.f32 %v9363_v36, %v7446_v59  ;;  %v5056_v1 = vpop.f32.mrb[5].mxu0 }
 0x3d5   : > { %v4455_v14 = vpack.c.bf16 %v4280_v2, %v4279_v51  ;;  %v5057_v44 = vadd.f32 %v9363_v36, %v5056_v1  ;;  %v7254_v17 = vpop.f32.mrb[116].mxu1  ;;  %v7447_v4 = vpop.f32.mrb[6].mxu0 }
 0x3d6   : > { %5862 = vst.msk [vmem:[%s9047_s21 + $0x3b0] sm:$0xff] %vm5743_vm3, %v5065_v35  ;;  %v3825_v34 = vadd.f32 %v9349_v60, %v7254_v17  ;;  %v5068_v41 = vadd.f32 %v9363_v36, %v7447_v4  ;;  %v3816_v7 = vpop.f32.mrb[117].mxu1  ;;  %v5059_v21 = vpop.f32.mrb[7].mxu0 }
 0x3d7   : > { %5860 = vst.msk [vmem:[%s9047_s21 + $0x3a0] sm:$0xff] %vm5743_vm3, %v5057_v44  ;;  %v3817_v49 = vadd.f32 %v9349_v60, %v3816_v7  ;;  %v5060_v26 = vadd.f32 %v9363_v36, %v5059_v21  ;;  %v7255_v42 = vpop.f32.mrb[118].mxu1  ;;  %7552 = vmatprep.mubr.bf16.mxu0 %v4455_v14 }
 0x3d8   : > { %5863 = vst.msk [vmem:[%s9047_s21 + $0x3b8] sm:$0xff] %vm5743_vm3, %v5068_v41  ;;  %v3828_v63 = vadd.f32 %v9349_v60, %v7255_v42  ;;  %v3819_v40 = vpop.f32.mrb[119].mxu1  ;;  %7553 = vmatmul.mubr.bf16.gmra.mrb[112].mxu0 %v4456_v6  ;;  %v4285_v53 = vmax.f32 %v3825_v34, 0.0 }
 0x3d9   : > { %5861 = vst.msk [vmem:[%s9047_s21 + $0x3a8] sm:$0xff] %vm5743_vm3, %v5060_v26  ;;  %v3820_v13 = vadd.f32 %v9349_v60, %v3819_v40  ;;  %v4283_v55 = vmax.f32 %v3817_v49, 0.0 }
 0x3da   : > { %v4286_v54 = vmax.f32 %v3828_v63, 0.0 }
 0x3db   : > { %v4284_v62 = vmax.f32 %v3820_v13, 0.0  ;;  %v7450_v32 = vpop.f32.mrb[8].mxu0 }
 0x3dc   : > { %v4458_v11 = vpack.c.bf16 %v4286_v54, %v4285_v53  ;;  %v5081_v5 = vadd.f32 %v9363_v36, %v7450_v32  ;;  %v5072_v25 = vpop.f32.mrb[9].mxu0 }
 0x3dd   : > { %v4457_v0 = vpack.c.bf16 %v4284_v62, %v4283_v55  ;;  %v5073_v19 = vadd.f32 %v9363_v36, %v5072_v25  ;;  %v7258_v39 = vpop.f32.mrb[120].mxu1  ;;  %v7451_v22 = vpop.f32.mrb[10].mxu0 }
 0x3de   : > { %5866 = vst.msk [vmem:[%s9047_s21 + $0x3d0] sm:$0xff] %vm5743_vm3, %v5081_v5  ;;  %v3841_v45 = vadd.f32 %v9349_v60, %v7258_v39  ;;  %v5084_v29 = vadd.f32 %v9363_v36, %v7451_v22  ;;  %v3832_v46 = vpop.f32.mrb[121].mxu1  ;;  %v5075_v43 = vpop.f32.mrb[11].mxu0 }
 0x3df   : > { %5864 = vst.msk [vmem:[%s9047_s21 + $0x3c0] sm:$0xff] %vm5743_vm3, %v5073_v19  ;;  %v3833_v33 = vadd.f32 %v9349_v60, %v3832_v46  ;;  %v5076_v50 = vadd.f32 %v9363_v36, %v5075_v43  ;;  %v7259_v37 = vpop.f32.mrb[122].mxu1  ;;  %7556 = vmatprep.mubr.bf16.mxu0 %v4457_v0 }
 0x3e0   : > { %5867 = vst.msk [vmem:[%s9047_s21 + $0x3d8] sm:$0xff] %vm5743_vm3, %v5084_v29  ;;  %v3844_v16 = vadd.f32 %v9349_v60, %v7259_v37  ;;  %v3835_v20 = vpop.f32.mrb[123].mxu1  ;;  %7557 = vmatmul.mubr.bf16.gmra.mrb[116].mxu0 %v4458_v11  ;;  %v4289_v10 = vmax.f32 %v3841_v45, 0.0 }
 0x3e1   : > { %5865 = vst.msk [vmem:[%s9047_s21 + $0x3c8] sm:$0xff] %vm5743_vm3, %v5076_v50  ;;  %v3836_v57 = vadd.f32 %v9349_v60, %v3835_v20  ;;  %v4287_v28 = vmax.f32 %v3833_v33, 0.0 }
 0x3e2   : > { %v4290_v3 = vmax.f32 %v3844_v16, 0.0 }
 0x3e3   : > { %v4288_v18 = vmax.f32 %v3836_v57, 0.0  ;;  %v7454_v58 = vpop.f32.mrb[12].mxu0 }
 0x3e4   : > { %v4460_v52 = vpack.c.bf16 %v4290_v3, %v4289_v10  ;;  %v5097_v15 = vadd.f32 %v9363_v36, %v7454_v58  ;;  %v5088_v56 = vpop.f32.mrb[13].mxu0 }
 0x3e5   : > { %v4459_v24 = vpack.c.bf16 %v4288_v18, %v4287_v28  ;;  %v5089_v61 = vadd.f32 %v9363_v36, %v5088_v56  ;;  %v7262_v12 = vpop.f32.mrb[124].mxu1  ;;  %v7455_v48 = vpop.f32.mrb[14].mxu0 }
 0x3e6   : > { %5870 = vst.msk [vmem:[%s9047_s21 + $0x3f0] sm:$0xff] %vm5743_vm3, %v5097_v15  ;;  %v3857_v30 = vadd.f32 %v9349_v60, %v7262_v12  ;;  %v5100_v8 = vadd.f32 %v9363_v36, %v7455_v48  ;;  %v3848_v31 = vpop.f32.mrb[125].mxu1  ;;  %v5091_v23 = vpop.f32.mrb[15].mxu0 }
 0x3e7   : > { %5868 = vst.msk [vmem:[%s9047_s21 + $0x3e0] sm:$0xff] %vm5743_vm3, %v5089_v61  ;;  %v3849_v9 = vadd.f32 %v9349_v60, %v3848_v31  ;;  %v5092_v27 = vadd.f32 %v9363_v36, %v5091_v23  ;;  %v7263_v47 = vpop.f32.mrb[126].mxu1  ;;  %7560 = vmatprep.mubr.bf16.mxu0 %v4459_v24 }
 0x3e8   : > { %5871 = vst.msk [vmem:[%s9047_s21 + $0x3f8] sm:$0xff] %vm5743_vm3, %v5100_v8  ;;  %v3860_v38 = vadd.f32 %v9349_v60, %v7263_v47  ;;  %v3851_v51 = vpop.f32.mrb[127].mxu1  ;;  %7561 = vmatmul.mubr.bf16.gmra.mrb[120].mxu0 %v4460_v52  ;;  %v4293_v59 = vmax.f32 %v3857_v30, 0.0 }
 0x3e9   : > { %5869 = vst.msk [vmem:[%s9047_s21 + $0x3e8] sm:$0xff] %vm5743_vm3, %v5092_v27  ;;  %v3852_v2 = vadd.f32 %v9349_v60, %v3851_v51  ;;  %v4291_v35 = vmax.f32 %v3849_v9, 0.0 }
 0x3ea   : > { %v4294_v6 = vmax.f32 %v3860_v38, 0.0 }
 0x3eb   : > { %v4292_v1 = vmax.f32 %v3852_v2, 0.0  ;;  %v7458_v14 = vpop.f32.mrb[16].mxu0 }
 0x3ec   : > { %v4462_v44 = vpack.c.bf16 %v4294_v6, %v4293_v59  ;;  %v5113_v17 = vadd.f32 %v9363_v36, %v7458_v14  ;;  %v5104_v4 = vpop.f32.mrb[17].mxu0 }
 0x3ed   : > { %v4461_v34 = vpack.c.bf16 %v4292_v1, %v4291_v35  ;;  %v5105_v41 = vadd.f32 %v9363_v36, %v5104_v4  ;;  %v7266_v7 = vpop.f32.mrb[128].mxu1  ;;  %v7459_v21 = vpop.f32.mrb[18].mxu0  ;;  %v9655_v1 = vld [vmem:[%s10155_s4] ss:$0 sm:$0xff] }
 0x3ee   : > { %5874 = vst.msk [vmem:[%s9047_s21 + $0x410] sm:$0xff] %vm5743_vm3, %v5113_v17  ;;  %v3873_v49 = vadd.f32 %v9349_v60, %v7266_v7  ;;  %v5116_v26 = vadd.f32 %v9363_v36, %v7459_v21  ;;  %v3864_v42 = vpop.f32.mrb[129].mxu1  ;;  %v5107_v63 = vpop.f32.mrb[19].mxu0 }
 0x3ef   : > { %5872 = vst.msk [vmem:[%s9047_s21 + $0x400] sm:$0xff] %vm5743_vm3, %v5105_v41  ;;  %v3865_v40 = vadd.f32 %v9349_v60, %v3864_v42  ;;  %v5108_v13 = vadd.f32 %v9363_v36, %v5107_v63  ;;  %v7267_v53 = vpop.f32.mrb[130].mxu1  ;;  %7564 = vmatprep.mubr.bf16.mxu0 %v4461_v34 }
 0x3f0   : > { %5875 = vst.msk [vmem:[%s9047_s21 + $0x418] sm:$0xff] %vm5743_vm3, %v5116_v26  ;;  %v3876_v54 = vadd.f32 %v9349_v60, %v7267_v53  ;;  %v3867_v55 = vpop.f32.mrb[131].mxu1  ;;  %7565 = vmatmul.mubr.bf16.gmra.mrb[124].mxu0 %v4462_v44  ;;  %v4297_v32 = vmax.f32 %v3873_v49, 0.0 }
 0x3f1   : > { %5873 = vst.msk [vmem:[%s9047_s21 + $0x408] sm:$0xff] %vm5743_vm3, %v5108_v13  ;;  %v3868_v62 = vadd.f32 %v9349_v60, %v3867_v55  ;;  %v4295_v5 = vmax.f32 %v3865_v40, 0.0  ;;  %v9666_v13 = vld [vmem:[%s10157_s6] ss:$0 sm:$0xff] }
 0x3f2   : > { %v4298_v11 = vmax.f32 %v3876_v54, 0.0 }
 0x3f3   : > { %v4296_v25 = vmax.f32 %v3868_v62, 0.0  ;;  %v7462_v0 = vpop.f32.mrb[20].mxu0 }
 0x3f4   : > { %v4464_v19 = vpack.c.bf16 %v4298_v11, %v4297_v32  ;;  %v5129_v39 = vadd.f32 %v9363_v36, %v7462_v0  ;;  %v5120_v22 = vpop.f32.mrb[21].mxu0 }
 0x3f5   : > { %v4463_v45 = vpack.c.bf16 %v4296_v25, %v4295_v5  ;;  %v5121_v29 = vadd.f32 %v9363_v36, %v5120_v22  ;;  %v7270_v46 = vpop.f32.mrb[132].mxu1  ;;  %v7463_v43 = vpop.f32.mrb[22].mxu0 }
 0x3f6   : > { %5878 = vst.msk [vmem:[%s9047_s21 + $0x430] sm:$0xff] %vm5743_vm3, %v5129_v39  ;;  %v3889_v33 = vadd.f32 %v9349_v60, %v7270_v46  ;;  %v5132_v50 = vadd.f32 %v9363_v36, %v7463_v43  ;;  %v3880_v37 = vpop.f32.mrb[133].mxu1  ;;  %v5123_v16 = vpop.f32.mrb[23].mxu0 }
 0x3f7   : > { %5876 = vst.msk [vmem:[%s9047_s21 + $0x420] sm:$0xff] %vm5743_vm3, %v5121_v29  ;;  %v3881_v20 = vadd.f32 %v9349_v60, %v3880_v37  ;;  %v5124_v57 = vadd.f32 %v9363_v36, %v5123_v16  ;;  %v7271_v10 = vpop.f32.mrb[134].mxu1  ;;  %7568 = vmatprep.mubr.bf16.mxu0 %v4463_v45 }
 0x3f8   : > { %5879 = vst.msk [vmem:[%s9047_s21 + $0x438] sm:$0xff] %vm5743_vm3, %v5132_v50  ;;  %v3892_v3 = vadd.f32 %v9349_v60, %v7271_v10  ;;  %v3883_v28 = vpop.f32.mrb[135].mxu1  ;;  %7569 = vmatmul.mubr.bf16.gmra.mrb[128].mxu0 %v4464_v19  ;;  %v4301_v58 = vmax.f32 %v3889_v33, 0.0 }
 0x3f9   : > { %5877 = vst.msk [vmem:[%s9047_s21 + $0x428] sm:$0xff] %vm5743_vm3, %v5124_v57  ;;  %v3884_v18 = vadd.f32 %v9349_v60, %v3883_v28  ;;  %v4299_v15 = vmax.f32 %v3881_v20, 0.0 }
 0x3fa   : > { %v4302_v52 = vmax.f32 %v3892_v3, 0.0 }
 0x3fb   : > { %v4300_v56 = vmax.f32 %v3884_v18, 0.0  ;;  %v7466_v24 = vpop.f32.mrb[24].mxu0 }
 0x3fc   : > { %v4466_v61 = vpack.c.bf16 %v4302_v52, %v4301_v58  ;;  %v5145_v12 = vadd.f32 %v9363_v36, %v7466_v24  ;;  %v5136_v48 = vpop.f32.mrb[25].mxu0 }
 0x3fd   : > { %v4465_v30 = vpack.c.bf16 %v4300_v56, %v4299_v15  ;;  %v5137_v8 = vadd.f32 %v9363_v36, %v5136_v48  ;;  %v7274_v31 = vpop.f32.mrb[136].mxu1  ;;  %v7467_v23 = vpop.f32.mrb[26].mxu0 }
 0x3fe   : > { %5882 = vst.msk [vmem:[%s9047_s21 + $0x450] sm:$0xff] %vm5743_vm3, %v5145_v12  ;;  %v3905_v9 = vadd.f32 %v9349_v60, %v7274_v31  ;;  %v5148_v27 = vadd.f32 %v9363_v36, %v7467_v23  ;;  %v3896_v47 = vpop.f32.mrb[137].mxu1  ;;  %v5139_v38 = vpop.f32.mrb[27].mxu0 }
 0x3ff   : > { %5880 = vst.msk [vmem:[%s9047_s21 + $0x440] sm:$0xff] %vm5743_vm3, %v5137_v8  ;;  %v3897_v51 = vadd.f32 %v9349_v60, %v3896_v47  ;;  %v5140_v2 = vadd.f32 %v9363_v36, %v5139_v38  ;;  %v7275_v59 = vpop.f32.mrb[138].mxu1  ;;  %7572 = vmatprep.mubr.bf16.mxu0 %v4465_v30 }
 0x400   : > { %5883 = vst.msk [vmem:[%s9047_s21 + $0x458] sm:$0xff] %vm5743_vm3, %v5148_v27  ;;  %v3908_v6 = vadd.f32 %v9349_v60, %v7275_v59  ;;  %v3899_v35 = vpop.f32.mrb[139].mxu1  ;;  %7573 = vmatmul.mubr.bf16.gmra.mrb[132].mxu0 %v4466_v61  ;;  %v4305_v44 = vmax.f32 %v3905_v9, 0.0 }
 0x401   : > { %5881 = vst.msk [vmem:[%s9047_s21 + $0x448] sm:$0xff] %vm5743_vm3, %v5140_v2  ;;  %v3900_v14 = vadd.f32 %v9655_v1, %v3899_v35  ;;  %v4303_v4 = vmax.f32 %v3897_v51, 0.0 }
 0x402   : > { %v4306_v17 = vmax.f32 %v3908_v6, 0.0 }
 0x403   : > { %v4304_v34 = vmax.f32 %v3900_v14, 0.0  ;;  %v7470_v41 = vpop.f32.mrb[28].mxu0 }
 0x404   : > { %v4468_v7 = vpack.c.bf16 %v4306_v17, %v4305_v44  ;;  %v5161_v60 = vadd.f32 %v9363_v36, %v7470_v41  ;;  %v5152_v21 = vpop.f32.mrb[29].mxu0 }
 0x405   : > { %v4467_v49 = vpack.c.bf16 %v4304_v34, %v4303_v4  ;;  %v5153_v26 = vadd.f32 %v9363_v36, %v5152_v21  ;;  %v7278_v42 = vpop.f32.mrb[140].mxu1  ;;  %v7471_v63 = vpop.f32.mrb[30].mxu0 }
 0x406   : > { %5886 = vst.msk [vmem:[%s9047_s21 + $0x470] sm:$0xff] %vm5743_vm3, %v5161_v60  ;;  %v3921_v40 = vadd.f32 %v9655_v1, %v7278_v42  ;;  %v5164_v53 = vadd.f32 %v9666_v13, %v7471_v63  ;;  %v3912_v54 = vpop.f32.mrb[141].mxu1  ;;  %v5155_v55 = vpop.f32.mrb[31].mxu0 }
 0x407   : > { %5884 = vst.msk [vmem:[%s9047_s21 + $0x460] sm:$0xff] %vm5743_vm3, %v5153_v26  ;;  %v3913_v36 = vadd.f32 %v9655_v1, %v3912_v54  ;;  %v5156_v62 = vadd.f32 %v9666_v13, %v5155_v55  ;;  %v7279_v32 = vpop.f32.mrb[142].mxu1  ;;  %7576 = vmatprep.mubr.bf16.mxu0 %v4467_v49 }
 0x408   : > { %5887 = vst.msk [vmem:[%s9047_s21 + $0x478] sm:$0xff] %vm5743_vm3, %v5164_v53  ;;  %v3924_v11 = vadd.f32 %v9655_v1, %v7279_v32  ;;  %v3915_v5 = vpop.f32.mrb[143].mxu1  ;;  %7577 = vmatmul.mubr.bf16.gmra.mrb[136].mxu0 %v4468_v7  ;;  %v4309_v0 = vmax.f32 %v3921_v40, 0.0 }
 0x409   : > { %5885 = vst.msk [vmem:[%s9047_s21 + $0x468] sm:$0xff] %vm5743_vm3, %v5156_v62  ;;  %v3916_v25 = vadd.f32 %v9655_v1, %v3915_v5  ;;  %v4307_v39 = vmax.f32 %v3913_v36, 0.0 }
 0x40a   : > { %v4310_v19 = vmax.f32 %v3924_v11, 0.0 }
 0x40b   : > { %v4308_v22 = vmax.f32 %v3916_v25, 0.0  ;;  %v7474_v45 = vpop.f32.mrb[32].mxu0 }
 0x40c   : > { %v4470_v29 = vpack.c.bf16 %v4310_v19, %v4309_v0  ;;  %v5177_v46 = vadd.f32 %v9666_v13, %v7474_v45  ;;  %v5168_v43 = vpop.f32.mrb[33].mxu0 }
 0x40d   : > { %v4469_v33 = vpack.c.bf16 %v4308_v22, %v4307_v39  ;;  %v5169_v50 = vadd.f32 %v9666_v13, %v5168_v43  ;;  %v7282_v37 = vpop.f32.mrb[144].mxu1  ;;  %v7475_v16 = vpop.f32.mrb[34].mxu0 }
 0x40e   : > { %5890 = vst.msk [vmem:[%s9047_s21 + $0x490] sm:$0xff] %vm5743_vm3, %v5177_v46  ;;  %v3937_v20 = vadd.f32 %v9655_v1, %v7282_v37  ;;  %v5180_v57 = vadd.f32 %v9666_v13, %v7475_v16  ;;  %v3928_v10 = vpop.f32.mrb[145].mxu1  ;;  %v5171_v3 = vpop.f32.mrb[35].mxu0 }
 0x40f   : > { %5888 = vst.msk [vmem:[%s9047_s21 + $0x480] sm:$0xff] %vm5743_vm3, %v5169_v50  ;;  %v3929_v28 = vadd.f32 %v9655_v1, %v3928_v10  ;;  %v5172_v18 = vadd.f32 %v9666_v13, %v5171_v3  ;;  %v7283_v58 = vpop.f32.mrb[146].mxu1  ;;  %7580 = vmatprep.mubr.bf16.mxu0 %v4469_v33 }
 0x410   : > { %5891 = vst.msk [vmem:[%s9047_s21 + $0x498] sm:$0xff] %vm5743_vm3, %v5180_v57  ;;  %v3940_v52 = vadd.f32 %v9655_v1, %v7283_v58  ;;  %v3931_v15 = vpop.f32.mrb[147].mxu1  ;;  %7581 = vmatmul.mubr.bf16.gmra.mrb[140].mxu0 %v4470_v29  ;;  %v4313_v24 = vmax.f32 %v3937_v20, 0.0 }
 0x411   : > { %5889 = vst.msk [vmem:[%s9047_s21 + $0x488] sm:$0xff] %vm5743_vm3, %v5172_v18  ;;  %v3932_v56 = vadd.f32 %v9655_v1, %v3931_v15  ;;  %v4311_v12 = vmax.f32 %v3929_v28, 0.0 }
 0x412   : > { %v4314_v61 = vmax.f32 %v3940_v52, 0.0 }
 0x413   : > { %v4312_v48 = vmax.f32 %v3932_v56, 0.0  ;;  %v7478_v30 = vpop.f32.mrb[36].mxu0 }
 0x414   : > { %v4472_v8 = vpack.c.bf16 %v4314_v61, %v4313_v24  ;;  %v5193_v31 = vadd.f32 %v9666_v13, %v7478_v30  ;;  %v5184_v23 = vpop.f32.mrb[37].mxu0 }
 0x415   : > { %v4471_v9 = vpack.c.bf16 %v4312_v48, %v4311_v12  ;;  %v5185_v27 = vadd.f32 %v9666_v13, %v5184_v23  ;;  %v7286_v47 = vpop.f32.mrb[148].mxu1  ;;  %v7479_v38 = vpop.f32.mrb[38].mxu0 }
 0x416   : > { %5894 = vst.msk [vmem:[%s9047_s21 + $0x4b0] sm:$0xff] %vm5743_vm3, %v5193_v31  ;;  %v3953_v51 = vadd.f32 %v9655_v1, %v7286_v47  ;;  %v5196_v2 = vadd.f32 %v9666_v13, %v7479_v38  ;;  %v3944_v59 = vpop.f32.mrb[149].mxu1  ;;  %v5187_v6 = vpop.f32.mrb[39].mxu0 }
 0x417   : > { %5892 = vst.msk [vmem:[%s9047_s21 + $0x4a0] sm:$0xff] %vm5743_vm3, %v5185_v27  ;;  %v3945_v35 = vadd.f32 %v9655_v1, %v3944_v59  ;;  %v5188_v14 = vadd.f32 %v9666_v13, %v5187_v6  ;;  %v7287_v44 = vpop.f32.mrb[150].mxu1  ;;  %7584 = vmatprep.mubr.bf16.mxu0 %v4471_v9 }
 0x418   : > { %5895 = vst.msk [vmem:[%s9047_s21 + $0x4b8] sm:$0xff] %vm5743_vm3, %v5196_v2  ;;  %v3956_v17 = vadd.f32 %v9655_v1, %v7287_v44  ;;  %v3947_v4 = vpop.f32.mrb[151].mxu1  ;;  %7585 = vmatmul.mubr.bf16.gmra.mrb[144].mxu0 %v4472_v8  ;;  %v4317_v41 = vmax.f32 %v3953_v51, 0.0 }
 0x419   : > { %5893 = vst.msk [vmem:[%s9047_s21 + $0x4a8] sm:$0xff] %vm5743_vm3, %v5188_v14  ;;  %v3948_v34 = vadd.f32 %v9655_v1, %v3947_v4  ;;  %v4315_v60 = vmax.f32 %v3945_v35, 0.0 }
 0x41a   : > { %v4318_v7 = vmax.f32 %v3956_v17, 0.0 }
 0x41b   : > { %v4316_v21 = vmax.f32 %v3948_v34, 0.0  ;;  %v7482_v49 = vpop.f32.mrb[40].mxu0 }
 0x41c   : > { %v4474_v26 = vpack.c.bf16 %v4318_v7, %v4317_v41  ;;  %v5209_v42 = vadd.f32 %v9666_v13, %v7482_v49  ;;  %v5200_v63 = vpop.f32.mrb[41].mxu0 }
 0x41d   : > { %v4473_v40 = vpack.c.bf16 %v4316_v21, %v4315_v60  ;;  %v5201_v53 = vadd.f32 %v9666_v13, %v5200_v63  ;;  %v7290_v54 = vpop.f32.mrb[152].mxu1  ;;  %v7483_v55 = vpop.f32.mrb[42].mxu0 }
 0x41e   : > { %5898 = vst.msk [vmem:[%s9047_s21 + $0x4d0] sm:$0xff] %vm5743_vm3, %v5209_v42  ;;  %v3969_v36 = vadd.f32 %v9655_v1, %v7290_v54  ;;  %v5212_v62 = vadd.f32 %v9666_v13, %v7483_v55  ;;  %v3960_v32 = vpop.f32.mrb[153].mxu1  ;;  %v5203_v11 = vpop.f32.mrb[43].mxu0 }
 0x41f   : > { %5896 = vst.msk [vmem:[%s9047_s21 + $0x4c0] sm:$0xff] %vm5743_vm3, %v5201_v53  ;;  %v3961_v5 = vadd.f32 %v9655_v1, %v3960_v32  ;;  %v5204_v25 = vadd.f32 %v9666_v13, %v5203_v11  ;;  %v7291_v0 = vpop.f32.mrb[154].mxu1  ;;  %7588 = vmatprep.mubr.bf16.mxu0 %v4473_v40 }
 0x420   : > { %5899 = vst.msk [vmem:[%s9047_s21 + $0x4d8] sm:$0xff] %vm5743_vm3, %v5212_v62  ;;  %v3972_v19 = vadd.f32 %v9655_v1, %v7291_v0  ;;  %v3963_v39 = vpop.f32.mrb[155].mxu1  ;;  %7589 = vmatmul.mubr.bf16.gmra.mrb[148].mxu0 %v4474_v26  ;;  %v4321_v45 = vmax.f32 %v3969_v36, 0.0 }
 0x421   : > { %5897 = vst.msk [vmem:[%s9047_s21 + $0x4c8] sm:$0xff] %vm5743_vm3, %v5204_v25  ;;  %v3964_v22 = vadd.f32 %v9655_v1, %v3963_v39  ;;  %v4319_v46 = vmax.f32 %v3961_v5, 0.0 }
 0x422   : > { %v4322_v29 = vmax.f32 %v3972_v19, 0.0 }
 0x423   : > { %v4320_v43 = vmax.f32 %v3964_v22, 0.0  ;;  %v7486_v33 = vpop.f32.mrb[44].mxu0 }
 0x424   : > { %v4476_v50 = vpack.c.bf16 %v4322_v29, %v4321_v45  ;;  %v5225_v37 = vadd.f32 %v9666_v13, %v7486_v33  ;;  %v5216_v16 = vpop.f32.mrb[45].mxu0 }
 0x425   : > { %v4475_v20 = vpack.c.bf16 %v4320_v43, %v4319_v46  ;;  %v5217_v57 = vadd.f32 %v9666_v13, %v5216_v16  ;;  %v7294_v10 = vpop.f32.mrb[156].mxu1  ;;  %v7487_v3 = vpop.f32.mrb[46].mxu0 }
 0x426   : > { %5902 = vst.msk [vmem:[%s9047_s21 + $0x4f0] sm:$0xff] %vm5743_vm3, %v5225_v37  ;;  %v3985_v28 = vadd.f32 %v9655_v1, %v7294_v10  ;;  %v5228_v18 = vadd.f32 %v9666_v13, %v7487_v3  ;;  %v3976_v58 = vpop.f32.mrb[157].mxu1  ;;  %v5219_v52 = vpop.f32.mrb[47].mxu0 }
 0x427   : > { %5900 = vst.msk [vmem:[%s9047_s21 + $0x4e0] sm:$0xff] %vm5743_vm3, %v5217_v57  ;;  %v3977_v15 = vadd.f32 %v9655_v1, %v3976_v58  ;;  %v5220_v56 = vadd.f32 %v9666_v13, %v5219_v52  ;;  %v7295_v24 = vpop.f32.mrb[158].mxu1  ;;  %7592 = vmatprep.mubr.bf16.mxu0 %v4475_v20 }
 0x428   : > { %5903 = vst.msk [vmem:[%s9047_s21 + $0x4f8] sm:$0xff] %vm5743_vm3, %v5228_v18  ;;  %v3988_v61 = vadd.f32 %v9655_v1, %v7295_v24  ;;  %v3979_v12 = vpop.f32.mrb[159].mxu1  ;;  %7593 = vmatmul.mubr.bf16.gmra.mrb[152].mxu0 %v4476_v50  ;;  %v4325_v30 = vmax.f32 %v3985_v28, 0.0 }
 0x429   : > { %5901 = vst.msk [vmem:[%s9047_s21 + $0x4e8] sm:$0xff] %vm5743_vm3, %v5220_v56  ;;  %v3980_v48 = vadd.f32 %v9655_v1, %v3979_v12  ;;  %v4323_v31 = vmax.f32 %v3977_v15, 0.0 }
 0x42a   : > { %v4326_v8 = vmax.f32 %v3988_v61, 0.0 }
 0x42b   : > { %v4324_v23 = vmax.f32 %v3980_v48, 0.0  ;;  %v7490_v9 = vpop.f32.mrb[48].mxu0 }
 0x42c   : > { %v4478_v27 = vpack.c.bf16 %v4326_v8, %v4325_v30  ;;  %v5241_v47 = vadd.f32 %v9666_v13, %v7490_v9  ;;  %v5232_v38 = vpop.f32.mrb[49].mxu0 }
 0x42d   : > { %v4477_v51 = vpack.c.bf16 %v4324_v23, %v4323_v31  ;;  %v5233_v2 = vadd.f32 %v9666_v13, %v5232_v38  ;;  %v7298_v59 = vpop.f32.mrb[160].mxu1  ;;  %v7491_v6 = vpop.f32.mrb[50].mxu0 }
 0x42e   : > { %5906 = vst.msk [vmem:[%s9047_s21 + $0x510] sm:$0xff] %vm5743_vm3, %v5241_v47  ;;  %v4001_v35 = vadd.f32 %v9655_v1, %v7298_v59  ;;  %v5244_v14 = vadd.f32 %v9666_v13, %v7491_v6  ;;  %v3992_v44 = vpop.f32.mrb[161].mxu1  ;;  %v5235_v17 = vpop.f32.mrb[51].mxu0 }
 0x42f   : > { %5904 = vst.msk [vmem:[%s9047_s21 + $0x500] sm:$0xff] %vm5743_vm3, %v5233_v2  ;;  %v3993_v4 = vadd.f32 %v9655_v1, %v3992_v44  ;;  %v5236_v34 = vadd.f32 %v9666_v13, %v5235_v17  ;;  %v7299_v41 = vpop.f32.mrb[162].mxu1  ;;  %7596 = vmatprep.mubr.bf16.mxu0 %v4477_v51 }
 0x430   : > { %5907 = vst.msk [vmem:[%s9047_s21 + $0x518] sm:$0xff] %vm5743_vm3, %v5244_v14  ;;  %v4004_v7 = vadd.f32 %v9655_v1, %v7299_v41  ;;  %v3995_v60 = vpop.f32.mrb[163].mxu1  ;;  %7597 = vmatmul.mubr.bf16.gmra.mrb[156].mxu0 %v4478_v27  ;;  %v4329_v49 = vmax.f32 %v4001_v35, 0.0 }
 0x431   : > { %5905 = vst.msk [vmem:[%s9047_s21 + $0x508] sm:$0xff] %vm5743_vm3, %v5236_v34  ;;  %v3996_v21 = vadd.f32 %v9655_v1, %v3995_v60  ;;  %v4327_v42 = vmax.f32 %v3993_v4, 0.0 }
 0x432   : > { %v4330_v26 = vmax.f32 %v4004_v7, 0.0 }
 0x433   : > { %v4328_v63 = vmax.f32 %v3996_v21, 0.0  ;;  %v7494_v40 = vpop.f32.mrb[52].mxu0 }
 0x434   : > { %v4480_v53 = vpack.c.bf16 %v4330_v26, %v4329_v49  ;;  %v5257_v54 = vadd.f32 %v9666_v13, %v7494_v40  ;;  %v5248_v55 = vpop.f32.mrb[53].mxu0 }
 0x435   : > { %v4479_v36 = vpack.c.bf16 %v4328_v63, %v4327_v42  ;;  %v5249_v62 = vadd.f32 %v9666_v13, %v5248_v55  ;;  %v7302_v32 = vpop.f32.mrb[164].mxu1  ;;  %v7495_v11 = vpop.f32.mrb[54].mxu0 }
 0x436   : > { %5910 = vst.msk [vmem:[%s9047_s21 + $0x530] sm:$0xff] %vm5743_vm3, %v5257_v54  ;;  %v4017_v5 = vadd.f32 %v9655_v1, %v7302_v32  ;;  %v5260_v25 = vadd.f32 %v9666_v13, %v7495_v11  ;;  %v4008_v0 = vpop.f32.mrb[165].mxu1  ;;  %v5251_v19 = vpop.f32.mrb[55].mxu0 }
 0x437   : > { %5908 = vst.msk [vmem:[%s9047_s21 + $0x520] sm:$0xff] %vm5743_vm3, %v5249_v62  ;;  %v4009_v39 = vadd.f32 %v9655_v1, %v4008_v0  ;;  %v5252_v22 = vadd.f32 %v9666_v13, %v5251_v19  ;;  %v7303_v45 = vpop.f32.mrb[166].mxu1  ;;  %7600 = vmatprep.mubr.bf16.mxu0 %v4479_v36 }
 0x438   : > { %5911 = vst.msk [vmem:[%s9047_s21 + $0x538] sm:$0xff] %vm5743_vm3, %v5260_v25  ;;  %v4020_v29 = vadd.f32 %v9655_v1, %v7303_v45  ;;  %v4011_v46 = vpop.f32.mrb[167].mxu1  ;;  %7601 = vmatmul.mubr.bf16.gmra.mrb[160].mxu0 %v4480_v53  ;;  %v4333_v33 = vmax.f32 %v4017_v5, 0.0 }
 0x439   : > { %5909 = vst.msk [vmem:[%s9047_s21 + $0x528] sm:$0xff] %vm5743_vm3, %v5252_v22  ;;  %v4012_v43 = vadd.f32 %v9655_v1, %v4011_v46  ;;  %v4331_v37 = vmax.f32 %v4009_v39, 0.0 }
 0x43a   : > { %v4334_v50 = vmax.f32 %v4020_v29, 0.0 }
 0x43b   : > { %v4332_v16 = vmax.f32 %v4012_v43, 0.0  ;;  %v7498_v20 = vpop.f32.mrb[56].mxu0 }
 0x43c   : > { %v4482_v57 = vpack.c.bf16 %v4334_v50, %v4333_v33  ;;  %v5273_v10 = vadd.f32 %v9666_v13, %v7498_v20  ;;  %v5264_v3 = vpop.f32.mrb[57].mxu0 }
 0x43d   : > { %v4481_v28 = vpack.c.bf16 %v4332_v16, %v4331_v37  ;;  %v5265_v18 = vadd.f32 %v9666_v13, %v5264_v3  ;;  %v7306_v58 = vpop.f32.mrb[168].mxu1  ;;  %v7499_v52 = vpop.f32.mrb[58].mxu0 }
 0x43e   : > { %5914 = vst.msk [vmem:[%s9047_s21 + $0x550] sm:$0xff] %vm5743_vm3, %v5273_v10  ;;  %v4033_v15 = vadd.f32 %v9655_v1, %v7306_v58  ;;  %v5276_v56 = vadd.f32 %v9666_v13, %v7499_v52  ;;  %v4024_v24 = vpop.f32.mrb[169].mxu1  ;;  %v5267_v61 = vpop.f32.mrb[59].mxu0 }
 0x43f   : > { %5912 = vst.msk [vmem:[%s9047_s21 + $0x540] sm:$0xff] %vm5743_vm3, %v5265_v18  ;;  %v4025_v12 = vadd.f32 %v9655_v1, %v4024_v24  ;;  %v5268_v48 = vadd.f32 %v9666_v13, %v5267_v61  ;;  %v7307_v30 = vpop.f32.mrb[170].mxu1  ;;  %7604 = vmatprep.mubr.bf16.mxu0 %v4481_v28 }
 0x440   : > { %5915 = vst.msk [vmem:[%s9047_s21 + $0x558] sm:$0xff] %vm5743_vm3, %v5276_v56  ;;  %v4036_v8 = vadd.f32 %v9655_v1, %v7307_v30  ;;  %v4027_v31 = vpop.f32.mrb[171].mxu1  ;;  %7605 = vmatmul.mubr.bf16.gmra.mrb[164].mxu0 %v4482_v57  ;;  %v4337_v9 = vmax.f32 %v4033_v15, 0.0 }
 0x441   : > { %5913 = vst.msk [vmem:[%s9047_s21 + $0x548] sm:$0xff] %vm5743_vm3, %v5268_v48  ;;  %v4028_v23 = vadd.f32 %v9655_v1, %v4027_v31  ;;  %v4335_v47 = vmax.f32 %v4025_v12, 0.0 }
 0x442   : > { %v4338_v27 = vmax.f32 %v4036_v8, 0.0 }
 0x443   : > { %v4336_v38 = vmax.f32 %v4028_v23, 0.0  ;;  %v7502_v51 = vpop.f32.mrb[60].mxu0 }
 0x444   : > { %v4484_v2 = vpack.c.bf16 %v4338_v27, %v4337_v9  ;;  %v5289_v59 = vadd.f32 %v9666_v13, %v7502_v51  ;;  %v5280_v6 = vpop.f32.mrb[61].mxu0 }
 0x445   : > { %v4483_v35 = vpack.c.bf16 %v4336_v38, %v4335_v47  ;;  %v5281_v14 = vadd.f32 %v9666_v13, %v5280_v6  ;;  %v7310_v44 = vpop.f32.mrb[172].mxu1  ;;  %v7503_v17 = vpop.f32.mrb[62].mxu0 }
 0x446   : > { %5918 = vst.msk [vmem:[%s9047_s21 + $0x570] sm:$0xff] %vm5743_vm3, %v5289_v59  ;;  %v4049_v4 = vadd.f32 %v9655_v1, %v7310_v44  ;;  %v5292_v34 = vadd.f32 %v9666_v13, %v7503_v17  ;;  %v4040_v41 = vpop.f32.mrb[173].mxu1  ;;  %v5283_v7 = vpop.f32.mrb[63].mxu0 }
 0x447   : > { %5916 = vst.msk [vmem:[%s9047_s21 + $0x560] sm:$0xff] %vm5743_vm3, %v5281_v14  ;;  %v4041_v60 = vadd.f32 %v9655_v1, %v4040_v41  ;;  %v5284_v21 = vadd.f32 %v9666_v13, %v5283_v7  ;;  %v7311_v49 = vpop.f32.mrb[174].mxu1  ;;  %7608 = vmatprep.mubr.bf16.mxu0 %v4483_v35 }
 0x448   : > { %5919 = vst.msk [vmem:[%s9047_s21 + $0x578] sm:$0xff] %vm5743_vm3, %v5292_v34  ;;  %v4052_v26 = vadd.f32 %v9655_v1, %v7311_v49  ;;  %v4043_v42 = vpop.f32.mrb[175].mxu1  ;;  %7609 = vmatmul.mubr.bf16.gmra.mrb[168].mxu0 %v4484_v2  ;;  %v4341_v40 = vmax.f32 %v4049_v4, 0.0 }
 0x449   : > { %5917 = vst.msk [vmem:[%s9047_s21 + $0x568] sm:$0xff] %vm5743_vm3, %v5284_v21  ;;  %v4044_v63 = vadd.f32 %v9655_v1, %v4043_v42  ;;  %v4339_v54 = vmax.f32 %v4041_v60, 0.0 }
 0x44a   : > { %v4342_v53 = vmax.f32 %v4052_v26, 0.0 }
 0x44b   : > { %v4340_v55 = vmax.f32 %v4044_v63, 0.0  ;;  %v7506_v36 = vpop.f32.mrb[64].mxu0 }
 0x44c   : > { %v4486_v62 = vpack.c.bf16 %v4342_v53, %v4341_v40  ;;  %v5305_v32 = vadd.f32 %v9666_v13, %v7506_v36  ;;  %v5296_v11 = vpop.f32.mrb[65].mxu0 }
 0x44d   : > { %v4485_v5 = vpack.c.bf16 %v4340_v55, %v4339_v54  ;;  %v5297_v25 = vadd.f32 %v9666_v13, %v5296_v11  ;;  %v7507_v0 = vpop.f32.mrb[66].mxu0 }
 0x44e   : > { %5922 = vst.msk [vmem:[%s9047_s21 + $0x590] sm:$0xff] %vm5743_vm3, %v5305_v32  ;;  %v5308_v1 = vadd.f32 %v9666_v13, %v7507_v0  ;;  %v5299_v19 = vpop.f32.mrb[67].mxu0 }
 0x44f   : > { %5920 = vst.msk [vmem:[%s9047_s21 + $0x580] sm:$0xff] %vm5743_vm3, %v5297_v25  ;;  %v5300_v39 = vadd.f32 %v9666_v13, %v5299_v19  ;;  %7612 = vmatprep.mubr.bf16.mxu0 %v4485_v5 }
 0x450   : > { %5923 = vst.msk [vmem:[%s9047_s21 + $0x598] sm:$0xff] %vm5743_vm3, %v5308_v1  ;;  %7613 = vmatmul.mubr.bf16.gmra.mrb[172].mxu0 %v4486_v62 }
 0x451   : > { %5921 = vst.msk [vmem:[%s9047_s21 + $0x588] sm:$0xff] %vm5743_vm3, %v5300_v39 }
 0x453   : > { %v7510_v22 = vpop.f32.mrb[68].mxu0 }
 0x454   : > { %v5321_v45 = vadd.f32 %v9666_v13, %v7510_v22  ;;  %v5312_v29 = vpop.f32.mrb[69].mxu0 }
 0x455   : > { %v5313_v46 = vadd.f32 %v9666_v13, %v5312_v29  ;;  %v7511_v43 = vpop.f32.mrb[70].mxu0 }
 0x456   : > { %5926 = vst.msk [vmem:[%s9047_s21 + $0x5b0] sm:$0xff] %vm5743_vm3, %v5321_v45  ;;  %v5324_v33 = vadd.f32 %v9666_v13, %v7511_v43  ;;  %v5315_v50 = vpop.f32.mrb[71].mxu0 }
 0x457   : > { %5924 = vst.msk [vmem:[%s9047_s21 + $0x5a0] sm:$0xff] %vm5743_vm3, %v5313_v46  ;;  %v5316_v37 = vadd.f32 %v9666_v13, %v5315_v50 }
 0x458   : > { %5927 = vst.msk [vmem:[%s9047_s21 + $0x5b8] sm:$0xff] %vm5743_vm3, %v5324_v33 }
 0x459   : > { %5925 = vst.msk [vmem:[%s9047_s21 + $0x5a8] sm:$0xff] %vm5743_vm3, %v5316_v37 }
 0x45b   : > { %v7514_v16 = vpop.f32.mrb[72].mxu0 }
 0x45c   : > { %v5337_v20 = vadd.f32 %v9666_v13, %v7514_v16  ;;  %v5328_v57 = vpop.f32.mrb[73].mxu0 }
 0x45d   : > { %v5329_v10 = vadd.f32 %v9666_v13, %v5328_v57  ;;  %v7515_v3 = vpop.f32.mrb[74].mxu0 }
 0x45e   : > { %5930 = vst.msk [vmem:[%s9047_s21 + $0x5d0] sm:$0xff] %vm5743_vm3, %v5337_v20  ;;  %v5340_v28 = vadd.f32 %v9666_v13, %v7515_v3  ;;  %v5331_v18 = vpop.f32.mrb[75].mxu0 }
 0x45f   : > { %5928 = vst.msk [vmem:[%s9047_s21 + $0x5c0] sm:$0xff] %vm5743_vm3, %v5329_v10  ;;  %v5332_v58 = vadd.f32 %v9666_v13, %v5331_v18 }
 0x460   : > { %5931 = vst.msk [vmem:[%s9047_s21 + $0x5d8] sm:$0xff] %vm5743_vm3, %v5340_v28 }
 0x461   : > { %5929 = vst.msk [vmem:[%s9047_s21 + $0x5c8] sm:$0xff] %vm5743_vm3, %v5332_v58 }
 0x463   : > { %v7518_v52 = vpop.f32.mrb[76].mxu0 }
 0x464   : > { %v5353_v15 = vadd.f32 %v9666_v13, %v7518_v52  ;;  %v5344_v56 = vpop.f32.mrb[77].mxu0 }
 0x465   : > { %v5345_v24 = vadd.f32 %v9666_v13, %v5344_v56  ;;  %v7519_v61 = vpop.f32.mrb[78].mxu0 }
 0x466   : > { %5934 = vst.msk [vmem:[%s9047_s21 + $0x5f0] sm:$0xff] %vm5743_vm3, %v5353_v15  ;;  %v5356_v12 = vadd.f32 %v9666_v13, %v7519_v61  ;;  %v5347_v48 = vpop.f32.mrb[79].mxu0 }
 0x467   : > { %5932 = vst.msk [vmem:[%s9047_s21 + $0x5e0] sm:$0xff] %vm5743_vm3, %v5345_v24  ;;  %v5348_v30 = vadd.f32 %v9666_v13, %v5347_v48 }
 0x468   : > { %5935 = vst.msk [vmem:[%s9047_s21 + $0x5f8] sm:$0xff] %vm5743_vm3, %v5356_v12 }
 0x469   : > { %5933 = vst.msk [vmem:[%s9047_s21 + $0x5e8] sm:$0xff] %vm5743_vm3, %v5348_v30 }
 0x46b   : > { %v7522_v8 = vpop.f32.mrb[80].mxu0 }
 0x46c   : > { %v5369_v31 = vadd.f32 %v9666_v13, %v7522_v8  ;;  %v5360_v23 = vpop.f32.mrb[81].mxu0 }
 0x46d   : > { %v5361_v9 = vadd.f32 %v9666_v13, %v5360_v23  ;;  %v7523_v27 = vpop.f32.mrb[82].mxu0 }
 0x46e   : > { %5938 = vst.msk [vmem:[%s9047_s21 + $0x610] sm:$0xff] %vm5743_vm3, %v5369_v31  ;;  %v5372_v47 = vadd.f32 %v9666_v13, %v7523_v27  ;;  %v5363_v38 = vpop.f32.mrb[83].mxu0 }
 0x46f   : > { %5936 = vst.msk [vmem:[%s9047_s21 + $0x600] sm:$0xff] %vm5743_vm3, %v5361_v9  ;;  %v5364_v51 = vadd.f32 %v9666_v13, %v5363_v38 }
 0x470   : > { %5939 = vst.msk [vmem:[%s9047_s21 + $0x618] sm:$0xff] %vm5743_vm3, %v5372_v47 }
 0x471   : > { %5937 = vst.msk [vmem:[%s9047_s21 + $0x608] sm:$0xff] %vm5743_vm3, %v5364_v51 }
 0x473   : > { %v7526_v2 = vpop.f32.mrb[84].mxu0 }
 0x474   : > { %v5385_v59 = vadd.f32 %v9666_v13, %v7526_v2  ;;  %v5376_v6 = vpop.f32.mrb[85].mxu0 }
 0x475   : > { %v5377_v35 = vadd.f32 %v9666_v13, %v5376_v6  ;;  %v7527_v14 = vpop.f32.mrb[86].mxu0 }
 0x476   : > { %5942 = vst.msk [vmem:[%s9047_s21 + $0x630] sm:$0xff] %vm5743_vm3, %v5385_v59  ;;  %v5388_v44 = vadd.f32 %v9666_v13, %v7527_v14  ;;  %v5379_v17 = vpop.f32.mrb[87].mxu0 }
 0x477   : > { %5940 = vst.msk [vmem:[%s9047_s21 + $0x620] sm:$0xff] %vm5743_vm3, %v5377_v35  ;;  %v5380_v4 = vadd.f32 %v9666_v13, %v5379_v17 }
 0x478   : > { %5943 = vst.msk [vmem:[%s9047_s21 + $0x638] sm:$0xff] %vm5743_vm3, %v5388_v44 }
 0x479   : > { %5941 = vst.msk [vmem:[%s9047_s21 + $0x628] sm:$0xff] %vm5743_vm3, %v5380_v4 }
 0x47b   : > { %v7530_v34 = vpop.f32.mrb[88].mxu0 }
 0x47c   : > { %v5401_v41 = vadd.f32 %v9666_v13, %v7530_v34  ;;  %v5392_v7 = vpop.f32.mrb[89].mxu0 }
 0x47d   : > { %v5393_v60 = vadd.f32 %v9666_v13, %v5392_v7  ;;  %v7531_v21 = vpop.f32.mrb[90].mxu0 }
 0x47e   : > { %5946 = vst.msk [vmem:[%s9047_s21 + $0x650] sm:$0xff] %vm5743_vm3, %v5401_v41  ;;  %v5404_v49 = vadd.f32 %v9666_v13, %v7531_v21  ;;  %v5395_v26 = vpop.f32.mrb[91].mxu0 }
 0x47f   : > { %5944 = vst.msk [vmem:[%s9047_s21 + $0x640] sm:$0xff] %vm5743_vm3, %v5393_v60  ;;  %v5396_v42 = vadd.f32 %v9666_v13, %v5395_v26 }
 0x480   : > { %5947 = vst.msk [vmem:[%s9047_s21 + $0x658] sm:$0xff] %vm5743_vm3, %v5404_v49 }
 0x481   : > { %5945 = vst.msk [vmem:[%s9047_s21 + $0x648] sm:$0xff] %vm5743_vm3, %v5396_v42 }
 0x483   : > { %v7534_v63 = vpop.f32.mrb[92].mxu0 }
 0x484   : > { %v5417_v40 = vadd.f32 %v9666_v13, %v7534_v63  ;;  %v5408_v53 = vpop.f32.mrb[93].mxu0 }
 0x485   : > { %v5409_v54 = vadd.f32 %v9666_v13, %v5408_v53  ;;  %v7535_v55 = vpop.f32.mrb[94].mxu0 }
 0x486   : > { %5950 = vst.msk [vmem:[%s9047_s21 + $0x670] sm:$0xff] %vm5743_vm3, %v5417_v40  ;;  %v5420_v36 = vadd.f32 %v9666_v13, %v7535_v55  ;;  %v5411_v62 = vpop.f32.mrb[95].mxu0 }
 0x487   : > { %5948 = vst.msk [vmem:[%s9047_s21 + $0x660] sm:$0xff] %vm5743_vm3, %v5409_v54  ;;  %v5412_v32 = vadd.f32 %v9666_v13, %v5411_v62 }
 0x488   : > { %5951 = vst.msk [vmem:[%s9047_s21 + $0x678] sm:$0xff] %vm5743_vm3, %v5420_v36 }
 0x489   : > { %5949 = vst.msk [vmem:[%s9047_s21 + $0x668] sm:$0xff] %vm5743_vm3, %v5412_v32 }
 0x48b   : > { %v7538_v11 = vpop.f32.mrb[96].mxu0 }
 0x48c   : > { %v5433_v5 = vadd.f32 %v9666_v13, %v7538_v11  ;;  %v5424_v25 = vpop.f32.mrb[97].mxu0 }
 0x48d   : > { %v5425_v0 = vadd.f32 %v9666_v13, %v5424_v25  ;;  %v7539_v1 = vpop.f32.mrb[98].mxu0 }
 0x48e   : > { %5954 = vst.msk [vmem:[%s9047_s21 + $0x690] sm:$0xff] %vm5743_vm3, %v5433_v5  ;;  %v5436_v19 = vadd.f32 %v9666_v13, %v7539_v1  ;;  %v5427_v39 = vpop.f32.mrb[99].mxu0 }
 0x48f   : > { %5952 = vst.msk [vmem:[%s9047_s21 + $0x680] sm:$0xff] %vm5743_vm3, %v5425_v0  ;;  %v5428_v22 = vadd.f32 %v9666_v13, %v5427_v39 }
 0x490   : > { %5955 = vst.msk [vmem:[%s9047_s21 + $0x698] sm:$0xff] %vm5743_vm3, %v5436_v19 }
 0x491   : > { %5953 = vst.msk [vmem:[%s9047_s21 + $0x688] sm:$0xff] %vm5743_vm3, %v5428_v22 }
 0x493   : > { %v7542_v45 = vpop.f32.mrb[100].mxu0 }
 0x494   : > { %v5449_v29 = vadd.f32 %v9666_v13, %v7542_v45  ;;  %v5440_v46 = vpop.f32.mrb[101].mxu0 }
 0x495   : > { %v5441_v43 = vadd.f32 %v9666_v13, %v5440_v46  ;;  %v7543_v33 = vpop.f32.mrb[102].mxu0 }
 0x496   : > { %5958 = vst.msk [vmem:[%s9047_s21 + $0x6b0] sm:$0xff] %vm5743_vm3, %v5449_v29  ;;  %v5452_v50 = vadd.f32 %v9666_v13, %v7543_v33  ;;  %v5443_v37 = vpop.f32.mrb[103].mxu0 }
 0x497   : > { %5956 = vst.msk [vmem:[%s9047_s21 + $0x6a0] sm:$0xff] %vm5743_vm3, %v5441_v43  ;;  %v5444_v16 = vadd.f32 %v9666_v13, %v5443_v37 }
 0x498   : > { %5959 = vst.msk [vmem:[%s9047_s21 + $0x6b8] sm:$0xff] %vm5743_vm3, %v5452_v50 }
 0x499   : > { %5957 = vst.msk [vmem:[%s9047_s21 + $0x6a8] sm:$0xff] %vm5743_vm3, %v5444_v16 }
 0x49b   : > { %v7546_v20 = vpop.f32.mrb[104].mxu0 }
 0x49c   : > { %v5465_v57 = vadd.f32 %v9666_v13, %v7546_v20  ;;  %v5456_v10 = vpop.f32.mrb[105].mxu0 }
 0x49d   : > { %v5457_v3 = vadd.f32 %v9666_v13, %v5456_v10  ;;  %v7547_v28 = vpop.f32.mrb[106].mxu0 }
 0x49e   : > { %5962 = vst.msk [vmem:[%s9047_s21 + $0x6d0] sm:$0xff] %vm5743_vm3, %v5465_v57  ;;  %v5468_v18 = vadd.f32 %v9666_v13, %v7547_v28  ;;  %v5459_v58 = vpop.f32.mrb[107].mxu0 }
 0x49f   : > { %5960 = vst.msk [vmem:[%s9047_s21 + $0x6c0] sm:$0xff] %vm5743_vm3, %v5457_v3  ;;  %v5460_v52 = vadd.f32 %v9666_v13, %v5459_v58 }
 0x4a0   : > { %5963 = vst.msk [vmem:[%s9047_s21 + $0x6d8] sm:$0xff] %vm5743_vm3, %v5468_v18 }
 0x4a1   : > { %5961 = vst.msk [vmem:[%s9047_s21 + $0x6c8] sm:$0xff] %vm5743_vm3, %v5460_v52 }
 0x4a3   : > { %v7550_v15 = vpop.f32.mrb[108].mxu0 }
 0x4a4   : > { %v5481_v56 = vadd.f32 %v9666_v13, %v7550_v15  ;;  %v5472_v24 = vpop.f32.mrb[109].mxu0 }
 0x4a5   : > { %v5473_v61 = vadd.f32 %v9666_v13, %v5472_v24  ;;  %v7551_v12 = vpop.f32.mrb[110].mxu0 }
 0x4a6   : > { %5966 = vst.msk [vmem:[%s9047_s21 + $0x6f0] sm:$0xff] %vm5743_vm3, %v5481_v56  ;;  %v5484_v48 = vadd.f32 %v9666_v13, %v7551_v12  ;;  %v5475_v30 = vpop.f32.mrb[111].mxu0 }
 0x4a7   : > { %5964 = vst.msk [vmem:[%s9047_s21 + $0x6e0] sm:$0xff] %vm5743_vm3, %v5473_v61  ;;  %v5476_v8 = vadd.f32 %v9666_v13, %v5475_v30 }
 0x4a8   : > { %5967 = vst.msk [vmem:[%s9047_s21 + $0x6f8] sm:$0xff] %vm5743_vm3, %v5484_v48 }
 0x4a9   : > { %5965 = vst.msk [vmem:[%s9047_s21 + $0x6e8] sm:$0xff] %vm5743_vm3, %v5476_v8 }
 0x4ab   : > { %v7554_v31 = vpop.f32.mrb[112].mxu0 }
 0x4ac   : > { %v5497_v23 = vadd.f32 %v9666_v13, %v7554_v31  ;;  %v5488_v9 = vpop.f32.mrb[113].mxu0 }
 0x4ad   : > { %v5489_v27 = vadd.f32 %v9666_v13, %v5488_v9  ;;  %v7555_v47 = vpop.f32.mrb[114].mxu0 }
 0x4ae   : > { %5970 = vst.msk [vmem:[%s9047_s21 + $0x710] sm:$0xff] %vm5743_vm3, %v5497_v23  ;;  %v5500_v38 = vadd.f32 %v9666_v13, %v7555_v47  ;;  %v5491_v51 = vpop.f32.mrb[115].mxu0 }
 0x4af   : > { %5968 = vst.msk [vmem:[%s9047_s21 + $0x700] sm:$0xff] %vm5743_vm3, %v5489_v27  ;;  %v5492_v2 = vadd.f32 %v9666_v13, %v5491_v51 }
 0x4b0   : > { %5971 = vst.msk [vmem:[%s9047_s21 + $0x718] sm:$0xff] %vm5743_vm3, %v5500_v38 }
 0x4b1   : > { %5969 = vst.msk [vmem:[%s9047_s21 + $0x708] sm:$0xff] %vm5743_vm3, %v5492_v2 }
 0x4b3   : > { %v7558_v59 = vpop.f32.mrb[116].mxu0 }
 0x4b4   : > { %v5513_v6 = vadd.f32 %v9666_v13, %v7558_v59  ;;  %v5504_v35 = vpop.f32.mrb[117].mxu0 }
 0x4b5   : > { %v5505_v14 = vadd.f32 %v9666_v13, %v5504_v35  ;;  %v7559_v44 = vpop.f32.mrb[118].mxu0 }
 0x4b6   : > { %5974 = vst.msk [vmem:[%s9047_s21 + $0x730] sm:$0xff] %vm5743_vm3, %v5513_v6  ;;  %v5516_v17 = vadd.f32 %v9666_v13, %v7559_v44  ;;  %v5507_v4 = vpop.f32.mrb[119].mxu0 }
 0x4b7   : > { %5972 = vst.msk [vmem:[%s9047_s21 + $0x720] sm:$0xff] %vm5743_vm3, %v5505_v14  ;;  %v5508_v34 = vadd.f32 %v9666_v13, %v5507_v4 }
 0x4b8   : > { %5975 = vst.msk [vmem:[%s9047_s21 + $0x738] sm:$0xff] %vm5743_vm3, %v5516_v17 }
 0x4b9   : > { %5973 = vst.msk [vmem:[%s9047_s21 + $0x728] sm:$0xff] %vm5743_vm3, %v5508_v34 }
 0x4bb   : > { %v7562_v41 = vpop.f32.mrb[120].mxu0 }
 0x4bc   : > { %v5529_v7 = vadd.f32 %v9666_v13, %v7562_v41  ;;  %v5520_v60 = vpop.f32.mrb[121].mxu0 }
 0x4bd   : > { %v5521_v21 = vadd.f32 %v9666_v13, %v5520_v60  ;;  %v7563_v49 = vpop.f32.mrb[122].mxu0 }
 0x4be   : > { %5978 = vst.msk [vmem:[%s9047_s21 + $0x750] sm:$0xff] %vm5743_vm3, %v5529_v7  ;;  %v5532_v26 = vadd.f32 %v9666_v13, %v7563_v49  ;;  %v5523_v42 = vpop.f32.mrb[123].mxu0  ;;  %v10075_v49 = vld [vmem:[%s10157_s6] ss:$0 sm:$0xff] }
 0x4bf   : > { %5976 = vst.msk [vmem:[%s9047_s21 + $0x740] sm:$0xff] %vm5743_vm3, %v5521_v21  ;;  %v5524_v63 = vadd.f32 %v9666_v13, %v5523_v42 }
 0x4c0   : > { %5979 = vst.msk [vmem:[%s9047_s21 + $0x758] sm:$0xff] %vm5743_vm3, %v5532_v26 }
 0x4c1   : > { %5977 = vst.msk [vmem:[%s9047_s21 + $0x748] sm:$0xff] %vm5743_vm3, %v5524_v63 }
 0x4c3   : > { %v7566_v40 = vpop.f32.mrb[124].mxu0 }
 0x4c4   : > { %v5545_v53 = vadd.f32 %v9666_v13, %v7566_v40  ;;  %v5536_v54 = vpop.f32.mrb[125].mxu0 }
 0x4c5   : > { %v5537_v55 = vadd.f32 %v9666_v13, %v5536_v54  ;;  %v7567_v36 = vpop.f32.mrb[126].mxu0 }
 0x4c6   : > { %5982 = vst.msk [vmem:[%s9047_s21 + $0x770] sm:$0xff] %vm5743_vm3, %v5545_v53  ;;  %v5548_v62 = vadd.f32 %v9666_v13, %v7567_v36  ;;  %v5539_v32 = vpop.f32.mrb[127].mxu0 }
 0x4c7   : > { %5980 = vst.msk [vmem:[%s9047_s21 + $0x760] sm:$0xff] %vm5743_vm3, %v5537_v55  ;;  %v5540_v11 = vadd.f32 %v9666_v13, %v5539_v32 }
 0x4c8   : > { %5983 = vst.msk [vmem:[%s9047_s21 + $0x778] sm:$0xff] %vm5743_vm3, %v5548_v62 }
 0x4c9   : > { %5981 = vst.msk [vmem:[%s9047_s21 + $0x768] sm:$0xff] %vm5743_vm3, %v5540_v11 }
 0x4cb   : > { %v7570_v5 = vpop.f32.mrb[128].mxu0 }
 0x4cc   : > { %v5561_v25 = vadd.f32 %v9666_v13, %v7570_v5  ;;  %v5552_v0 = vpop.f32.mrb[129].mxu0 }
 0x4cd   : > { %v5553_v1 = vadd.f32 %v9666_v13, %v5552_v0  ;;  %v7571_v19 = vpop.f32.mrb[130].mxu0 }
 0x4ce   : > { %5986 = vst.msk [vmem:[%s9047_s21 + $0x790] sm:$0xff] %vm5743_vm3, %v5561_v25  ;;  %v5564_v39 = vadd.f32 %v9666_v13, %v7571_v19  ;;  %v5555_v22 = vpop.f32.mrb[131].mxu0 }
 0x4cf   : > { %5984 = vst.msk [vmem:[%s9047_s21 + $0x780] sm:$0xff] %vm5743_vm3, %v5553_v1  ;;  %v5556_v45 = vadd.f32 %v9666_v13, %v5555_v22 }
 0x4d0   : > { %5987 = vst.msk [vmem:[%s9047_s21 + $0x798] sm:$0xff] %vm5743_vm3, %v5564_v39 }
 0x4d1   : > { %5985 = vst.msk [vmem:[%s9047_s21 + $0x788] sm:$0xff] %vm5743_vm3, %v5556_v45 }
 0x4d3   : > { %v7574_v29 = vpop.f32.mrb[132].mxu0 }
 0x4d4   : > { %v5577_v46 = vadd.f32 %v9666_v13, %v7574_v29  ;;  %v5568_v43 = vpop.f32.mrb[133].mxu0 }
 0x4d5   : > { %v5569_v33 = vadd.f32 %v9666_v13, %v5568_v43  ;;  %v7575_v50 = vpop.f32.mrb[134].mxu0 }
 0x4d6   : > { %5990 = vst.msk [vmem:[%s9047_s21 + $0x7b0] sm:$0xff] %vm5743_vm3, %v5577_v46  ;;  %v5580_v37 = vadd.f32 %v9666_v13, %v7575_v50  ;;  %v5571_v16 = vpop.f32.mrb[135].mxu0 }
 0x4d7   : > { %5988 = vst.msk [vmem:[%s9047_s21 + $0x7a0] sm:$0xff] %vm5743_vm3, %v5569_v33  ;;  %v5572_v20 = vadd.f32 %v9666_v13, %v5571_v16 }
 0x4d8   : > { %5991 = vst.msk [vmem:[%s9047_s21 + $0x7b8] sm:$0xff] %vm5743_vm3, %v5580_v37 }
 0x4d9   : > { %5989 = vst.msk [vmem:[%s9047_s21 + $0x7a8] sm:$0xff] %vm5743_vm3, %v5572_v20 }
 0x4db   : > { %v7578_v57 = vpop.f32.mrb[136].mxu0 }
 0x4dc   : > { %v5593_v10 = vadd.f32 %v9666_v13, %v7578_v57  ;;  %v5584_v3 = vpop.f32.mrb[137].mxu0 }
 0x4dd   : > { %v5585_v28 = vadd.f32 %v9666_v13, %v5584_v3  ;;  %v7579_v18 = vpop.f32.mrb[138].mxu0 }
 0x4de   : > { %5994 = vst.msk [vmem:[%s9047_s21 + $0x7d0] sm:$0xff] %vm5743_vm3, %v5593_v10  ;;  %v5596_v58 = vadd.f32 %v9666_v13, %v7579_v18  ;;  %v5587_v52 = vpop.f32.mrb[139].mxu0 }
 0x4df   : > { %5992 = vst.msk [vmem:[%s9047_s21 + $0x7c0] sm:$0xff] %vm5743_vm3, %v5585_v28  ;;  %v5588_v15 = vadd.f32 %v9666_v13, %v5587_v52 }
 0x4e0   : > { %5995 = vst.msk [vmem:[%s9047_s21 + $0x7d8] sm:$0xff] %vm5743_vm3, %v5596_v58 }
 0x4e1   : > { %5993 = vst.msk [vmem:[%s9047_s21 + $0x7c8] sm:$0xff] %vm5743_vm3, %v5588_v15 }
 0x4e3   : > { %v7582_v56 = vpop.f32.mrb[140].mxu0 }
 0x4e4   : > { %v5609_v24 = vadd.f32 %v9666_v13, %v7582_v56  ;;  %v5600_v61 = vpop.f32.mrb[141].mxu0 }
 0x4e5   : > { %v5601_v12 = vadd.f32 %v9666_v13, %v5600_v61  ;;  %v7583_v48 = vpop.f32.mrb[142].mxu0 }
 0x4e6   : > { %5998 = vst.msk [vmem:[%s9047_s21 + $0x7f0] sm:$0xff] %vm5743_vm3, %v5609_v24  ;;  %v5612_v30 = vadd.f32 %v9666_v13, %v7583_v48  ;;  %v5603_v8 = vpop.f32.mrb[143].mxu0 }
 0x4e7   : > { %5996 = vst.msk [vmem:[%s9047_s21 + $0x7e0] sm:$0xff] %vm5743_vm3, %v5601_v12  ;;  %v5604_v31 = vadd.f32 %v9666_v13, %v5603_v8 }
 0x4e8   : > { %5999 = vst.msk [vmem:[%s9047_s21 + $0x7f8] sm:$0xff] %vm5743_vm3, %v5612_v30 }
 0x4e9   : > { %5997 = vst.msk [vmem:[%s9047_s21 + $0x7e8] sm:$0xff] %vm5743_vm3, %v5604_v31 }
 0x4eb   : > { %v7586_v23 = vpop.f32.mrb[144].mxu0 }
 0x4ec   : > { %v5625_v9 = vadd.f32 %v9666_v13, %v7586_v23  ;;  %v5616_v27 = vpop.f32.mrb[145].mxu0 }
 0x4ed   : > { %v5617_v47 = vadd.f32 %v9666_v13, %v5616_v27  ;;  %v7587_v38 = vpop.f32.mrb[146].mxu0 }
 0x4ee   : > { %6002 = vst.msk [vmem:[%s9047_s21 + $0x810] sm:$0xff] %vm5743_vm3, %v5625_v9  ;;  %v5628_v51 = vadd.f32 %v9666_v13, %v7587_v38  ;;  %v5619_v2 = vpop.f32.mrb[147].mxu0 }
 0x4ef   : > { %6000 = vst.msk [vmem:[%s9047_s21 + $0x800] sm:$0xff] %vm5743_vm3, %v5617_v47  ;;  %v5620_v59 = vadd.f32 %v9666_v13, %v5619_v2 }
 0x4f0   : > { %6003 = vst.msk [vmem:[%s9047_s21 + $0x818] sm:$0xff] %vm5743_vm3, %v5628_v51 }
 0x4f1   : > { %6001 = vst.msk [vmem:[%s9047_s21 + $0x808] sm:$0xff] %vm5743_vm3, %v5620_v59 }
 0x4f3   : > { %v7590_v6 = vpop.f32.mrb[148].mxu0 }
 0x4f4   : > { %v5641_v35 = vadd.f32 %v9666_v13, %v7590_v6  ;;  %v5632_v14 = vpop.f32.mrb[149].mxu0 }
 0x4f5   : > { %v5633_v44 = vadd.f32 %v9666_v13, %v5632_v14  ;;  %v7591_v17 = vpop.f32.mrb[150].mxu0 }
 0x4f6   : > { %6006 = vst.msk [vmem:[%s9047_s21 + $0x830] sm:$0xff] %vm5743_vm3, %v5641_v35  ;;  %v5644_v4 = vadd.f32 %v9666_v13, %v7591_v17  ;;  %v5635_v34 = vpop.f32.mrb[151].mxu0 }
 0x4f7   : > { %6004 = vst.msk [vmem:[%s9047_s21 + $0x820] sm:$0xff] %vm5743_vm3, %v5633_v44  ;;  %v5636_v41 = vadd.f32 %v9666_v13, %v5635_v34 }
 0x4f8   : > { %6007 = vst.msk [vmem:[%s9047_s21 + $0x838] sm:$0xff] %vm5743_vm3, %v5644_v4 }
 0x4f9   : > { %6005 = vst.msk [vmem:[%s9047_s21 + $0x828] sm:$0xff] %vm5743_vm3, %v5636_v41 }
 0x4fb   : > { %v7594_v7 = vpop.f32.mrb[152].mxu0 }
 0x4fc   : > { %v5657_v60 = vadd.f32 %v9666_v13, %v7594_v7  ;;  %v5648_v21 = vpop.f32.mrb[153].mxu0 }
 0x4fd   : > { %v5649_v26 = vadd.f32 %v10075_v49, %v5648_v21  ;;  %v7595_v42 = vpop.f32.mrb[154].mxu0 }
 0x4fe   : > { %6010 = vst.msk [vmem:[%s9047_s21 + $0x850] sm:$0xff] %vm5743_vm3, %v5657_v60  ;;  %v5660_v63 = vadd.f32 %v10075_v49, %v7595_v42  ;;  %v5651_v40 = vpop.f32.mrb[155].mxu0 }
 0x4ff   : > { %6008 = vst.msk [vmem:[%s9047_s21 + $0x840] sm:$0xff] %vm5743_vm3, %v5649_v26  ;;  %v5652_v13 = vadd.f32 %v10075_v49, %v5651_v40 }
 0x500   : > { %6011 = vst.msk [vmem:[%s9047_s21 + $0x858] sm:$0xff] %vm5743_vm3, %v5660_v63 }
 0x501   : > { %6009 = vst.msk [vmem:[%s9047_s21 + $0x848] sm:$0xff] %vm5743_vm3, %v5652_v13 }
 0x503   : > { %v7598_v53 = vpop.f32.mrb[156].mxu0 }
 0x504   : > { %v5673_v54 = vadd.f32 %v10075_v49, %v7598_v53  ;;  %v5664_v55 = vpop.f32.mrb[157].mxu0 }
 0x505   : > { %v5665_v36 = vadd.f32 %v10075_v49, %v5664_v55  ;;  %v7599_v62 = vpop.f32.mrb[158].mxu0 }
 0x506   : > { %6014 = vst.msk [vmem:[%s9047_s21 + $0x870] sm:$0xff] %vm5743_vm3, %v5673_v54  ;;  %v5676_v32 = vadd.f32 %v10075_v49, %v7599_v62  ;;  %v5667_v11 = vpop.f32.mrb[159].mxu0 }
 0x507   : > { %6012 = vst.msk [vmem:[%s9047_s21 + $0x860] sm:$0xff] %vm5743_vm3, %v5665_v36  ;;  %v5668_v5 = vadd.f32 %v10075_v49, %v5667_v11 }
 0x508   : > { %6015 = vst.msk [vmem:[%s9047_s21 + $0x878] sm:$0xff] %vm5743_vm3, %v5676_v32 }
 0x509   : > { %6013 = vst.msk [vmem:[%s9047_s21 + $0x868] sm:$0xff] %vm5743_vm3, %v5668_v5 }
 0x50b   : > { %v7602_v25 = vpop.f32.mrb[160].mxu0 }
 0x50c   : > { %v5689_v0 = vadd.f32 %v10075_v49, %v7602_v25  ;;  %v5680_v1 = vpop.f32.mrb[161].mxu0 }
 0x50d   : > { %v5681_v19 = vadd.f32 %v10075_v49, %v5680_v1  ;;  %v7603_v39 = vpop.f32.mrb[162].mxu0 }
 0x50e   : > { %6018 = vst.msk [vmem:[%s9047_s21 + $0x890] sm:$0xff] %vm5743_vm3, %v5689_v0  ;;  %v5692_v22 = vadd.f32 %v10075_v49, %v7603_v39  ;;  %v5683_v45 = vpop.f32.mrb[163].mxu0 }
 0x50f   : > { %6016 = vst.msk [vmem:[%s9047_s21 + $0x880] sm:$0xff] %vm5743_vm3, %v5681_v19  ;;  %v5684_v29 = vadd.f32 %v10075_v49, %v5683_v45 }
 0x510   : > { %6019 = vst.msk [vmem:[%s9047_s21 + $0x898] sm:$0xff] %vm5743_vm3, %v5692_v22 }
 0x511   : > { %6017 = vst.msk [vmem:[%s9047_s21 + $0x888] sm:$0xff] %vm5743_vm3, %v5684_v29 }
 0x513   : > { %v7606_v46 = vpop.f32.mrb[164].mxu0 }
 0x514   : > { %v5705_v43 = vadd.f32 %v10075_v49, %v7606_v46  ;;  %v5696_v33 = vpop.f32.mrb[165].mxu0 }
 0x515   : > { %v5697_v50 = vadd.f32 %v10075_v49, %v5696_v33  ;;  %v7607_v37 = vpop.f32.mrb[166].mxu0 }
 0x516   : > { %6022 = vst.msk [vmem:[%s9047_s21 + $0x8b0] sm:$0xff] %vm5743_vm3, %v5705_v43  ;;  %v5708_v16 = vadd.f32 %v10075_v49, %v7607_v37  ;;  %v5699_v20 = vpop.f32.mrb[167].mxu0 }
 0x517   : > { %6020 = vst.msk [vmem:[%s9047_s21 + $0x8a0] sm:$0xff] %vm5743_vm3, %v5697_v50  ;;  %v5700_v57 = vadd.f32 %v10075_v49, %v5699_v20 }
 0x518   : > { %6023 = vst.msk [vmem:[%s9047_s21 + $0x8b8] sm:$0xff] %vm5743_vm3, %v5708_v16 }
 0x519   : > { %6021 = vst.msk [vmem:[%s9047_s21 + $0x8a8] sm:$0xff] %vm5743_vm3, %v5700_v57 }
 0x51b   : > { %v7610_v10 = vpop.f32.mrb[168].mxu0 }
 0x51c   : > { %v5721_v3 = vadd.f32 %v10075_v49, %v7610_v10  ;;  %v5712_v28 = vpop.f32.mrb[169].mxu0 }
 0x51d   : > { %v5713_v18 = vadd.f32 %v10075_v49, %v5712_v28  ;;  %v7611_v58 = vpop.f32.mrb[170].mxu0 }
 0x51e   : > { %6026 = vst.msk [vmem:[%s9047_s21 + $0x8d0] sm:$0xff] %vm5743_vm3, %v5721_v3  ;;  %v5724_v52 = vadd.f32 %v10075_v49, %v7611_v58  ;;  %v5715_v15 = vpop.f32.mrb[171].mxu0 }
 0x51f   : > { %6024 = vst.msk [vmem:[%s9047_s21 + $0x8c0] sm:$0xff] %vm5743_vm3, %v5713_v18  ;;  %v5716_v56 = vadd.f32 %v10075_v49, %v5715_v15 }
 0x520   : > { %6027 = vst.msk [vmem:[%s9047_s21 + $0x8d8] sm:$0xff] %vm5743_vm3, %v5724_v52 }
 0x521   : > { %6025 = vst.msk [vmem:[%s9047_s21 + $0x8c8] sm:$0xff] %vm5743_vm3, %v5716_v56 }
 0x523   : > { %v7614_v24 = vpop.f32.mrb[172].mxu0 }
 0x524   : > { %v5737_v61 = vadd.f32 %v10075_v49, %v7614_v24  ;;  %v5728_v12 = vpop.f32.mrb[173].mxu0 }
 0x525   : > { %v5729_v48 = vadd.f32 %v10075_v49, %v5728_v12  ;;  %v7615_v30 = vpop.f32.mrb[174].mxu0 }
 0x526   : > { %6030 = vst.msk [vmem:[%s9047_s21 + $0x8f0] sm:$0xff] %vm5743_vm3, %v5737_v61  ;;  %v5740_v8 = vadd.f32 %v10075_v49, %v7615_v30  ;;  %v5731_v31 = vpop.f32.mrb[175].mxu0 }
 0x527   : > { %6028 = vst.msk [vmem:[%s9047_s21 + $0x8e0] sm:$0xff] %vm5743_vm3, %v5729_v48  ;;  %v5732_v23 = vadd.f32 %v10075_v49, %v5731_v31 }
 0x528   : > { %6031 = vst.msk [vmem:[%s9047_s21 + $0x8f8] sm:$0xff] %vm5743_vm3, %v5740_v8 }
 0x529   : > { %6029 = vst.msk [vmem:[%s9047_s21 + $0x8e8] sm:$0xff] %vm5743_vm3, %v5732_v23 }
 0x52a PF: > { %s17_s24 = sadd.s32 1, %s7664_s24  }
 0x52b   : > { %p14_p4 = scmp.ge.s32.totalorder %s17_s24, 4  }
 0x52d   :  { %16 = sbr.rel (!%p14_p4) target bundleno = 1 (0x1), region = 78 }

</bundles_post_ra>
